<compile_context>
chip_gen: v6e
topology: v6e:2x2x1
jax: 0.10.0
libtpu: 0.0.40
codegen_flags: <defaults>
</compile_context>

<pallas_src>
import functools

import jax
import jax.numpy as jnp
from jax import lax
from jax.experimental import pallas as pl
from jax.experimental.pallas import tpu as pltpu


# ------------------------------- Pallas kernel ------------------------------ #

def _fused_bn_gconv_kernel(x_ref, w_ref, scale_ref, shift_ref, bias_ref, o_ref, *,
                           K, stride, padding, H, W, TH, Wo, relu):
    """One grid step = TH output rows (all batch images), full kh/kw reduction.

    x_ref:     (N, slab_h, W_pad, Cin)  f32   padded input rows [i*TH*s, i*TH*s+slab_h)
    w_ref:     (K*K*Cin, Cout)          bf16  block-diagonal im2col weights (kh,kw,ci)
    scale_ref: (1, Cin)                 f32   BN scale  (gamma / sqrt(var + eps))
    shift_ref: (1, Cin)                 f32   BN shift  (beta - mean * scale)
    bias_ref:  (1, Cout)                f32   conv bias
    o_ref:     (N, TH, Wo*Cout)         f32   lane-dense output tile
    """
    Nb, slab_h, W_pad, Cin = x_ref.shape
    Cout = bias_ref.shape[-1]

    # Fused BatchNorm affine (+ReLU) on the resident slab, in f32 (once per pixel).
    y = (x_ref[...] * scale_ref[...].reshape(1, 1, 1, Cin)
         + shift_ref[...].reshape(1, 1, 1, Cin))
    if relu:
        y = jnp.maximum(y, 0.0)

    # Zero the conv's spatial zero-padding region *after* BN(+ReLU) so it matches
    # Conv2d's zero padding (padded rows/cols contribute exactly 0 to the dot).
    row0 = pl.program_id(0) * (TH * stride)
    h_idx = row0 + lax.broadcasted_iota(jnp.int32, (1, slab_h, 1, 1), 1)
    w_idx = lax.broadcasted_iota(jnp.int32, (1, 1, W_pad, 1), 2)
    valid = ((h_idx >= padding) & (h_idx < padding + H)
             & (w_idx >= padding) & (w_idx < padding + W))
    y = jnp.where(valid, y, 0.0)

    # im2col over (kh, kw): fold the whole K*K*Cin reduction into one MXU contraction.
    # (For stride > 1 these strided sublane slices repeat XLU work; a one-shot gather
    #  into scratch would be cheaper — stride == 1 here.)
    h_span = (TH - 1) * stride + 1
    w_span = (Wo - 1) * stride + 1
    parts = []
    for kh in range(K):
        for kw in range(K):
            parts.append(y[:, kh:kh + h_span:stride, kw:kw + w_span:stride, :])
    patches = jnp.concatenate(parts, axis=-1)                 # (N, TH, Wo, K*K*Cin)
    a = patches.reshape(Nb * TH * Wo, K * K * Cin).astype(jnp.bfloat16)

    # Single matmul, f32 accumulation; conv bias folded into the f32 result.
    acc = jnp.dot(a, w_ref[...], preferred_element_type=jnp.float32) + bias_ref[...]

    # Lane-dense store: pack (Wo, Cout) into the lane dim -> (N, TH, Wo*Cout).
    acc4 = acc.reshape(Nb, TH, Wo, Cout)                       # layout-preserving split
    packed = jnp.concatenate([acc4[:, :, wo, :] for wo in range(Wo)], axis=-1)
    o_ref[...] = packed.astype(o_ref.dtype)


# ------------------------------ GroupConv forward ---------------------------- #

def _pick_tile_rows(Ho, rows_per_h, target_m=256):
    """Largest divisor TH of Ho with rows_per_h*TH <= ~target_m, keeping TH a multiple
    of 8 (or TH == Ho) so the (8,128) constraint on the output block holds."""
    target = max(1, target_m // max(1, rows_per_h))
    best = None
    for d in range(1, Ho + 1):
        if Ho % d:
            continue
        if d % 8 and d != Ho:
            continue
        if d <= target:
            best = d
    return best if best is not None else Ho


def group_conv_forward(x, params, *, kernel_size, stride=1, padding=0, groups=1,
                       relu=True, eps=1e-5):
    gamma, beta = params["gamma"], params["beta"]
    w, b = params["weight"], params["bias"]
    N, Cin, H, W = x.shape
    Cout = w.shape[0]
    K = kernel_size
    H_pad, W_pad = H + 2 * padding, W + 2 * padding
    Ho = (H_pad - K) // stride + 1
    Wo = (W_pad - K) // stride + 1

    # BatchNorm2d training-mode batch statistics (two-pass, biased variance).
    mean = jnp.mean(x, axis=(0, 2, 3))
    var = jnp.mean(jnp.square(x - mean[None, :, None, None]), axis=(0, 2, 3))
    scale = (gamma / jnp.sqrt(var + eps)).astype(jnp.float32)
    shift = (beta - mean * scale).astype(jnp.float32)

    # Row-tile size: TH output rows per grid step (slab tiling).
    TH = _pick_tile_rows(Ho, N * Wo)
    n_tiles = Ho // TH
    slab_h = (TH - 1) * stride + K

    # NHWC + spatial zero pad, then gather overlapping row-slabs so each grid step's
    # input is one contiguous HBM block (halo rows duplicated: (K-stride)/(TH*stride)).
    x_nhwc = jnp.transpose(x, (0, 2, 3, 1))
    x_pad = jnp.pad(x_nhwc, ((0, 0), (padding, padding), (padding, padding), (0, 0)))
    row_idx = (jnp.arange(n_tiles) * (TH * stride))[:, None] + jnp.arange(slab_h)[None, :]
    x_slabs = jnp.transpose(x_pad[:, row_idx], (1, 0, 2, 3, 4))   # (n_tiles,N,slab_h,W_pad,Cin)

    # Block-diagonal weight (K,K,Cin,Cout) -> (K*K*Cin, Cout) so all groups share one
    # matmul with the full Cout lane width.  (For very large `groups` it would be
    # better to fold groups into the matmul M dim instead of zero-padding weights.)
    Cin_g, Cout_g = Cin // groups, Cout // groups
    w_g = jnp.transpose(w.reshape(groups, Cout_g, Cin_g, K, K), (3, 4, 0, 2, 1))
    eye = jnp.eye(groups, dtype=w.dtype)
    w_bd = (w_g[:, :, :, :, None, :] * eye[None, None, :, None, :, None]
            ).reshape(K, K, Cin, Cout)
    w2 = w_bd.reshape(K * K * Cin, Cout).astype(jnp.bfloat16)

    scale2 = scale.reshape(1, Cin)
    shift2 = shift.reshape(1, Cin)
    bias2 = b.reshape(1, Cout).astype(jnp.float32)

    kernel = functools.partial(_fused_bn_gconv_kernel, K=K, stride=stride,
                               padding=padding, H=H, W=W, TH=TH, Wo=Wo, relu=relu)

    out_packed = pl.pallas_call(
        kernel,
        out_shape=jax.ShapeDtypeStruct((N, Ho, Wo * Cout), jnp.float32),
        grid=(n_tiles,),
        in_specs=[
            # One row-slab (all batch images) per grid step.
            pl.BlockSpec((None, N, slab_h, W_pad, Cin), lambda i: (i, 0, 0, 0, 0)),
            # Whole block-diagonal weight, constant index -> DMA'd once, VMEM-resident.
            pl.BlockSpec((K * K * Cin, Cout), lambda i: (0, 0)),
            pl.BlockSpec((1, Cin), lambda i: (0, 0)),    # BN scale
            pl.BlockSpec((1, Cin), lambda i: (0, 0)),    # BN shift
            pl.BlockSpec((1, Cout), lambda i: (0, 0)),   # conv bias
        ],
        out_specs=pl.BlockSpec((N, TH, Wo * Cout), lambda i: (0, i, 0)),
        compiler_params=pltpu.CompilerParams(
            dimension_semantics=("parallel",),           # independent row tiles
            vmem_limit_bytes=48 * 1024 * 1024,           # fits v7x's 64 MiB with margin
        ),
    )(x_slabs, w2, scale2, shift2, bias2)

    out = out_packed.reshape(N, Ho, Wo, Cout)
    return jnp.transpose(out, (0, 3, 1, 2))              # back to NCHW


# --------------------------------- Reference --------------------------------- #

def reference_forward(x, params, *, kernel_size, stride, padding, groups,
                      relu=True, eps=1e-5):
    gamma, beta = params["gamma"], params["beta"]
    w, b = params["weight"], params["bias"]
    mean = jnp.mean(x, axis=(0, 2, 3), keepdims=True)
    var = jnp.mean((x - mean) ** 2, axis=(0, 2, 3), keepdims=True)
    xn = (x - mean) / jnp.sqrt(var + eps) * gamma[None, :, None, None] \
         + beta[None, :, None, None]
    if relu:
        xn = jnp.maximum(xn, 0.0)
    out = lax.conv_general_dilated(
        xn, w, (stride, stride), [(padding, padding)] * 2,
        feature_group_count=groups,
        dimension_numbers=("NCHW", "OIHW", "NCHW"),
        precision=lax.Precision.HIGHEST)
    return out + b[None, :, None, None]


# ----------------------------------- Main ------------------------------------ #

if __name__ == "__main__":
    N, Cin, Cout = 2, 8, 8
    H = W = 16
    K, stride, padding, groups = 3, 1, 1, 2
    relu = True

    key = jax.random.PRNGKey(0)
    kx, kw, kb = jax.random.split(key, 3)

    x = jax.random.normal(kx, (N, Cin, H, W), dtype=jnp.float32)
    params = {
        "gamma": jnp.ones((Cin,), jnp.float32),    # BatchNorm2d affine init
        "beta": jnp.zeros((Cin,), jnp.float32),
        "weight": 0.1 * jax.random.normal(kw, (Cout, Cin // groups, K, K),
                                          dtype=jnp.float32),
        "bias": 0.1 * jax.random.normal(kb, (Cout,), dtype=jnp.float32),
    }

    out = group_conv_forward(x, params, kernel_size=K, stride=stride,
                             padding=padding, groups=groups, relu=relu)
    out = jax.block_until_ready(out)

    ref = reference_forward(x, params, kernel_size=K, stride=stride,
                            padding=padding, groups=groups, relu=relu)
    ref = jax.block_until_ready(ref)

    assert out.shape == (N, Cout, H, W), out.shape
    # Tolerance accounts for bf16 MXU inputs (f32 accumulation) vs the f32 reference.
    assert jnp.allclose(out, ref, rtol=2e-2, atol=2e-2), \
        float(jnp.max(jnp.abs(out - ref)))

    print("KERNEL_OK")
</pallas_src>

<mosaic_0001>
module attributes {stable_mosaic.version = 11 : i64} {
  func.func @_fused_bn_gconv_kernel(%arg0: i32, %arg1: memref<1x2x10x18x8xf32, #tpu.memory_space<vmem>>, %arg2: memref<72x8xbf16, #tpu.memory_space<vmem>>, %arg3: memref<1x8xf32, #tpu.memory_space<vmem>>, %arg4: memref<1x8xf32, #tpu.memory_space<vmem>>, %arg5: memref<1x8xf32, #tpu.memory_space<vmem>>, %arg6: memref<2x8x128xf32, #tpu.memory_space<vmem>>) attributes {dimension_semantics = [#tpu.dimension_semantics<parallel>], iteration_bounds = array<i64: 2>, scalar_prefetch = 0 : i64, scratch_operands = 0 : i64, tpu.core_type = #tpu.core_type<tc>, window_params = [{transform_indices = @transform_0, window_bounds = array<i64: 1, 2, 10, 18, 8>}, {pipeline_mode = #tpu.pipeline_mode<synchronous>, transform_indices = @transform_1, window_bounds = array<i64: 72, 8>}, {pipeline_mode = #tpu.pipeline_mode<synchronous>, transform_indices = @transform_2, window_bounds = array<i64: 1, 8>}, {pipeline_mode = #tpu.pipeline_mode<synchronous>, transform_indices = @transform_3, window_bounds = array<i64: 1, 8>}, {pipeline_mode = #tpu.pipeline_mode<synchronous>, transform_indices = @transform_4, window_bounds = array<i64: 1, 8>}, {transform_indices = @transform_5, window_bounds = array<i64: 2, 8, 128>}]} {
    %c0 = arith.constant 0 : index
    %c0_0 = arith.constant 0 : index
    %c0_1 = arith.constant 0 : index
    %c0_2 = arith.constant 0 : index
    %c0_3 = arith.constant 0 : index
    %0 = vector.load %arg1[%c0, %c0_0, %c0_1, %c0_2, %c0_3] : memref<1x2x10x18x8xf32, #tpu.memory_space<vmem>>, vector<1x2x10x18x8xf32>
    %1 = vector.shape_cast %0 : vector<1x2x10x18x8xf32> to vector<2x10x18x8xf32>
    %c0_4 = arith.constant 0 : index
    %c0_5 = arith.constant 0 : index
    %2 = vector.load %arg3[%c0_4, %c0_5] : memref<1x8xf32, #tpu.memory_space<vmem>>, vector<1x8xf32>
    %3 = vector.shape_cast %2 : vector<1x8xf32> to vector<1x1x1x8xf32>
    %4 = vector.broadcast %3 : vector<1x1x1x8xf32> to vector<2x10x18x8xf32>
    %5 = arith.mulf %1, %4 : vector<2x10x18x8xf32>
    %c0_6 = arith.constant 0 : index
    %c0_7 = arith.constant 0 : index
    %6 = vector.load %arg4[%c0_6, %c0_7] : memref<1x8xf32, #tpu.memory_space<vmem>>, vector<1x8xf32>
    %7 = vector.shape_cast %6 : vector<1x8xf32> to vector<1x1x1x8xf32>
    %8 = vector.broadcast %7 : vector<1x1x1x8xf32> to vector<2x10x18x8xf32>
    %9 = arith.addf %5, %8 : vector<2x10x18x8xf32>
    %cst = arith.constant 0.000000e+00 : f32
    %10 = vector.broadcast %cst : f32 to vector<2x10x18x8xf32>
    %11 = arith.maximumf %9, %10 : vector<2x10x18x8xf32>
    %c8_i32 = arith.constant 8 : i32
    %12 = arith.muli %arg0, %c8_i32 : i32
    %13 = tpu.iota {dimensions = array<i32: 1>} : vector<1x10x1x1xi32>
    %14 = vector.broadcast %12 : i32 to vector<1x10x1x1xi32>
    %15 = arith.addi %14, %13 : vector<1x10x1x1xi32>
    %16 = tpu.iota {dimensions = array<i32: 2>} : vector<1x1x18x1xi32>
    %c1_i32 = arith.constant 1 : i32
    %17 = vector.broadcast %c1_i32 : i32 to vector<1x10x1x1xi32>
    %18 = arith.cmpi sge, %15, %17 : vector<1x10x1x1xi32>
    %c17_i32 = arith.constant 17 : i32
    %19 = vector.broadcast %c17_i32 : i32 to vector<1x10x1x1xi32>
    %20 = arith.cmpi slt, %15, %19 : vector<1x10x1x1xi32>
    %21 = arith.andi %18, %20 : vector<1x10x1x1xi1>
    %c1_i32_8 = arith.constant 1 : i32
    %22 = vector.broadcast %c1_i32_8 : i32 to vector<1x1x18x1xi32>
    %23 = arith.cmpi sge, %16, %22 : vector<1x1x18x1xi32>
    %24 = vector.broadcast %21 : vector<1x10x1x1xi1> to vector<1x10x18x1xi1>
    %25 = vector.broadcast %23 : vector<1x1x18x1xi1> to vector<1x10x18x1xi1>
    %26 = arith.andi %24, %25 : vector<1x10x18x1xi1>
    %c17_i32_9 = arith.constant 17 : i32
    %27 = vector.broadcast %c17_i32_9 : i32 to vector<1x1x18x1xi32>
    %28 = arith.cmpi slt, %16, %27 : vector<1x1x18x1xi32>
    %29 = vector.broadcast %28 : vector<1x1x18x1xi1> to vector<1x10x18x1xi1>
    %30 = arith.andi %26, %29 : vector<1x10x18x1xi1>
    %cst_10 = arith.constant 0.000000e+00 : f32
    %31 = vector.shape_cast %30 : vector<1x10x18x1xi1> to vector<1x10x18x1xi1>
    %32 = vector.broadcast %31 : vector<1x10x18x1xi1> to vector<2x10x18x8xi1>
    %33 = vector.broadcast %cst_10 : f32 to vector<2x10x18x8xf32>
    %34 = arith.select %32, %11, %33 : vector<2x10x18x8xi1>, vector<2x10x18x8xf32>
    %35 = vector.extract_strided_slice %34 {offsets = [0, 0, 0, 0], sizes = [2, 8, 16, 8], strides = [1, 1, 1, 1]} : vector<2x10x18x8xf32> to vector<2x8x16x8xf32>
    %36 = vector.extract_strided_slice %34 {offsets = [0, 0, 1, 0], sizes = [2, 8, 16, 8], strides = [1, 1, 1, 1]} : vector<2x10x18x8xf32> to vector<2x8x16x8xf32>
    %37 = vector.extract_strided_slice %34 {offsets = [0, 0, 2, 0], sizes = [2, 8, 16, 8], strides = [1, 1, 1, 1]} : vector<2x10x18x8xf32> to vector<2x8x16x8xf32>
    %38 = vector.extract_strided_slice %34 {offsets = [0, 1, 0, 0], sizes = [2, 8, 16, 8], strides = [1, 1, 1, 1]} : vector<2x10x18x8xf32> to vector<2x8x16x8xf32>
    %39 = vector.extract_strided_slice %34 {offsets = [0, 1, 1, 0], sizes = [2, 8, 16, 8], strides = [1, 1, 1, 1]} : vector<2x10x18x8xf32> to vector<2x8x16x8xf32>
    %40 = vector.extract_strided_slice %34 {offsets = [0, 1, 2, 0], sizes = [2, 8, 16, 8], strides = [1, 1, 1, 1]} : vector<2x10x18x8xf32> to vector<2x8x16x8xf32>
    %41 = vector.extract_strided_slice %34 {offsets = [0, 2, 0, 0], sizes = [2, 8, 16, 8], strides = [1, 1, 1, 1]} : vector<2x10x18x8xf32> to vector<2x8x16x8xf32>
    %42 = vector.extract_strided_slice %34 {offsets = [0, 2, 1, 0], sizes = [2, 8, 16, 8], strides = [1, 1, 1, 1]} : vector<2x10x18x8xf32> to vector<2x8x16x8xf32>
    %43 = vector.extract_strided_slice %34 {offsets = [0, 2, 2, 0], sizes = [2, 8, 16, 8], strides = [1, 1, 1, 1]} : vector<2x10x18x8xf32> to vector<2x8x16x8xf32>
    %44 = tpu.concatenate %35, %36, %37, %38, %39, %40, %41, %42, %43 in 3 : vector<2x8x16x8xf32>, vector<2x8x16x8xf32>, vector<2x8x16x8xf32>, vector<2x8x16x8xf32>, vector<2x8x16x8xf32>, vector<2x8x16x8xf32>, vector<2x8x16x8xf32>, vector<2x8x16x8xf32>, vector<2x8x16x8xf32> -> vector<2x8x16x72xf32>
    %45 = vector.shape_cast %44 : vector<2x8x16x72xf32> to vector<256x72xf32>
    %46 = arith.truncf %45 : vector<256x72xf32> to vector<256x72xbf16>
    %c0_11 = arith.constant 0 : index
    %c0_12 = arith.constant 0 : index
    %47 = vector.load %arg2[%c0_11, %c0_12] : memref<72x8xbf16, #tpu.memory_space<vmem>>, vector<72x8xbf16>
    %cst_13 = arith.constant dense<0.000000e+00> : vector<256x8xf32>
    %48 = tpu.matmul %46, %47, %cst_13 {dimension_numbers = #tpu.dot_dimension_numbers<[1], [0], [0], [1], [0, 0, 1, 1], [], []>} : vector<256x72xbf16>, vector<72x8xbf16>, vector<256x8xf32> -> vector<256x8xf32>
    %c0_14 = arith.constant 0 : index
    %c0_15 = arith.constant 0 : index
    %49 = vector.load %arg5[%c0_14, %c0_15] : memref<1x8xf32, #tpu.memory_space<vmem>>, vector<1x8xf32>
    %50 = vector.broadcast %49 : vector<1x8xf32> to vector<256x8xf32>
    %51 = arith.addf %48, %50 : vector<256x8xf32>
    %52 = vector.shape_cast %51 : vector<256x8xf32> to vector<2x8x16x8xf32>
    %53 = vector.extract_strided_slice %52 {offsets = [0, 0, 0, 0], sizes = [2, 8, 1, 8], strides = [1, 1, 1, 1]} : vector<2x8x16x8xf32> to vector<2x8x1x8xf32>
    %54 = vector.shape_cast %53 : vector<2x8x1x8xf32> to vector<2x8x8xf32>
    %55 = vector.extract_strided_slice %52 {offsets = [0, 0, 1, 0], sizes = [2, 8, 1, 8], strides = [1, 1, 1, 1]} : vector<2x8x16x8xf32> to vector<2x8x1x8xf32>
    %56 = vector.shape_cast %55 : vector<2x8x1x8xf32> to vector<2x8x8xf32>
    %57 = vector.extract_strided_slice %52 {offsets = [0, 0, 2, 0], sizes = [2, 8, 1, 8], strides = [1, 1, 1, 1]} : vector<2x8x16x8xf32> to vector<2x8x1x8xf32>
    %58 = vector.shape_cast %57 : vector<2x8x1x8xf32> to vector<2x8x8xf32>
    %59 = vector.extract_strided_slice %52 {offsets = [0, 0, 3, 0], sizes = [2, 8, 1, 8], strides = [1, 1, 1, 1]} : vector<2x8x16x8xf32> to vector<2x8x1x8xf32>
    %60 = vector.shape_cast %59 : vector<2x8x1x8xf32> to vector<2x8x8xf32>
    %61 = vector.extract_strided_slice %52 {offsets = [0, 0, 4, 0], sizes = [2, 8, 1, 8], strides = [1, 1, 1, 1]} : vector<2x8x16x8xf32> to vector<2x8x1x8xf32>
    %62 = vector.shape_cast %61 : vector<2x8x1x8xf32> to vector<2x8x8xf32>
    %63 = vector.extract_strided_slice %52 {offsets = [0, 0, 5, 0], sizes = [2, 8, 1, 8], strides = [1, 1, 1, 1]} : vector<2x8x16x8xf32> to vector<2x8x1x8xf32>
    %64 = vector.shape_cast %63 : vector<2x8x1x8xf32> to vector<2x8x8xf32>
    %65 = vector.extract_strided_slice %52 {offsets = [0, 0, 6, 0], sizes = [2, 8, 1, 8], strides = [1, 1, 1, 1]} : vector<2x8x16x8xf32> to vector<2x8x1x8xf32>
    %66 = vector.shape_cast %65 : vector<2x8x1x8xf32> to vector<2x8x8xf32>
    %67 = vector.extract_strided_slice %52 {offsets = [0, 0, 7, 0], sizes = [2, 8, 1, 8], strides = [1, 1, 1, 1]} : vector<2x8x16x8xf32> to vector<2x8x1x8xf32>
    %68 = vector.shape_cast %67 : vector<2x8x1x8xf32> to vector<2x8x8xf32>
    %69 = vector.extract_strided_slice %52 {offsets = [0, 0, 8, 0], sizes = [2, 8, 1, 8], strides = [1, 1, 1, 1]} : vector<2x8x16x8xf32> to vector<2x8x1x8xf32>
    %70 = vector.shape_cast %69 : vector<2x8x1x8xf32> to vector<2x8x8xf32>
    %71 = vector.extract_strided_slice %52 {offsets = [0, 0, 9, 0], sizes = [2, 8, 1, 8], strides = [1, 1, 1, 1]} : vector<2x8x16x8xf32> to vector<2x8x1x8xf32>
    %72 = vector.shape_cast %71 : vector<2x8x1x8xf32> to vector<2x8x8xf32>
    %73 = vector.extract_strided_slice %52 {offsets = [0, 0, 10, 0], sizes = [2, 8, 1, 8], strides = [1, 1, 1, 1]} : vector<2x8x16x8xf32> to vector<2x8x1x8xf32>
    %74 = vector.shape_cast %73 : vector<2x8x1x8xf32> to vector<2x8x8xf32>
    %75 = vector.extract_strided_slice %52 {offsets = [0, 0, 11, 0], sizes = [2, 8, 1, 8], strides = [1, 1, 1, 1]} : vector<2x8x16x8xf32> to vector<2x8x1x8xf32>
    %76 = vector.shape_cast %75 : vector<2x8x1x8xf32> to vector<2x8x8xf32>
    %77 = vector.extract_strided_slice %52 {offsets = [0, 0, 12, 0], sizes = [2, 8, 1, 8], strides = [1, 1, 1, 1]} : vector<2x8x16x8xf32> to vector<2x8x1x8xf32>
    %78 = vector.shape_cast %77 : vector<2x8x1x8xf32> to vector<2x8x8xf32>
    %79 = vector.extract_strided_slice %52 {offsets = [0, 0, 13, 0], sizes = [2, 8, 1, 8], strides = [1, 1, 1, 1]} : vector<2x8x16x8xf32> to vector<2x8x1x8xf32>
    %80 = vector.shape_cast %79 : vector<2x8x1x8xf32> to vector<2x8x8xf32>
    %81 = vector.extract_strided_slice %52 {offsets = [0, 0, 14, 0], sizes = [2, 8, 1, 8], strides = [1, 1, 1, 1]} : vector<2x8x16x8xf32> to vector<2x8x1x8xf32>
    %82 = vector.shape_cast %81 : vector<2x8x1x8xf32> to vector<2x8x8xf32>
    %83 = vector.extract_strided_slice %52 {offsets = [0, 0, 15, 0], sizes = [2, 8, 1, 8], strides = [1, 1, 1, 1]} : vector<2x8x16x8xf32> to vector<2x8x1x8xf32>
    %84 = vector.shape_cast %83 : vector<2x8x1x8xf32> to vector<2x8x8xf32>
    %85 = tpu.concatenate %54, %56, %58, %60, %62, %64, %66, %68, %70, %72, %74, %76, %78, %80, %82, %84 in 2 : vector<2x8x8xf32>, vector<2x8x8xf32>, vector<2x8x8xf32>, vector<2x8x8xf32>, vector<2x8x8xf32>, vector<2x8x8xf32>, vector<2x8x8xf32>, vector<2x8x8xf32>, vector<2x8x8xf32>, vector<2x8x8xf32>, vector<2x8x8xf32>, vector<2x8x8xf32>, vector<2x8x8xf32>, vector<2x8x8xf32>, vector<2x8x8xf32>, vector<2x8x8xf32> -> vector<2x8x128xf32>
    %c0_16 = arith.constant 0 : index
    %c0_17 = arith.constant 0 : index
    %c0_18 = arith.constant 0 : index
    %86 = vector.load %arg6[%c0_16, %c0_17, %c0_18] : memref<2x8x128xf32, #tpu.memory_space<vmem>>, vector<2x8x128xf32>
    tpu.vector_store %arg6[%c0_16, %c0_17, %c0_18], %85 {strides = array<i32>} : memref<2x8x128xf32, #tpu.memory_space<vmem>>, vector<2x8x128xf32>,
    return
  }
  func.func @transform_0(%arg0: i32) -> (i32, i32, i32, i32, i32) {
    %c0_i32 = arith.constant 0 : i32
    %c0_i32_0 = arith.constant 0 : i32
    %c0_i32_1 = arith.constant 0 : i32
    %c0_i32_2 = arith.constant 0 : i32
    %c0_i32_3 = arith.constant 0 : i32
    return %arg0, %c0_i32, %c0_i32_0, %c0_i32_1, %c0_i32_2 : i32, i32, i32, i32, i32
  }
  func.func @transform_1(%arg0: i32) -> (i32, i32) {
    %c0_i32 = arith.constant 0 : i32
    %c0_i32_0 = arith.constant 0 : i32
    %c0_i32_1 = arith.constant 0 : i32
    return %c0_i32, %c0_i32_0 : i32, i32
  }
  func.func @transform_2(%arg0: i32) -> (i32, i32) {
    %c0_i32 = arith.constant 0 : i32
    %c0_i32_0 = arith.constant 0 : i32
    %c0_i32_1 = arith.constant 0 : i32
    return %c0_i32, %c0_i32_0 : i32, i32
  }
  func.func @transform_3(%arg0: i32) -> (i32, i32) {
    %c0_i32 = arith.constant 0 : i32
    %c0_i32_0 = arith.constant 0 : i32
    %c0_i32_1 = arith.constant 0 : i32
    return %c0_i32, %c0_i32_0 : i32, i32
  }
  func.func @transform_4(%arg0: i32) -> (i32, i32) {
    %c0_i32 = arith.constant 0 : i32
    %c0_i32_0 = arith.constant 0 : i32
    %c0_i32_1 = arith.constant 0 : i32
    return %c0_i32, %c0_i32_0 : i32, i32
  }
  func.func @transform_5(%arg0: i32) -> (i32, i32, i32) {
    %c0_i32 = arith.constant 0 : i32
    %c0_i32_0 = arith.constant 0 : i32
    %c0_i32_1 = arith.constant 0 : i32
    return %c0_i32, %arg0, %c0_i32_0 : i32, i32, i32
  }
}

</mosaic_0001>

<bundles_post_ra>
// kernel: tpu_custom_call.1
= control target key start
LH: loop header
LB: loop body
LE: loop exit
PB: predicated region body
PF: predicated region fallthrough
CT: control target
= control target key end

     0   :  { %10 = vsyncpa [#allocation3], 0  ;;  %s6865_s0 = inlined_call_operand.vmem [shape: f32[2,2,10,18,8], index: 0, kind: input, shape index: {}]   ;;  %s6866_s1 = inlined_call_operand.vmem [shape: bf16[72,8], index: 1, kind: input, shape index: {}]   ;;  %s6867_s2 = inlined_call_operand.vmem [shape: f32[1,8], index: 2, kind: input, shape index: {}]   ;;  %s6868_s3 = inlined_call_operand.vmem [shape: f32[1,8], index: 3, kind: input, shape index: {}]   ;;  %s6869_s4 = inlined_call_operand.vmem [shape: f32[1,8], index: 4, kind: input, shape index: {}]   ;;  %s6870_s5 = inlined_call_operand.hbm [shape: f32[2,16,128], index: 5, kind: output, shape index: {}]  }
   0x1   :  { %12 = vsyncpa [#allocation3 + $0x1], 0  ;;  %s3924_s18 = smov 0   ;;  %s3926_s19 = smov 0  }
   0x2   :  { %s3928_s20 = smov 0   ;;  %s3930_s21 = smov 0  }
   0x3 LB: > { %s3945_s22 = sadd.s32 4294967295, %s3874_s21   ;;  %s3000_s23 = sadd.s32 4294967294, %s3874_s21   ;;  %s3874_s21 = sphi %s3930_s21, %s7256_s21   ;;  %s3870_s20 = sphi %s3928_s20, %s7255_s20   ;;  %s3866_s19 = sphi %s3926_s19, %s7254_s19   ;;  %s3862_s18 = sphi %s3924_s18, %s7253_s18  }
   0x4   : > { %s3949_s24 = sadd.s32 1, %s3874_s21   ;;  %s135_s25 = sadd.s32 1, %s3870_s20 }
   0x5   : > { %s132_s26 = ssub.s32 %s3874_s21, %s3949_s24  ;;  %p145_p0 = scmp.ne.s32.totalorder %s3870_s20, %s3866_s19 }
   0x6   : > { %p133_p1 = scmp.eq.s32.totalorder %s132_s26, 0  ;;  %p146_p2 = scmp.eq.s32.totalorder %s3945_s22, 1 }
   0x7   : > { %p151_p3 = scmp.ne.s32.totalorder %s3866_s19, %s3862_s18  ;;  %p152_p4 = scmp.eq.s32.totalorder %s3000_s23, 1 }
   0x8   : > { %s3960_s27 = scalar_select %p133_p1, %s3870_s20, %s135_s25  }
   0x9   : > { %p3962_p5 = por %p146_p2, %p145_p0  ;;  %p3966_p6 = por %p152_p4, %p151_p3 }
   0xa   : > { %p3003_p7 = scmp.ge.s32.totalorder %s3874_s21, 1  ;;  %p190_p8 = scmp.lt.s32.totalorder %s3874_s21, 3 }
   0xc   : > { %p191_p9 = pnand %p3003_p7, %p190_p8 }
   0xe   : > { %194 = sbr.rel (%p191_p9) target bundleno = 843 (0x34b), region = 40 }
  0x13   : > { %p218_p10 = scmp.lt.s32.totalorder %s3945_s22, 1  ;;  %s3008_s30 = sshll.u32 %s3945_s22, 3  ;;  %v489_v0 = vlaneseq  ;;  %v3983_v4 = vld [vmem:[%s6867_s2] ss:$0 sm:$0xff]  ;;  %vm6872_vm3 = vcmask 1046528  }
  0x14   : > { %v3974_v1 = vstv %s3008_s30  ;;  %v3991_v6 = vld [vmem:[%s6868_s3] ss:$0 sm:$0xff]  ;;  %s3876_s15 = smov 8   ;;  %s3877_s16 = smov 16  }
  0x15   : > { %6975 = vst [vmem:[#allocation5_spill] sm:$0xff] %v3974_v1  ;;  %s219_s6 = scalar_select %p218_p10, %s3945_s22, 1  ;;  %v481_v2 = vadd.s32 2, %v3974_v1  ;;  %v3978_v3 = vshrl.u32 %v489_v0, 7  ;;  %v3994_v7 = vadd.s32 3, %v3974_v1  ;;  %vm493_vm4 = vcmp.ge.s32.totalorder %v3974_v1, 1 }
  0x16   : > { %vm503_vm5 = vcmp.lt.s32.totalorder %v3974_v1, 17  ;;  %v4008_v9 = vadd.s32 1, %v3974_v1  ;;  %v4011_v10 = vadd.s32 5, %v3974_v1  ;;  %v4018_v14 = vadd.s32 4, %v3974_v1  ;;  %s3878_s30 = smov 24   ;;  %s3881_s12 = smov 48  }
  0x17   : > { %6976 = vst [vmem:[#allocation6_spill] sm:$0xff] %v3978_v3  ;;  %s3110_s7 = smul.u32 480, %s219_s6  ;;  %v3986_v5 = vadd.s32 16, %v3978_v3  ;;  %vm495_vm0 = vcmp.ge.s32.totalorder %v481_v2, 1  ;;  %vm505_vm1 = vcmp.lt.s32.totalorder %v481_v2, 17  ;;  %vm6874_vm6 = vcmp.ge.s32.totalorder %v3978_v3, 1  ;;  %vm4074_vm14 = vmand %vm493_vm4, %vm503_vm5 }
  0x18   : > { %vm4001_vm2 = vmand %vm495_vm0, %vm505_vm1  ;;  %vm496_vm8 = vcmp.ge.s32.totalorder %v3994_v7, 1  ;;  %vm506_vm9 = vcmp.lt.s32.totalorder %v3994_v7, 17  ;;  %v4034_v25 = vadd.s32 7, %v3974_v1  ;;  %v4037_v26 = vadd.s32 6, %v3974_v1  ;;  %s3879_s6 = smov 32   ;;  %s3882_s26 = smov 56  }
  0x19   : > { %6977 = vst [vmem:[#allocation7_spill] sm:$0xff] %v3986_v5  ;;  %s3999_s14 = scalar_lea.vmem %s6865_s0, %s3110_s7  ;;  %vm6871_vm7 = vcmp.lt.s32.totalorder %v3986_v5, 17  ;;  %vm4046_vm10 = vmand %vm4001_vm2, %vm6874_vm6  ;;  %vm494_vm12 = vcmp.ge.s32.totalorder %v4008_v9, 1  ;;  %vm504_vm13 = vcmp.lt.s32.totalorder %v4008_v9, 17  ;;  %vm498_vm0 = vcmp.ge.s32.totalorder %v4011_v10, 1  ;;  %s3880_s7 = smov 40  }
  0x1a   : > { %v230_v11 = vld [vmem:[%s3999_s14 + $0x30] sm:$0xff]  ;;  %v231_v12 = vld [vmem:[%s3999_s14 + $0x38] sm:$0xff]  ;;  %v232_v13 = vld [vmem:[%s3999_s14 + $0x40] sm:$0x3]  ;;  %vm508_vm1 = vcmp.lt.s32.totalorder %v4011_v10, 17  ;;  %s3883_s10 = smov 64  }
  0x1b   : > { %v260_v15 = vld [vmem:[%s3999_s14 + $0x120] sm:$0xff]  ;;  %v262_v16 = vld [vmem:[%s3999_s14 + $0x130] sm:$0x3]  ;;  %v297_v17 = vmul.f32 %v3983_v4, %v230_v11  ;;  %v298_v18 = vmul.f32 %v3983_v4, %v231_v12  ;;  %v299_v19 = vmul.f32 %v3983_v4, %v232_v13  ;;  %v225_v23 = vld [vmem:[%s3999_s14 + $0x8] sm:$0xff]  ;;  %s3889_s13 = smov 104   ;;  %s3890_s17 = smov 120  }
  0x1c   : > { %v327_v20 = vmul.f32 %v3983_v4, %v260_v15  ;;  %v329_v21 = vmul.f32 %v3983_v4, %v262_v16  ;;  %v224_v22 = vld [vmem:[%s3999_s14] sm:$0xff]  ;;  %v226_v24 = vld [vmem:[%s3999_s14 + $0x10] sm:$0x3]  ;;  %vm4059_vm11 = vmand %vm4001_vm2, %vm6871_vm7  ;;  %v292_v37 = vmul.f32 %v3983_v4, %v225_v23  ;;  %s215_s23 = sand.u32 1, %s3866_s19   ;;  %s3032_s9 = sshll.u32 %s3945_s22, 7 }
  0x1d   : > { %v364_v27 = vadd.f32 %v3991_v6, %v297_v17  ;;  %v365_v28 = vadd.f32 %v3991_v6, %v298_v18  ;;  %v366_v29 = vadd.f32 %v3991_v6, %v299_v19  ;;  %v254_v31 = vld [vmem:[%s3999_s14 + $0xf0] sm:$0xff]  ;;  %v256_v32 = vld [vmem:[%s3999_s14 + $0x100] sm:$0x3]  ;;  %v291_v33 = vmul.f32 %v3983_v4, %v224_v22  ;;  %v233_v56 = vld [vmem:[%s3999_s14 + $0x48] sm:$0xff]  ;;  %s3004_s25 = sshll.u32 %s215_s23, 4  ;;  %s6819_s11 = scalar_lea.hbm %s6870_s5, %s3032_s9 }
  0x1e   : > { %v394_v34 = vadd.f32 %v3991_v6, %v327_v20  ;;  %v396_v35 = vadd.f32 %v3991_v6, %v329_v21  ;;  %v293_v38 = vmul.f32 %v3983_v4, %v226_v24  ;;  %v321_v42 = vmul.f32 %v3983_v4, %v254_v31  ;;  %vm4110_vm15 = vmand %vm4074_vm14, %vm6874_vm6  ;;  %v234_v16 = vld [vmem:[%s3999_s14 + $0x50] sm:$0xff]  ;;  %v235_v17 = vld [vmem:[%s3999_s14 + $0x58] sm:$0x3] }
  0x1f   : > { %v424_v39 = vmax.f32 %v364_v27, 0.0  ;;  %v425_v40 = vmax.f32 %v365_v28, 0.0  ;;  %v426_v41 = vmax.f32 %v366_v29, 0.0  ;;  %v323_v45 = vmul.f32 %v3983_v4, %v256_v32  ;;  %vm4122_vm4 = vmand %vm4074_vm14, %vm6871_vm7  ;;  %v227_v23 = vld [vmem:[%s3999_s14 + $0x18] sm:$0xff]  ;;  %v228_v24 = vld [vmem:[%s3999_s14 + $0x20] sm:$0xff] }
  0x20   : > { %v454_v43 = vmax.f32 %v394_v34, 0.0  ;;  %v456_v44 = vmax.f32 %v396_v35, 0.0  ;;  %v358_v46 = vadd.f32 %v3991_v6, %v291_v33  ;;  %v359_v51 = vadd.f32 %v3991_v6, %v292_v37  ;;  %vm4156_vm5 = vmand %vm496_vm8, %vm506_vm9  ;;  %v229_v32 = vld [vmem:[%s3999_s14 + $0x28] sm:$0x3] }
  0x21   : > { %v4080_v48 = vsel %vm4046_vm10, %v424_v39, 0.0  ;;  %v4084_v49 = vsel %vm4001_vm2, %v425_v40, 0.0  ;;  %v4088_v50 = vsel %vm4059_vm11, %v426_v41, 0.0  ;;  %v360_v59 = vadd.f32 %v3991_v6, %v293_v38  ;;  %v239_v41 = vld [vmem:[%s3999_s14 + $0x78] sm:$0xff] }
  0x22   : > { %6986 = vst [vmem:[#allocation8_spill] sm:$0xff] %v4080_v48  ;;  %6987 = vst [vmem:[#allocation9_spill] sm:$0xff] %v4084_v49  ;;  %v4093_v52 = vsel %vm4046_vm10, %v454_v43, 0.0  ;;  %v4097_v53 = vsel %vm4059_vm11, %v456_v44, 0.0  ;;  %v800_v54 = vrot.slane %v4080_v48, 1  ;;  %v801_v55 = vrot.slane %v4084_v49, 1 }
  0x23   : > { %6988 = vst [vmem:[#allocation10_spill] sm:$0xff] %v4093_v52  ;;  %6989 = vst [vmem:[#allocation11_spill] sm:$0xff] %v4097_v53  ;;  %v803_v57 = vrot.slane %v4088_v50, 1  ;;  %v388_v60 = vadd.f32 %v3991_v6, %v321_v42  ;;  %v390_v63 = vadd.f32 %v3991_v6, %v323_v45  ;;  %v418_v0 = vmax.f32 %v358_v46, 0.0  ;;  %v240_v46 = vld [vmem:[%s3999_s14 + $0x80] sm:$0xff] }
  0x24   : > { %v802_v62 = vsel %vm6872_vm3, %v800_v54, %v801_v55  ;;  %v419_v2 = vmax.f32 %v359_v51, 0.0  ;;  %v420_v13 = vmax.f32 %v360_v59, 0.0  ;;  %v300_v18 = vmul.f32 %v3983_v4, %v233_v56  ;;  %vm4180_vm10 = vmand %vm494_vm12, %vm504_vm13 }
  0x25   : > { %v804_v12 = vsel %vm6872_vm3, %v801_v55, %v803_v57  ;;  %v448_v15 = vmax.f32 %v388_v60, 0.0  ;;  %v450_v20 = vmax.f32 %v390_v63, 0.0  ;;  %v4134_v21 = vsel %vm4110_vm15, %v418_v0, 0.0  ;;  %vm4191_vm11 = vmand %vm4156_vm5, %vm6874_vm6  ;;  %v241_v63 = vld [vmem:[%s3999_s14 + $0x88] sm:$0x3] }
  0x26   : > { %v4130_v19 = vpack.i.bf16 %v804_v12, %v802_v62  ;;  %6995 = vst [vmem:[#allocation13_spill] sm:$0xff] %v4134_v21  ;;  %v4138_v22 = vsel %vm4074_vm14, %v419_v2, 0.0  ;;  %v4144_v27 = vsel %vm4122_vm4, %v420_v13, 0.0  ;;  %v790_v29 = vrot.slane %v4134_v21, 1  ;;  %vm4203_vm12 = vmand %vm4156_vm5, %vm6871_vm7 }
  0x27   : > { %6996 = vst [vmem:[#allocation14_spill] sm:$0xff] %v4138_v22  ;;  %v4148_v28 = vsel %vm4110_vm15, %v448_v15, 0.0  ;;  %v791_v30 = vrot.slane %v4138_v22, 1  ;;  %v4165_v33 = vsel %vm4122_vm4, %v450_v20, 0.0  ;;  %v793_v34 = vrot.slane %v4144_v27, 1  ;;  %vm4214_vm13 = vmand %vm4180_vm10, %vm6874_vm6 }
  0x28   : > { %6994 = vst [vmem:[#allocation12_spill] sm:$0xff] %v4130_v19  ;;  %6997 = vst [vmem:[#allocation15_spill] sm:$0xff] %v4148_v28  ;;  %3178 = vrot.lane.b32.xlu1 %v4130_v19, %s3876_s15  ;;  %v301_v7 = vmul.f32 %v3983_v4, %v234_v16  ;;  %vm507_vm9 = vcmp.lt.s32.totalorder %v4018_v14, 17  ;;  %v302_v37 = vmul.f32 %v3983_v4, %v235_v17  ;;  %vm7020_vm4 = vcmp.ge.s32.totalorder %v4018_v14, 1 }
  0x29   : > { %7000 = vst [vmem:[#allocation16_spill] sm:$0xff] %v4165_v33  ;;  %v792_v36 = vsel %vm6872_vm3, %v790_v29, %v791_v30  ;;  %v367_v38 = vadd.f32 %v3991_v6, %v300_v18  ;;  %v294_v39 = vmul.f32 %v3983_v4, %v227_v23  ;;  %v794_v42 = vsel %vm6872_vm3, %v791_v30, %v793_v34  ;;  %vm4231_vm8 = vmand %vm4180_vm10, %vm6871_vm7  ;;  %v236_v34 = vld [vmem:[%s3999_s14 + $0x60] sm:$0xff] }
  0x2a   : > { %v368_v43 = vadd.f32 %v3991_v6, %v301_v7  ;;  %v295_v9 = vmul.f32 %v3983_v4, %v228_v24  ;;  %v296_v45 = vmul.f32 %v3983_v4, %v229_v32  ;;  %v3167_v51 = vpack.i.bf16 %v794_v42, %v792_v36  ;;  %vm4245_vm15 = vmand %vm498_vm0, %vm508_vm1 }
  0x2b   : > { %v369_v54 = vadd.f32 %v3991_v6, %v302_v37  ;;  %v427_v55 = vmax.f32 %v367_v38, 0.0  ;;  %v361_v57 = vadd.f32 %v3991_v6, %v294_v39  ;;  %v306_v0 = vmul.f32 %v3983_v4, %v239_v41  ;;  %vm4278_vm0 = vmand %vm4245_vm15, %vm6874_vm6 }
  0x2c   : > { %v428_v59 = vmax.f32 %v368_v43, 0.0  ;;  %v362_v60 = vadd.f32 %v3991_v6, %v295_v9  ;;  %v363_v61 = vadd.f32 %v3991_v6, %v296_v45  ;;  %3168 = vrot.lane.b32.xlu0 %v3167_v51, %s3876_s15  ;;  %v307_v15 = vmul.f32 %v3983_v4, %v240_v46  ;;  %v237_v9 = vld [vmem:[%s3999_s14 + $0x68] sm:$0xff]  ;;  %vm4290_vm1 = vmand %vm4245_vm15, %vm6871_vm7 }
  0x2d   : > { %v429_v2 = vmax.f32 %v369_v54, 0.0  ;;  %v4225_v11 = vsel %vm4191_vm11, %v427_v55, 0.0  ;;  %v421_v12 = vmax.f32 %v361_v57, 0.0  ;;  %v7013_v23 = vmov 0  ;;  %v238_v55 = vld [vmem:[%s3999_s14 + $0x70] sm:$0x3]  ;;  %vm4305_vm7 = vmand %vm7020_vm4, %vm507_vm9 }
  0x2e   : > { %7009 = vst [vmem:[#allocation17_spill] sm:$0xff] %v4225_v11  ;;  %v4238_v16 = vsel %vm4156_vm5, %v428_v59, 0.0  ;;  %v805_v17 = vrot.slane %v4225_v11, 1  ;;  %v422_v18 = vmax.f32 %v362_v60, 0.0  ;;  %v423_v20 = vmax.f32 %v363_v61, 0.0  ;;  %v245_v59 = vld [vmem:[%s3999_s14 + $0xa8] sm:$0xff]  ;;  %vm4339_vm9 = vmand %vm4305_vm7, %vm6874_vm6 }
  0x2f   : > { %7012 = vst [vmem:[#allocation18_spill] sm:$0xff] %v4238_v16  ;;  %v7014_v23 = vsel %vm4245_vm15, 4294967295, %v7013_v23  ;;  %v4251_v24 = vsel %vm4203_vm12, %v429_v2, 0.0  ;;  %v806_v29 = vrot.slane %v4238_v16, 1  ;;  %v4256_v30 = vsel %vm4214_vm13, %v421_v12, 0.0 }
  0x30   : > { %v308_v32 = vmul.f32 %v3983_v4, %v241_v63  ;;  %v808_v10 = vrot.slane %v4251_v24, 1  ;;  %v4263_v7 = vsel %vm4180_vm10, %v422_v18, 0.0  ;;  %v4267_v36 = vsel %vm4231_vm8, %v423_v20, 0.0  ;;  %v247_v12 = vld [vmem:[%s3999_s14 + $0xb8] sm:$0x3] }
  0x31   : > { %v795_v37 = vrot.slane %v4256_v30, 1  ;;  %v807_v38 = vsel %vm6872_vm3, %v805_v17, %v806_v29  ;;  %v796_v39 = vrot.slane %v4263_v7, 1  ;;  %v798_v41 = vrot.slane %v4267_v36, 1 }
  0x32   : > { %v373_v42 = vadd.f32 %v3991_v6, %v306_v0  ;;  %v809_v45 = vsel %vm6872_vm3, %v806_v29, %v808_v10  ;;  %v374_v46 = vadd.f32 %v3991_v6, %v307_v15  ;;  %v375_v51 = vadd.f32 %v3991_v6, %v308_v32 }
  0x33   : > { %v7017_v54 = vmov 0  ;;  %v303_v57 = vmul.f32 %v3983_v4, %v236_v34  ;;  %v4297_v60 = vpack.i.bf16 %v809_v45, %v807_v38  ;;  %v797_v61 = vsel %vm6872_vm3, %v795_v37, %v796_v39  ;;  %v246_v34 = vld [vmem:[%s3999_s14 + $0xb0] sm:$0xff] }
  0x34   : > { %v7018_v54 = vsel %vm4290_vm1, 4294967295, %v7017_v54  ;;  %v799_v63 = vsel %vm6872_vm3, %v796_v39, %v798_v41  ;;  %v433_v0 = vmax.f32 %v373_v42, 0.0  ;;  %v7021_v2 = vmov 0 }
  0x35   : > { %7019 = vst [vmem:[#allocation19_spill] sm:$0xff] %v4297_v60  ;;  %v7022_v2 = vsel %vm4305_vm7, 4294967295, %v7021_v2  ;;  %v4310_v15 = vpack.i.bf16 %v799_v63, %v797_v61  ;;  %v434_v17 = vmax.f32 %v374_v46, 0.0  ;;  %v435_v18 = vmax.f32 %v375_v51, 0.0  ;;  %3183 = vrot.lane.b32.xlu1 %v4297_v60, %s3876_s15 }
  0x36   : > { %v304_v20 = vmul.f32 %v3983_v4, %v237_v9  ;;  %v4317_v29 = vsel %vm4278_vm0, %v433_v0, 0.0  ;;  %v305_v14 = vmul.f32 %v3983_v4, %v238_v55  ;;  %v370_v32 = vadd.f32 %v3991_v6, %v303_v57 }
  0x37   : > { %7023 = vst [vmem:[#allocation20_spill] sm:$0xff] %v4310_v15  ;;  %7024 = vst [vmem:[#allocation21_spill] sm:$0xff] %v4317_v29  ;;  %v312_v10 = vmul.f32 %v3983_v4, %v245_v59  ;;  %3173 = vrot.lane.b32.xlu0 %v4310_v15, %s3876_s15  ;;  %v4327_v37 = vsel %vm4245_vm15, %v434_v17, 0.0  ;;  %v4331_v38 = vsel %vm4290_vm1, %v435_v18, 0.0  ;;  %v815_v39 = vrot.slane %v4317_v29, 1  ;;  %v257_v15 = vld [vmem:[%s3999_s14 + $0x108] sm:$0xff] }
  0x38   : > { %7025 = vst [vmem:[#allocation22_spill] sm:$0xff] %v4327_v37  ;;  %v371_v41 = vadd.f32 %v3991_v6, %v304_v20  ;;  %v816_v9 = vrot.slane %v4327_v37, 1  ;;  %v818_v45 = vrot.slane %v4331_v38, 1  ;;  %v372_v46 = vadd.f32 %v3991_v6, %v305_v14  ;;  %v242_v14 = vld [vmem:[%s3999_s14 + $0x90] sm:$0xff] }
  0x39   : > { %v430_v51 = vmax.f32 %v370_v32, 0.0  ;;  %vm7028_vm4 = vcmp.lt.s32.totalorder %v4034_v25, 17  ;;  %vm7029_vm3 = vcmp.ge.s32.totalorder %v4034_v25, 1  ;;  %v7030_v55 = vmov 0  ;;  %v243_v32 = vld [vmem:[%s3999_s14 + $0x98] sm:$0xff] }
  0x3a   : > { %vm4350_vm1 = vmand %vm7029_vm3, %vm7028_vm4  ;;  %v431_v57 = vmax.f32 %v371_v41, 0.0  ;;  %vm7032_vm6 = vcmp.lt.s32.totalorder %v3986_v5, 17  ;;  %v7033_v59 = vmov 0  ;;  %v313_v61 = vmul.f32 %v3983_v4, %v246_v34 }
  0x3b   : > { %v7031_v55 = vsel %vm4350_vm1, 4294967295, %v7030_v55  ;;  %vm4358_vm15 = vmand %vm4305_vm7, %vm7032_vm6  ;;  %v314_v63 = vmul.f32 %v3983_v4, %v247_v12  ;;  %v379_v25 = vadd.f32 %v3991_v6, %v312_v10  ;;  %vm7035_vm3 = vcmask 1046528  }
  0x3c   : > { %v7034_v59 = vsel %vm4358_vm15, 4294967295, %v7033_v59  ;;  %v817_v0 = vsel %vm7035_vm3, %v815_v39, %v816_v9  ;;  %vm7036_vm4 = vmmov %vm7035_vm3  ;;  %v432_v18 = vmax.f32 %v372_v46, 0.0  ;;  %v4369_v20 = vsel %vm4339_vm9, %v430_v51, 0.0 }
  0x3d   : > { %v819_v17 = vsel %vm7036_vm4, %v816_v9, %v818_v45  ;;  %7037 = vst [vmem:[#allocation23_spill] sm:$0xff] %v4369_v20  ;;  %v4377_v34 = vsel %vm4305_vm7, %v431_v57, 0.0  ;;  %v810_v12 = vrot.slane %v4369_v20, 1  ;;  %v380_v10 = vadd.f32 %v3991_v6, %v313_v61  ;;  %v244_v9 = vld [vmem:[%s3999_s14 + $0xa0] sm:$0x3] }
  0x3e   : > { %v4373_v41 = vpack.i.bf16 %v819_v17, %v817_v0  ;;  %7039 = vst [vmem:[#allocation25_spill] sm:$0xff] %v4377_v34  ;;  %vm7040_vm6 = vcmp.ge.s32.totalorder %v3978_v3, 1  ;;  %v7041_v39 = vmov 0  ;;  %v4392_v45 = vsel %vm4358_vm15, %v432_v18, 0.0 }
  0x3f   : > { %vm4385_vm3 = vmand %vm4350_vm1, %vm7040_vm6  ;;  %v811_v46 = vrot.slane %v4377_v34, 1  ;;  %v381_v51 = vadd.f32 %v3991_v6, %v314_v63  ;;  %v439_v57 = vmax.f32 %v379_v25, 0.0  ;;  %v813_v61 = vrot.slane %v4392_v45, 1 }
  0x40   : > { %7038 = vst [vmem:[#allocation24_spill] sm:$0xff] %v4373_v41  ;;  %v7042_v39 = vsel %vm4385_vm3, 4294967295, %v7041_v39  ;;  %3193 = vrot.lane.b32.xlu1 %v4373_v41, %s3876_s15  ;;  %v440_v0 = vmax.f32 %v380_v10, 0.0  ;;  %vm7043_vm4 = vcmp.lt.s32.totalorder %v3986_v5, 17  ;;  %v7044_v17 = vmov 0 }
  0x41   : > { %vm4403_vm6 = vmand %vm4350_vm1, %vm7043_vm4  ;;  %v309_v18 = vmul.f32 %v3983_v4, %v242_v14  ;;  %v310_v63 = vmul.f32 %v3983_v4, %v243_v32  ;;  %vm7046_vm15 = vcmask 1046528   ;;  %v441_v58 = vmax.f32 %v381_v51, 0.0 }
  0x42   : > { %v7045_v17 = vsel %vm4403_vm6, 4294967295, %v7044_v17  ;;  %v812_v25 = vsel %vm7046_vm15, %v810_v12, %v811_v46  ;;  %v4412_v10 = vsel %vm4385_vm3, %v439_v57, 0.0  ;;  %v311_v35 = vmul.f32 %v3983_v4, %v244_v9  ;;  %vm7048_vm7 = vmmov %vm7046_vm15 }
  0x43   : > { %7047 = vst [vmem:[#allocation26_spill] sm:$0xff] %v4412_v10  ;;  %v814_v41 = vsel %vm7048_vm7, %v811_v46, %v813_v61  ;;  %v4418_v60 = vsel %vm4350_vm1, %v440_v0, 0.0  ;;  %v825_v14 = vrot.slane %v4412_v10, 1  ;;  %v376_v32 = vadd.f32 %v3991_v6, %v309_v18  ;;  %v258_v46 = vld [vmem:[%s3999_s14 + $0x110] sm:$0xff]  ;;  %v259_v61 = vld [vmem:[%s3999_s14 + $0x118] sm:$0x3] }
  0x44   : > { %7049 = vst [vmem:[#allocation27_spill] sm:$0xff] %v4418_v60  ;;  %v4423_v12 = vpack.i.bf16 %v814_v41, %v812_v25  ;;  %v4427_v51 = vsel %vm4403_vm6, %v441_v58, 0.0  ;;  %v826_v9 = vrot.slane %v4418_v60, 1  ;;  %v377_v57 = vadd.f32 %v3991_v6, %v310_v63  ;;  %v255_v18 = vld [vmem:[%s3999_s14 + $0xf8] sm:$0xff]  ;;  %vm7052_vm6 = vmmov %vm7046_vm15 }
  0x45   : > { %7051 = vst [vmem:[#allocation29_spill] sm:$0xff] %v4427_v51  ;;  %v828_v0 = vrot.slane %v4427_v51, 1  ;;  %v378_v19 = vadd.f32 %v3991_v6, %v311_v35  ;;  %v436_v1 = vmax.f32 %v376_v32, 0.0  ;;  %vm499_vm7 = vcmp.ge.s32.totalorder %v4037_v26, 1 }
  0x46   : > { %7050 = vst [vmem:[#allocation28_spill] sm:$0xff] %v4423_v12  ;;  %3188 = vrot.lane.b32.xlu0 %v4423_v12, %s3876_s15  ;;  %v827_v58 = vsel %vm7046_vm15, %v825_v14, %v826_v9  ;;  %v437_v41 = vmax.f32 %v377_v57, 0.0  ;;  %vm509_vm4 = vcmp.lt.s32.totalorder %v4037_v26, 17  ;;  %v324_v63 = vmul.f32 %v3983_v4, %v257_v15  ;;  %v263_v12 = vld [vmem:[%s3999_s14 + $0x138] sm:$0xff] }
  0x47   : > { %v829_v25 = vsel %vm7052_vm6, %v826_v9, %v828_v0  ;;  %v438_v60 = vmax.f32 %v378_v19, 0.0  ;;  %vm4443_vm1 = vmand %vm499_vm7, %vm509_vm4  ;;  %v325_v35 = vmul.f32 %v3983_v4, %v258_v46  ;;  %v326_v32 = vmul.f32 %v3983_v4, %v259_v61 }
  0x48   : > { %v4449_v10 = vpack.i.bf16 %v829_v25, %v827_v58  ;;  %vm7056_vm15 = vcmp.ge.s32.totalorder %v3978_v3, 1  ;;  %v4461_v19 = vsel %vm4443_vm1, %v437_v41, 0.0  ;;  %v391_v15 = vadd.f32 %v3991_v6, %v324_v63 }
  0x49   : > { %vm4455_vm3 = vmand %vm4443_vm1, %vm7056_vm15  ;;  %7059 = vst [vmem:[#allocation31_spill] sm:$0xff] %v4461_v19  ;;  %v322_v14 = vmul.f32 %v3983_v4, %v255_v18  ;;  %vm7060_vm6 = vcmp.lt.s32.totalorder %v3986_v5, 17  ;;  %v821_v46 = vrot.slane %v4461_v19, 1  ;;  %v392_v61 = vadd.f32 %v3991_v6, %v325_v35  ;;  %v265_v19 = vld [vmem:[%s3999_s14 + $0x148] sm:$0x3] }
  0x4a   : > { %7055 = vst [vmem:[#allocation30_spill] sm:$0xff] %v4449_v10  ;;  %vm4469_vm7 = vmand %vm4443_vm1, %vm7060_vm6  ;;  %v4475_v57 = vsel %vm4455_vm3, %v436_v1, 0.0  ;;  %v393_v0 = vadd.f32 %v3991_v6, %v326_v32  ;;  %3203 = vrot.lane.b32.xlu1 %v4449_v10, %s3876_s15  ;;  %v451_v41 = vmax.f32 %v391_v15, 0.0  ;;  %v830_v32 = vrot.slane %v4148_v28, 1  ;;  %v264_v15 = vld [vmem:[%s3999_s14 + $0x140] sm:$0xff] }
  0x4b   : > { %7063 = vst [vmem:[#allocation32_spill] sm:$0xff] %v4475_v57  ;;  %v4484_v18 = vsel %vm4469_vm7, %v438_v60, 0.0  ;;  %v820_v58 = vrot.slane %v4475_v57, 1  ;;  %v389_v1 = vadd.f32 %v3991_v6, %v322_v14  ;;  %v452_v25 = vmax.f32 %v392_v61, 0.0 }
  0x4c   : > { %v823_v63 = vrot.slane %v4484_v18, 1  ;;  %v453_v35 = vmax.f32 %v393_v0, 0.0  ;;  %vm7064_vm4 = vcmask 1046528   ;;  %v4494_v10 = vsel %vm4214_vm13, %v451_v41, 0.0 }
  0x4d   : > { %v822_v5 = vsel %vm7064_vm4, %v820_v58, %v821_v46  ;;  %v449_v60 = vmax.f32 %v389_v1, 0.0  ;;  %v833_v3 = vrot.slane %v4165_v33, 1  ;;  %vm7065_vm15 = vmmov %vm7064_vm4  ;;  %v4502_v61 = vsel %vm4180_vm10, %v452_v25, 0.0  ;;  %v261_v58 = vld [vmem:[%s3999_s14 + $0x128] sm:$0xff] }
  0x4e   : > { %v824_v14 = vsel %vm7065_vm15, %v821_v46, %v823_v63  ;;  %v4506_v0 = vsel %vm4231_vm8, %v453_v35, 0.0  ;;  %v835_v62 = vrot.slane %v4494_v10, 1  ;;  %v836_v1 = vrot.slane %v4502_v61, 1  ;;  %vm7069_vm8 = vmmov %vm7064_vm4 }
  0x4f   : > { %7066 = vst [vmem:[#allocation33_spill] sm:$0xff] %v4506_v0  ;;  %v4510_v41 = vpack.i.bf16 %v824_v14, %v822_v5  ;;  %v838_v33 = vrot.slane %v4506_v0, 1  ;;  %v4516_v40 = vsel %vm4074_vm14, %v449_v60, 0.0  ;;  %v330_v46 = vmul.f32 %v3983_v4, %v263_v12  ;;  %vm7070_vm10 = vmmov %vm7064_vm4  ;;  %v269_v14 = vld [vmem:[%s3999_s14 + $0x168] sm:$0xff] }
  0x50   : > { %7068 = vst [vmem:[#allocation35_spill] sm:$0xff] %v4516_v40  ;;  %v831_v13 = vrot.slane %v4516_v40, 1  ;;  %v331_v63 = vmul.f32 %v3983_v4, %v264_v15  ;;  %v332_v25 = vmul.f32 %v3983_v4, %v265_v19  ;;  %v837_v5 = vsel %vm7069_vm8, %v835_v62, %v836_v1  ;;  %v270_v40 = vld [vmem:[%s3999_s14 + $0x170] sm:$0xff]  ;;  %vm7072_vm14 = vmmov %vm7064_vm4 }
  0x51   : > { %7067 = vst [vmem:[#allocation34_spill] sm:$0xff] %v4510_v41  ;;  %3198 = vrot.lane.b32.xlu0 %v4510_v41, %s3876_s15  ;;  %v839_v35 = vsel %vm7070_vm10, %v836_v1, %v838_v33  ;;  %v328_v47 = vmul.f32 %v3983_v4, %v261_v58  ;;  %v840_v60 = vrot.slane %v4093_v52, 1  ;;  %vm7073_vm13 = vmmov %vm7064_vm4  ;;  %v397_v15 = vadd.f32 %v3991_v6, %v330_v46  ;;  %v271_v41 = vld [vmem:[%s3999_s14 + $0x178] sm:$0x3]  ;;  %v266_v1 = vld [vmem:[%s3999_s14 + $0x150] sm:$0xff] }
  0x52   : > { %v4530_v28 = vpack.i.bf16 %v839_v35, %v837_v5  ;;  %v832_v12 = vsel %vm7072_vm14, %v830_v32, %v831_v13  ;;  %v834_v19 = vsel %vm7073_vm13, %v831_v13, %v833_v3  ;;  %v398_v62 = vadd.f32 %v3991_v6, %v331_v63 }
  0x53   : > { %v3207_v0 = vpack.i.bf16 %v834_v19, %v832_v12  ;;  %v399_v33 = vadd.f32 %v3991_v6, %v332_v25  ;;  %v395_v58 = vadd.f32 %v3991_v6, %v328_v47  ;;  %v457_v5 = vmax.f32 %v397_v15, 0.0  ;;  %v267_v15 = vld [vmem:[%s3999_s14 + $0x158] sm:$0xff] }
  0x54   : > { %7071 = vst [vmem:[#allocation36_spill] sm:$0xff] %v4530_v28  ;;  %3213 = vrot.lane.b32.xlu1 %v4530_v28, %s3876_s15  ;;  %v843_v32 = vrot.slane %v4097_v53, 1  ;;  %v336_v3 = vmul.f32 %v3983_v4, %v269_v14  ;;  %v337_v13 = vmul.f32 %v3983_v4, %v270_v40  ;;  %v458_v46 = vmax.f32 %v398_v62, 0.0  ;;  %v268_v28 = vld [vmem:[%s3999_s14 + $0x160] sm:$0x3] }
  0x55   : > { %3208 = vrot.lane.b32.xlu0 %v3207_v0, %s3876_s15  ;;  %v459_v63 = vmax.f32 %v399_v33, 0.0  ;;  %v455_v25 = vmax.f32 %v395_v58, 0.0  ;;  %v338_v35 = vmul.f32 %v3983_v4, %v271_v41  ;;  %v4549_v47 = vsel %vm4191_vm11, %v457_v5, 0.0 }
  0x56   : > { %7074 = vst [vmem:[#allocation37_spill] sm:$0xff] %v4549_v47  ;;  %v403_v12 = vadd.f32 %v3991_v6, %v336_v3  ;;  %v404_v19 = vadd.f32 %v3991_v6, %v337_v13  ;;  %v333_v14 = vmul.f32 %v3983_v4, %v266_v1  ;;  %v4558_v0 = vsel %vm4156_vm5, %v458_v46, 0.0  ;;  %vm7077_vm5 = vmmov %vm7064_vm4 }
  0x57   : > { %7075 = vst [vmem:[#allocation38_spill] sm:$0xff] %v4558_v0  ;;  %v4562_v41 = vsel %vm4203_vm12, %v459_v63, 0.0  ;;  %v845_v44 = vrot.slane %v4549_v47, 1  ;;  %v4567_v40 = vsel %vm4001_vm2, %v455_v25, 0.0  ;;  %v846_v62 = vrot.slane %v4558_v0, 1  ;;  %vm7078_vm2 = vmmov %vm7064_vm4  ;;  %v275_v25 = vld [vmem:[%s3999_s14 + $0x198] sm:$0xff] }
  0x58   : > { %7076 = vst [vmem:[#allocation39_spill] sm:$0xff] %v4567_v40  ;;  %v848_v33 = vrot.slane %v4562_v41, 1  ;;  %v841_v31 = vrot.slane %v4567_v40, 1  ;;  %v405_v58 = vadd.f32 %v3991_v6, %v338_v35  ;;  %v463_v1 = vmax.f32 %v403_v12, 0.0  ;;  %vm7079_vm11 = vmmov %vm7078_vm2 }
  0x59   : > { %v464_v56 = vmax.f32 %v404_v19, 0.0  ;;  %v334_v5 = vmul.f32 %v3983_v4, %v267_v15  ;;  %v335_v3 = vmul.f32 %v3983_v4, %v268_v28  ;;  %v847_v8 = vsel %vm7077_vm5, %v845_v44, %v846_v62  ;;  %vm7080_vm12 = vmmov %vm7078_vm2  ;;  %v276_v19 = vld [vmem:[%s3999_s14 + $0x1a0] sm:$0xff]  ;;  %v277_v44 = vld [vmem:[%s3999_s14 + $0x1a8] sm:$0x3] }
  0x5a   : > { %v849_v13 = vsel %vm7078_vm2, %v846_v62, %v848_v33  ;;  %v842_v46 = vsel %vm7079_vm11, %v840_v60, %v841_v31  ;;  %v844_v63 = vsel %vm7080_vm12, %v841_v31, %v843_v32  ;;  %v465_v35 = vmax.f32 %v405_v58, 0.0  ;;  %vm7085_vm15 = vmmov %vm7078_vm2 }
  0x5b   : > { %v4580_v53 = vpack.i.bf16 %v849_v13, %v847_v8  ;;  %v4582_v40 = vpack.i.bf16 %v844_v63, %v842_v46  ;;  %v4586_v12 = vsel %vm4278_vm0, %v463_v1, 0.0  ;;  %vm7082_vm6 = vnez %v7014_v23  ;;  %vm7086_vm8 = vmmov %vm7078_vm2 }
  0x5c   : > { %7081 = vst [vmem:[#allocation40_spill] sm:$0xff] %v4586_v12  ;;  %v4591_v28 = vsel %vm7082_vm6, %v464_v56, 0.0  ;;  %v855_v15 = vrot.slane %v4586_v12, 1  ;;  %v400_v60 = vadd.f32 %v3991_v6, %v333_v14  ;;  %v401_v32 = vadd.f32 %v3991_v6, %v334_v5  ;;  %vm7092_vm13 = vmmov %vm7078_vm2 }
  0x5d   : > { %7083 = vst [vmem:[#allocation41_spill] sm:$0xff] %v4591_v28  ;;  %3223 = vrot.lane.b32.xlu1 %v4580_v53, %s3876_s15  ;;  %3218 = vrot.lane.b32.xlu0 %v4582_v40, %s3876_s15  ;;  %vm7084_vm0 = vnez %v7018_v54  ;;  %v856_v23 = vrot.slane %v4591_v28, 1  ;;  %v402_v62 = vadd.f32 %v3991_v6, %v335_v3  ;;  %v342_v14 = vmul.f32 %v3983_v4, %v275_v25  ;;  %v272_v25 = vld [vmem:[%s3999_s14 + $0x180] sm:$0xff]  ;;  %vm7098_vm12 = vmmov %vm7086_vm8 }
  0x5e   : > { %v4603_v43 = vsel %vm7084_vm0, %v465_v35, 0.0  ;;  %v460_v31 = vmax.f32 %v400_v60, 0.0  ;;  %v461_v58 = vmax.f32 %v401_v32, 0.0  ;;  %v343_v1 = vmul.f32 %v3983_v4, %v276_v19  ;;  %v273_v35 = vld [vmem:[%s3999_s14 + $0x188] sm:$0xff]  ;;  %v274_v19 = vld [vmem:[%s3999_s14 + $0x190] sm:$0x3]  ;;  %vm7099_vm6 = vmmov %vm7086_vm8 }
  0x5f   : > { %v858_v33 = vrot.slane %v4603_v43, 1  ;;  %vm966_vm4 = vcmask 1045504   ;;  %v857_v54 = vsel %vm7085_vm15, %v855_v15, %v856_v23  ;;  %v462_v56 = vmax.f32 %v402_v62, 0.0 }
  0x60   : > { %v344_v5 = vmul.f32 %v3983_v4, %v277_v44  ;;  %v409_v8 = vadd.f32 %v3991_v6, %v342_v14  ;;  %v4616_v13 = vsel %vm4339_vm9, %v460_v31, 0.0  ;;  %vm7088_vm10 = vnez %v7022_v2  ;;  %vm7091_vm9 = vmmov %vm7078_vm2 }
  0x61   : > { %v859_v3 = vsel %vm7086_vm8, %v856_v23, %v858_v33  ;;  %7087 = vst [vmem:[#allocation42_spill] sm:$0xff] %v4616_v13  ;;  %v4620_v46 = vsel %vm7088_vm10, %v461_v58, 0.0  ;;  %v410_v63 = vadd.f32 %v3991_v6, %v343_v1  ;;  %vm7090_vm14 = vnez %v7034_v59 }
  0x62   : > { %7089 = vst [vmem:[#allocation43_spill] sm:$0xff] %v4620_v46  ;;  %v4626_v15 = vpack.i.bf16 %v859_v3, %v857_v54  ;;  %v4630_v60 = vsel %vm7090_vm14, %v462_v56, 0.0  ;;  %v850_v32 = vrot.slane %v4616_v13, 1  ;;  %v851_v42 = vrot.slane %v4620_v46, 1 }
  0x63   : > { %v853_v44 = vrot.slane %v4630_v60, 1  ;;  %v411_v2 = vadd.f32 %v3991_v6, %v344_v5  ;;  %v469_v23 = vmax.f32 %v409_v8, 0.0  ;;  %v470_v62 = vmax.f32 %v410_v63, 0.0 }
  0x64   : > { %3233 = vrot.lane.b32.xlu1 %v4626_v15, %s3876_s15  ;;  %v852_v14 = vsel %vm7091_vm9, %v850_v32, %v851_v42  ;;  %v339_v33 = vmul.f32 %v3983_v4, %v272_v25  ;;  %v340_v59 = vmul.f32 %v3983_v4, %v273_v35  ;;  %v341_v31 = vmul.f32 %v3983_v4, %v274_v19 }
  0x65   : > { %v854_v58 = vsel %vm7092_vm13, %v851_v42, %v853_v44  ;;  %v471_v1 = vmax.f32 %v411_v2, 0.0  ;;  %vm7093_vm5 = vnez %v7042_v39  ;;  %vm7095_vm2 = vnez %v7031_v55 }
  0x66   : > { %v4645_v54 = vsel %vm7093_vm5, %v469_v23, 0.0  ;;  %v4649_v56 = vsel %vm7095_vm2, %v470_v62, 0.0  ;;  %v4651_v5 = vpack.i.bf16 %v854_v58, %v852_v14  ;;  %v406_v63 = vadd.f32 %v3991_v6, %v339_v33 }
  0x67   : > { %7094 = vst [vmem:[#allocation44_spill] sm:$0xff] %v4645_v54  ;;  %7096 = vst [vmem:[#allocation45_spill] sm:$0xff] %v4649_v56  ;;  %v865_v8 = vrot.slane %v4645_v54, 1  ;;  %v866_v3 = vrot.slane %v4649_v56, 1  ;;  %vm7097_vm11 = vnez %v7045_v17  ;;  %v407_v39 = vadd.f32 %v3991_v6, %v340_v59 }
  0x68   : > { %v4658_v4 = vsel %vm7097_vm11, %v471_v1, 0.0  ;;  %v408_v25 = vadd.f32 %v3991_v6, %v341_v31  ;;  %v972_v55 = vrot.slane %v4256_v30, 2  ;;  %3228 = vrot.lane.b32.xlu0 %v4651_v5, %s3876_s15  ;;  %v466_v32 = vmax.f32 %v406_v63, 0.0 }
  0x69   : > { %v867_v35 = vsel %vm7098_vm12, %v865_v8, %v866_v3  ;;  %v868_v19 = vrot.slane %v4658_v4, 1  ;;  %v973_v42 = vrot.slane %v4263_v7, 2  ;;  %v467_v44 = vmax.f32 %v407_v39, 0.0 }
  0x6a   : > { %v468_v17 = vmax.f32 %v408_v25, 0.0  ;;  %v975_v2 = vrot.slane %v4267_v36, 2  ;;  %v967_v23 = vrot.slane %v4134_v21, 2  ;;  %v4673_v62 = vsel %vm4455_vm3, %v466_v32, 0.0  ;;  %v7111_v21 = vld [vmem:[#allocation15_spill] sm:$0xff] }
  0x6b   : > { %v869_v6 = vsel %vm7099_vm6, %v866_v3, %v868_v19  ;;  %7100 = vst [vmem:[#allocation46_spill] sm:$0xff] %v4673_v62  ;;  %v974_v14 = vsel %vm966_vm4, %v972_v55, %v973_v42  ;;  %v968_v33 = vrot.slane %v4138_v22, 2  ;;  %v4681_v31 = vsel %vm4443_vm1, %v467_v44, 0.0  ;;  %vm7103_vm1 = vmmov %vm7099_vm6 }
  0x6c   : > { %v4677_v59 = vpack.i.bf16 %v869_v6, %v867_v35  ;;  %7101 = vst [vmem:[#allocation47_spill] sm:$0xff] %v4681_v31  ;;  %v4685_v36 = vsel %vm4469_vm7, %v468_v17, 0.0  ;;  %v860_v58 = vrot.slane %v4673_v62, 1  ;;  %v861_v26 = vrot.slane %v4681_v31, 1  ;;  %vm7104_vm3 = vmmov %vm7103_vm1 }
  0x6d   : > { %v863_v1 = vrot.slane %v4685_v36, 1  ;;  %v976_v8 = vsel %vm966_vm4, %v973_v42, %v975_v2  ;;  %v969_v3 = vsel %vm966_vm4, %v967_v23, %v968_v33  ;;  %v7102_v63 = vrot.slane %v4144_v27, 2  ;;  %vm7125_vm13 = vmmov %vm7103_vm1 }
  0x6e   : > { %3243 = vrot.lane.b32.xlu1 %v4677_v59, %s3876_s15  ;;  %v4694_v51 = vpack.i.bf16 %v976_v8, %v974_v14  ;;  %v982_v39 = vrot.slane %v4225_v11, 2  ;;  %v983_v25 = vrot.slane %v4238_v16, 2  ;;  %v862_v55 = vsel %vm7103_vm1, %v860_v58, %v861_v26  ;;  %vm7126_vm5 = vmmov %vm7103_vm1 }
  0x6f   : > { %v971_v9 = vsel %vm966_vm4, %v968_v33, %v7102_v63  ;;  %v864_v35 = vsel %vm7104_vm3, %v861_v26, %v863_v1  ;;  %v985_v32 = vrot.slane %v4251_v24, 2  ;;  %v977_v17 = vrot.slane %v4080_v48, 2  ;;  %vm7127_vm2 = vmmov %vm7103_vm1 }
  0x70   : > { %v3247_v19 = vpack.i.bf16 %v971_v9, %v969_v3  ;;  %v4704_v42 = vpack.i.bf16 %v864_v35, %v862_v55  ;;  %v984_v44 = vsel %vm966_vm4, %v982_v39, %v983_v25  ;;  %v978_v27 = vrot.slane %v4084_v49, 2  ;;  %v7107_v35 = vld [vmem:[#allocation27_spill] sm:$0xff]  ;;  %vm7128_vm11 = vmmov %vm7103_vm1 }
  0x71   : > { %v986_v2 = vsel %vm966_vm4, %v983_v25, %v985_v32  ;;  %v992_v23 = vrot.slane %v4317_v29, 2  ;;  %v993_v6 = vrot.slane %v4327_v37, 2  ;;  %v995_v14 = vrot.slane %v4331_v38, 2  ;;  %v7106_v25 = vld [vmem:[#allocation26_spill] sm:$0xff] }
  0x72   : > { %3238 = vrot.lane.b32.xlu0 %v4704_v42, %s3876_s15  ;;  %3253 = vrot.lane.b32.xlu1 %v4694_v51, %s3877_s16  ;;  %v4717_v24 = vpack.i.bf16 %v986_v2, %v984_v44  ;;  %v979_v33 = vsel %vm966_vm4, %v977_v17, %v978_v27  ;;  %v7105_v58 = vrot.slane %v4088_v50, 2  ;;  %v987_v1 = vrot.slane %v4369_v20, 2  ;;  %v7108_v44 = vld [vmem:[#allocation29_spill] sm:$0xff]  ;;  %v7109_v2 = vld [vmem:[#allocation31_spill] sm:$0xff] }
  0x73   : > { %v994_v38 = vsel %vm966_vm4, %v992_v23, %v993_v6  ;;  %v996_v3 = vsel %vm966_vm4, %v993_v6, %v995_v14  ;;  %v988_v63 = vrot.slane %v4377_v34, 2  ;;  %v990_v39 = vrot.slane %v4392_v45, 2 }
  0x74   : > { %v981_v26 = vsel %vm966_vm4, %v978_v27, %v7105_v58  ;;  %v4729_v9 = vpack.i.bf16 %v996_v3, %v994_v38  ;;  %v1002_v55 = vrot.slane %v7106_v25, 2  ;;  %v1003_v50 = vrot.slane %v7107_v35, 2  ;;  %v7110_v3 = vld [vmem:[#allocation33_spill] sm:$0xff] }
  0x75   : > { %v4724_v8 = vpack.i.bf16 %v981_v26, %v979_v33  ;;  %v989_v32 = vsel %vm966_vm4, %v987_v1, %v988_v63  ;;  %v1005_v17 = vrot.slane %v7108_v44, 2  ;;  %v997_v27 = vrot.slane %v4475_v57, 2 }
  0x76   : > { %v998_v23 = vrot.slane %v7109_v2, 2  ;;  %3248 = vrot.lane.b32.xlu0 %v3247_v19, %s3877_s16  ;;  %3263 = vrot.lane.b32.xlu1 %v4717_v24, %s3877_s16  ;;  %v991_v6 = vsel %vm966_vm4, %v988_v63, %v990_v39  ;;  %v1004_v45 = vsel %vm966_vm4, %v1002_v55, %v1003_v50  ;;  %v1000_v14 = vrot.slane %v4484_v18, 2  ;;  %v7112_v55 = vld [vmem:[#allocation35_spill] sm:$0xff] }
  0x77   : > { %v1012_v33 = vrot.slane %v4494_v10, 2  ;;  %v4745_v58 = vpack.i.bf16 %v991_v6, %v989_v32  ;;  %v1006_v26 = vsel %vm966_vm4, %v1003_v50, %v1005_v17  ;;  %v1013_v1 = vrot.slane %v4502_v61, 2  ;;  %v7113_v32 = vld [vmem:[#allocation16_spill] sm:$0xff] }
  0x78   : > { %v4749_v38 = vpack.i.bf16 %v1006_v26, %v1004_v45  ;;  %v999_v19 = vsel %vm966_vm4, %v997_v27, %v998_v23  ;;  %v1015_v44 = vrot.slane %v7110_v3, 2  ;;  %v1007_v63 = vrot.slane %v7111_v21, 2 }
  0x79   : > { %v1001_v39 = vsel %vm966_vm4, %v998_v23, %v1000_v14  ;;  %v1014_v18 = vsel %vm966_vm4, %v1012_v33, %v1013_v1  ;;  %v1008_v22 = vrot.slane %v7112_v55, 2  ;;  %v1010_v6 = vrot.slane %v7113_v32, 2 }
  0x7a   : > { %3258 = vrot.lane.b32.xlu0 %v4724_v8, %s3877_s16  ;;  %3273 = vrot.lane.b32.xlu1 %v4729_v9, %s3877_s16  ;;  %v1016_v50 = vsel %vm966_vm4, %v1013_v1, %v1015_v44  ;;  %v1022_v17 = vrot.slane %v4549_v47, 2  ;;  %v1023_v27 = vrot.slane %v4558_v0, 2  ;;  %v1025_v23 = vrot.slane %v4562_v41, 2  ;;  %v7114_v44 = vld [vmem:[#allocation39_spill] sm:$0xff] }
  0x7b   : > { %v4766_v45 = vpack.i.bf16 %v1001_v39, %v999_v19  ;;  %v4768_v14 = vpack.i.bf16 %v1016_v50, %v1014_v18  ;;  %v1009_v33 = vsel %vm966_vm4, %v1007_v63, %v1008_v22  ;;  %v1011_v26 = vsel %vm966_vm4, %v1008_v22, %v1010_v6  ;;  %v7115_v41 = vld [vmem:[#allocation11_spill] sm:$0xff] }
  0x7c   : > { %v1024_v3 = vsel %vm966_vm4, %v1022_v17, %v1023_v27  ;;  %v1026_v32 = vsel %vm966_vm4, %v1023_v27, %v1025_v23  ;;  %v1017_v1 = vrot.slane %v4093_v52, 2  ;;  %v1018_v21 = vrot.slane %v7114_v44, 2 }
  0x7d   : > { %v1020_v19 = vrot.slane %v7115_v41, 2  ;;  %v1032_v63 = vrot.slane %v4586_v12, 2  ;;  %v1033_v22 = vrot.slane %v4591_v28, 2  ;;  %v1035_v39 = vrot.slane %v4603_v43, 2 }
  0x7e   : > { %3268 = vrot.lane.b32.xlu0 %v4745_v58, %s3877_s16  ;;  %3283 = vrot.lane.b32.xlu1 %v4749_v38, %s3877_s16  ;;  %v3287_v18 = vpack.i.bf16 %v1011_v26, %v1009_v33  ;;  %v4784_v6 = vpack.i.bf16 %v1026_v32, %v1024_v3  ;;  %v1019_v50 = vsel %vm966_vm4, %v1017_v1, %v1018_v21  ;;  %v1027_v17 = vrot.slane %v4616_v13, 2 }
  0x7f   : > { %v1028_v27 = vrot.slane %v4620_v46, 2  ;;  %v1021_v23 = vsel %vm966_vm4, %v1018_v21, %v1020_v19  ;;  %v1034_v41 = vsel %vm966_vm4, %v1032_v63, %v1033_v22  ;;  %v1036_v43 = vsel %vm966_vm4, %v1033_v22, %v1035_v39 }
  0x80   : > { %v1030_v33 = vrot.slane %v4630_v60, 2  ;;  %v1042_v26 = vrot.slane %v4645_v54, 2  ;;  %v1043_v3 = vrot.slane %v4649_v56, 2  ;;  %v1045_v32 = vrot.slane %v4658_v4, 2 }
  0x81   : > { %v4800_v1 = vpack.i.bf16 %v1021_v23, %v1019_v50  ;;  %v4802_v55 = vpack.i.bf16 %v1036_v43, %v1034_v41  ;;  %v1029_v21 = vsel %vm966_vm4, %v1027_v17, %v1028_v27  ;;  %v1037_v19 = vrot.slane %v4673_v62, 2  ;;  %v248_v50 = vld [vmem:[%s3999_s14 + $0xc0] sm:$0xff]  ;;  %v249_v23 = vld [vmem:[%s3999_s14 + $0xc8] sm:$0xff] }
  0x82   : > { %3278 = vrot.lane.b32.xlu0 %v4766_v45, %s3877_s16  ;;  %3293 = vrot.lane.b32.xlu1 %v4768_v14, %s3877_s16  ;;  %v1031_v60 = vsel %vm966_vm4, %v1028_v27, %v1030_v33  ;;  %v1038_v63 = vrot.slane %v4681_v31, 2  ;;  %v1040_v22 = vrot.slane %v4685_v36, 2  ;;  %v1044_v4 = vsel %vm966_vm4, %v1042_v26, %v1043_v3  ;;  %v7116_v41 = vld [vmem:[#allocation5_spill] sm:$0xff] }
  0x83   : > { %v1046_v39 = vsel %vm966_vm4, %v1043_v3, %v1045_v32  ;;  %v4816_v17 = vpack.i.bf16 %v1031_v60, %v1029_v21  ;;  %v487_v43 = vadd.s32 8, %v7116_v41  ;;  %v4830_v33 = vld [vmem:[%s6867_s2] ss:$0 sm:$0xff]  ;;  %v4838_v21 = vpack.i.bf16 %v4084_v49, %v4080_v48 }
  0x84   : > { %v1039_v27 = vsel %vm966_vm4, %v1037_v19, %v1038_v63  ;;  %v1041_v36 = vsel %vm966_vm4, %v1038_v63, %v1040_v22  ;;  %v315_v26 = vmul.f32 %v4830_v33, %v248_v50  ;;  %v316_v3 = vmul.f32 %v4830_v33, %v249_v23  ;;  %v4847_v60 = vld [vmem:[%s6868_s3] ss:$0 sm:$0xff] }
  0x85   : > { %v4834_v32 = vpack.i.bf16 %v1041_v36, %v1039_v27  ;;  %vm501_vm7 = vcmp.ge.s32.totalorder %v487_v43, 1  ;;  %vm511_vm0 = vcmp.lt.s32.totalorder %v487_v43, 17  ;;  %v4867_v50 = vpack.i.bf16 %v4238_v16, %v4225_v11  ;;  %v7119_v36 = vld [vmem:[#allocation6_spill] sm:$0xff] }
  0x86   : > { %3288 = vrot.lane.b32.xlu0 %v3287_v18, %s3877_s16  ;;  %3303 = vrot.lane.b32.xlu1 %v4784_v6, %s3877_s16  ;;  %v4822_v18 = vpack.i.bf16 %v1046_v39, %v1044_v4  ;;  %v382_v19 = vadd.f32 %v4847_v60, %v315_v26  ;;  %v383_v63 = vadd.f32 %v4847_v60, %v316_v3  ;;  %vm4851_vm15 = vmand %vm501_vm7, %vm511_vm0  ;;  %vm7120_vm8 = vcmp.ge.s32.totalorder %v7119_v36, 1  ;;  %v278_v26 = vld [vmem:[%s3999_s14 + $0x1b0] sm:$0xff] }
  0x87   : > { %v3327_v4 = vpack.i.bf16 %v4263_v7, %v4256_v30  ;;  %v4863_v39 = vpack.i.bf16 %v4377_v34, %v4369_v20  ;;  %vm4873_vm10 = vmand %vm4851_vm15, %vm7120_vm8  ;;  %v4883_v3 = vpack.i.bf16 %v7109_v2, %v4475_v57  ;;  %v279_v20 = vld [vmem:[%s3999_s14 + $0x1b8] sm:$0xff]  ;;  %v4896_v34 = vpack.i.bf16 %v4327_v37, %v4317_v29 }
  0x88   : > { %v442_v23 = vmax.f32 %v382_v19, 0.0  ;;  %v443_v27 = vmax.f32 %v383_v63, 0.0  ;;  %v4918_v57 = vpack.i.bf16 %v7114_v44, %v4093_v52  ;;  %v250_v52 = vld [vmem:[%s3999_s14 + $0xd0] sm:$0x3]  ;;  %v4943_v44 = vpack.i.bf16 %v4681_v31, %v4673_v62  ;;  %vm7166_vm0 = vmmov %vm7120_vm8 }
  0x89   : > { %vm2143_vm12 = vcmask 1043456   ;;  %vm1771_vm7 = vcmask 64512  }
  0x8a   : > { %3298 = vrot.lane.b32.xlu0 %v4800_v1, %s3877_s16  ;;  %3313 = vrot.lane.b32.xlu1 %v4802_v55, %s3877_s16  ;;  %v4887_v19 = vsel %vm4873_vm10, %v442_v23, 0.0  ;;  %v4891_v63 = vsel %vm4851_vm15, %v443_v27, 0.0  ;;  %v346_v27 = vmul.f32 %v4830_v33, %v279_v20  ;;  %v3367_v20 = vpack.i.bf16 %v4502_v61, %v4494_v10 }
  0x8b   : > { %v4905_v23 = vpack.i.bf16 %v4891_v63, %v4887_v19  ;;  %v1245_v11 = vrot.slane %v4887_v19, 1 }
  0x8c   : > { %v413_v29 = vadd.f32 %v4847_v60, %v346_v27  ;;  %v280_v27 = vld [vmem:[%s3999_s14 + $0x1c0] sm:$0x3] }
  0x8e   : > { %3308 = vrot.lane.b32.xlu0 %v4816_v17, %s3877_s16  ;;  %3323 = vrot.lane.b32.xlu1 %v4822_v18, %s3877_s16  ;;  %v473_v37 = vmax.f32 %v413_v29, 0.0 }
  0x92   : > { %3318 = vrot.lane.b32.xlu0 %v4834_v32, %s3877_s16  ;;  %3333 = vrot.lane.b32.xlu1 %v4838_v21, %s3878_s30 }
  0x96   : > { %3328 = vrot.lane.b32.xlu0 %v3327_v4, %s3878_s30  ;;  %3343 = vrot.lane.b32.xlu1 %v4863_v39, %s3878_s30  ;;  %v345_v4 = vmul.f32 %v4830_v33, %v278_v26  ;;  %v4914_v26 = vpack.i.bf16 %v7107_v35, %v7106_v25  ;;  %v4930_v25 = vpack.i.bf16 %v4620_v46, %v4616_v13  ;;  %v736_v46 = vsel %vm4851_vm15, %v473_v37, 0.0 }
  0x97   : > { %v347_v13 = vmul.f32 %v4830_v33, %v280_v27  ;;  %v1251_v37 = vrot.slane %v736_v46, 1  ;;  %v7123_v27 = vld [vmem:[#allocation7_spill] sm:$0xff] }
  0x98   : > { %v412_v2 = vadd.f32 %v4847_v60, %v345_v4  ;;  %v4934_v4 = vpack.i.bf16 %v4558_v0, %v4549_v47  ;;  %v1246_v0 = vrot.slane %v4891_v63, 1  ;;  %vm7124_vm14 = vcmp.lt.s32.totalorder %v7123_v27, 17 }
  0x99   : > { %v414_v47 = vadd.f32 %v4847_v60, %v347_v13  ;;  %vm617_vm9 = vmand %vm4851_vm15, %vm7124_vm14 }
  0x9a   : > { %3338 = vrot.lane.b32.xlu0 %v4867_v50, %s3878_s30  ;;  %3353 = vrot.lane.b32.xlu1 %v4883_v3, %s3878_s30  ;;  %v472_v35 = vmax.f32 %v412_v2, 0.0  ;;  %v317_v2 = vmul.f32 %v4830_v33, %v250_v52  ;;  %v4961_v52 = vpack.i.bf16 %v4591_v28, %v4586_v12  ;;  %v4975_v12 = vpack.i.bf16 %v4649_v56, %v4645_v54  ;;  %v7129_v54 = vld [vmem:[#allocation12_spill] sm:$0xff]  ;;  %vm7170_vm8 = vmmov %vm7124_vm14 }
  0x9b   : > { %v474_v43 = vmax.f32 %v414_v47, 0.0  ;;  %v1247_v22 = vsel %vm7126_vm5, %v1245_v11, %v1246_v0  ;;  %v1357_v56 = vrot.slane %v736_v46, 2  ;;  %v1351_v11 = vrot.slane %v4887_v19, 2  ;;  %vm7175_vm5 = vmmov %vm7127_vm2 }
  0x9c   : > { %v735_v29 = vsel %vm4873_vm10, %v472_v35, 0.0  ;;  %vm1804_vm14 = vcmask 130048  }
  0x9d   : > { %v4963_v35 = vpack.i.bf16 %v736_v46, %v735_v29  ;;  %v1250_v13 = vrot.slane %v735_v29, 1  ;;  %v737_v62 = vsel %vm617_vm9, %v474_v43, 0.0  ;;  %v1356_v49 = vrot.slane %v735_v29, 2 }
  0x9e   : > { %3348 = vrot.lane.b32.xlu0 %v4896_v34, %s3878_s30  ;;  %3363 = vrot.lane.b32.xlu1 %v4905_v23, %s3878_s30  ;;  %v1253_v28 = vrot.slane %v737_v62, 1  ;;  %v5009_v29 = vpop.permute.xlu0 %3168 }
  0x9f   : > { %v1252_v16 = vsel %vm7125_vm13, %v1250_v13, %v1251_v37  ;;  %v1352_v13 = vrot.slane %v4891_v63, 2  ;;  %vm7174_vm13 = vmmov %vm7127_vm2 }
  0xa1   : > { %v1353_v63 = vsel %vm966_vm4, %v1351_v11, %v1352_v13 }
  0xa2   : > { %3358 = vrot.lane.b32.xlu0 %v4914_v26, %s3878_s30  ;;  %3373 = vrot.lane.b32.xlu1 %v4918_v57, %s3878_s30 }
  0xa6   : > { %3368 = vrot.lane.b32.xlu0 %v3367_v20, %s3878_s30  ;;  %3383 = vrot.lane.b32.xlu1 %v4930_v25, %s3878_s30  ;;  %v384_v20 = vadd.f32 %v4847_v60, %v317_v2 }
  0xa8   : > { %v444_v2 = vmax.f32 %v384_v20, 0.0  ;;  %v1254_v20 = vsel %vm7127_vm2, %v1251_v37, %v1253_v28  ;;  %v1359_v28 = vrot.slane %v737_v62, 2 }
  0xaa   : > { %3378 = vrot.lane.b32.xlu0 %v4934_v4, %s3878_s30  ;;  %3393 = vrot.lane.b32.xlu1 %v4943_v44, %s3878_s30  ;;  %v707_v31 = vsel %vm617_vm9, %v444_v2, 0.0  ;;  %v4981_v2 = vpack.i.bf16 %v1254_v20, %v1252_v16  ;;  %v7130_v16 = vld [vmem:[#allocation20_spill] sm:$0xff]  ;;  %v1360_v20 = vsel %vm966_vm4, %v1357_v56, %v1359_v28  ;;  %vm1837_vm9 = vcmask 195584  }
  0xab   : > { %v1248_v47 = vrot.slane %v707_v31, 1  ;;  %v1354_v37 = vrot.slane %v707_v31, 2  ;;  %v7132_v31 = vld [vmem:[#allocation19_spill] sm:$0xff] }
  0xad   : > { %v1249_v43 = vsel %vm7128_vm11, %v1246_v0, %v1248_v47  ;;  %v7131_v0 = vld [vmem:[#allocation28_spill] sm:$0xff]  ;;  %v4995_v47 = vpop.permute.xlu1 %3178  ;;  %v1355_v19 = vsel %vm966_vm4, %v1352_v13, %v1354_v37  ;;  %v3807_v13 = vld [vmem:[%s6866_s1 + $0x20] ss:$0 sps:$4 sm:$0xff]   ;;  %vm7177_vm11 = vmmov %vm7127_vm2 }
  0xae   : > { %3388 = vrot.lane.b32.xlu0 %v4961_v52, %s3878_s30  ;;  %3403 = vrot.lane.b32.xlu1 %v4963_v35, %s3878_s30  ;;  %v4983_v48 = vpack.i.bf16 %v1249_v43, %v1247_v22  ;;  %v1358_v22 = vsel %vm966_vm4, %v1356_v49, %v1357_v56  ;;  %v5003_v62 = vpack.i.bf16 %v1355_v19, %v1353_v63  ;;  %v7133_v49 = vld [vmem:[#allocation36_spill] sm:$0xff]  ;;  %v5017_v56 = vpop.permute.xlu0 %3173  ;;  %v2145_v28 = vsel %vm2143_vm12, %v3807_v13, 0 }
  0xaf   : > { %v4999_v46 = vpack.i.bf16 %v1360_v20, %v1358_v22  ;;  %3108 = vmatprep.subr.msk.bf16.mxu0 %vm2143_vm12, %v3807_v13  ;;  %3109 = vmatprep.subr.msk.bf16.mxu1 %vm2143_vm12, %v3807_v13  ;;  %v3810_v22 = vld [vmem:[%s6866_s1 + $0x8] sm:$0xff]   ;;  %vm1870_vm12 = vcmask 261120  }
  0xb0   : > { %3057 = vmatpush3.bf16.msra.mxu0 %v2145_v28  ;;  %3103 = vmatpush3.bf16.msra.mxu1 %v2145_v28 }
  0xb1   : > { %v5011_v43 = vpop.permute.xlu1 %3183 }
  0xb2   : > { %3398 = vrot.lane.b32.xlu0 %v4975_v12, %s3878_s30  ;;  %3413 = vrot.lane.b32.xlu1 %v7129_v54, %s3879_s6 }
  0xb5   : > { %v5026_v11 = vpop.permute.xlu1 %3193 }
  0xb6   : > { %3408 = vrot.lane.b32.xlu0 %v7130_v16, %s3879_s6  ;;  %3423 = vrot.lane.b32.xlu1 %v7131_v0, %s3879_s6  ;;  %7134 = vst [vmem:[#allocation29_spill] sm:$0xff] %v5026_v11  ;;  %v3809_v16 = vld [vmem:[%s6866_s1 + $0x10] sm:$0xff]  }
  0xba   : > { %3418 = vrot.lane.b32.xlu0 %v7132_v31, %s3879_s6  ;;  %3433 = vrot.lane.b32.xlu1 %v4582_v40, %s3879_s6 }
  0xbc   : > { %v5037_v37 = vpop.permute.xlu1 %3203 }
  0xbd   : > { %7136 = vst [vmem:[#allocation16_spill] sm:$0xff] %v5037_v37  ;;  %v251_v37 = vld [vmem:[%s3999_s14 + $0xd8] sm:$0xff] }
  0xbe   : > { %3428 = vrot.lane.b32.xlu0 %v7133_v49, %s3879_s6  ;;  %3443 = vrot.lane.b32.xlu1 %v4768_v14, %s3880_s7  ;;  %v3808_v14 = vld [vmem:[%s6866_s1 + $0x18] sm:$0xff]  }
  0xbf   : > { %3058 = vmatprep.subr.bf16.mxu0 %v3808_v14  ;;  %3099 = vmatprep.subr.bf16.mxu1 %v3808_v14 }
  0xc0   : > { %3059 = vmatpush3.bf16.msra.mxu0 %v3808_v14  ;;  %3104 = vmatpush3.bf16.msra.mxu1 %v3808_v14  ;;  %v7146_v14 = vld [vmem:[#allocation24_spill] sm:$0xff] }
  0xc1   : > { %3060 = vmatprep.subr.bf16.mxu0 %v3809_v16  ;;  %3100 = vmatprep.subr.bf16.mxu1 %v3809_v16 }
  0xc2   : > { %3438 = vrot.lane.b32.xlu0 %v4694_v51, %s3880_s7  ;;  %3453 = vrot.lane.b32.xlu1 %v4800_v1, %s3880_s7  ;;  %v5035_v51 = vpop.permute.xlu0 %3188 }
  0xc3   : > { %7135 = vst [vmem:[#allocation33_spill] sm:$0xff] %v5035_v51 }
  0xc4   : > { %3061 = vmatpush3.bf16.msra.mxu0 %v3809_v16  ;;  %3105 = vmatpush3.bf16.msra.mxu1 %v3809_v16 }
  0xc5   : > { %3062 = vmatprep.subr.bf16.mxu0 %v3810_v22  ;;  %3101 = vmatprep.subr.bf16.mxu1 %v3810_v22 }
  0xc6   : > { %3448 = vrot.lane.b32.xlu0 %v4724_v8, %s3880_s7  ;;  %3463 = vrot.lane.b32.xlu1 %v4918_v57, %s3881_s12  ;;  %v5046_v57 = vpop.permute.xlu0 %3198 }
  0xc7   : > { %7137 = vst [vmem:[#allocation11_spill] sm:$0xff] %v5046_v57  ;;  %v253_v57 = vld [vmem:[%s3999_s14 + $0xe8] sm:$0x3] }
  0xc8   : > { %3063 = vmatpush3.bf16.msra.mxu0 %v3810_v22  ;;  %3106 = vmatpush3.bf16.msra.mxu1 %v3810_v22 }
  0xca   : > { %3458 = vrot.lane.b32.xlu0 %v4838_v21, %s3881_s12  ;;  %3473 = vrot.lane.b32.xlu1 %v4934_v4, %s3881_s12  ;;  %v5055_v21 = vpop.permute.xlu1 %3213  ;;  %v3811_v4 = vld [vmem:[%s6866_s1] sm:$0xff]  }
  0xcb   : > { %3064 = vmatprep.subr.bf16.mxu0 %v3811_v4  ;;  %3102 = vmatprep.subr.bf16.mxu1 %v3811_v4 }
  0xcc   : > { %3065 = vmatpush3.bf16.msra.mxu0 %v3811_v4  ;;  %3107 = vmatpush3.bf16.msra.mxu1 %v3811_v4 }
  0xce   : > { %3468 = vrot.lane.b32.xlu0 %v4867_v50, %s3881_s12  ;;  %3483 = vrot.lane.b32.xlu1 %v4582_v40, %s3882_s26  ;;  %v5064_v50 = vpop.permute.xlu0 %3208 }
  0xcf   : > { %v5066_v40 = vpop.permute.xlu1 %3223 }
  0xd2   : > { %3478 = vrot.lane.b32.xlu0 %v7129_v54, %s3882_s26  ;;  %3493 = vrot.lane.b32.xlu1 %v4580_v53, %s3882_s26  ;;  %v5072_v20 = vpop.permute.xlu0 %3218 }
  0xd6   : > { %3488 = vrot.lane.b32.xlu0 %v7132_v31, %s3882_s26  ;;  %3503 = vrot.lane.b32.xlu1 %v4800_v1, %s3883_s10  ;;  %v5078_v54 = vpop.permute.xlu1 %3233 }
  0xd7   : > { %7138 = vst [vmem:[#allocation5_spill] sm:$0xff] %v5078_v54 }
  0xda   : > { %3498 = vrot.lane.b32.xlu0 %v4724_v8, %s3883_s10  ;;  %3513 = vrot.lane.b32.xlu1 %v4784_v6, %s3883_s10  ;;  %v5082_v63 = vpop.permute.xlu0 %3228 }
  0xdb   : > { %7139 = vst [vmem:[#allocation6_spill] sm:$0xff] %v5082_v63 }
  0xde   : > { %3508 = vrot.lane.b32.xlu0 %v4717_v24, %s3883_s10  ;;  %3523 = vrot.lane.b32.xlu1 %v4651_v5, %s3879_s6 }
  0xe0   : > { %v5086_v19 = vpop.permute.xlu1 %3243 }
  0xe1   : > { %7140 = vst [vmem:[#allocation7_spill] sm:$0xff] %v5086_v19  ;;  %v283_v19 = vld [vmem:[%s3999_s14 + $0x1d8] sm:$0x3] }
  0xe2   : > { %3518 = vrot.lane.b32.xlu0 %v4580_v53, %s3879_s6  ;;  %3533 = vrot.lane.b32.xlu1 %v4784_v6, %s3880_s7 }
  0xe4   : > { %v5092_v8 = vpop.permute.xlu0 %3238  ;;  %v5094_v1 = vpop.permute.xlu1 %3253 }
  0xe5   : > { %7141 = vst [vmem:[#allocation12_spill] sm:$0xff] %v5092_v8 }
  0xe6   : > { %3528 = vrot.lane.b32.xlu0 %v4717_v24, %s3880_s7  ;;  %3543 = vrot.lane.b32.xlu1 %v4816_v17, %s3880_s7 }
  0xe8   : > { %v5100_v31 = vpop.permute.xlu0 %3248  ;;  %v5102_v49 = vpop.permute.xlu1 %3263 }
  0xea   : > { %3538 = vrot.lane.b32.xlu0 %v4745_v58, %s3880_s7  ;;  %3553 = vrot.lane.b32.xlu1 %v4930_v25, %s3881_s12 }
  0xec   : > { %v5108_v53 = vpop.permute.xlu0 %3258  ;;  %v5110_v6 = vpop.permute.xlu1 %3273 }
  0xed   : > { %7142 = vst [vmem:[#allocation20_spill] sm:$0xff] %v5110_v6 }
  0xee   : > { %3548 = vrot.lane.b32.xlu0 %v4863_v39, %s3881_s12  ;;  %3563 = vrot.lane.b32.xlu1 %v4961_v52, %s3881_s12 }
  0xf0   : > { %v5116_v24 = vpop.permute.xlu0 %3268  ;;  %v5118_v13 = vpop.permute.xlu1 %3283 }
  0xf1   : > { %7143 = vst [vmem:[#allocation28_spill] sm:$0xff] %v5116_v24  ;;  %7144 = vst [vmem:[#allocation19_spill] sm:$0xff] %v5118_v13 }
  0xf2   : > { %3558 = vrot.lane.b32.xlu0 %v4896_v34, %s3881_s12  ;;  %3573 = vrot.lane.b32.xlu1 %v4651_v5, %s3882_s26 }
  0xf4   : > { %v5124_v25 = vpop.permute.xlu0 %3278  ;;  %v5126_v28 = vpop.permute.xlu1 %3293 }
  0xf5   : > { %7145 = vst [vmem:[#allocation36_spill] sm:$0xff] %v5124_v25 }
  0xf6   : > { %3568 = vrot.lane.b32.xlu0 %v7131_v0, %s3882_s26  ;;  %3583 = vrot.lane.b32.xlu1 %v4626_v15, %s3882_s26 }
  0xf8   : > { %v5132_v39 = vpop.permute.xlu0 %3288  ;;  %v5134_v52 = vpop.permute.xlu1 %3303 }
  0xfa   : > { %3578 = vrot.lane.b32.xlu0 %v7146_v14, %s3882_s26  ;;  %3593 = vrot.lane.b32.xlu1 %v4816_v17, %s3883_s10 }
  0xfc   : > { %v5140_v34 = vpop.permute.xlu0 %3298  ;;  %v5142_v5 = vpop.permute.xlu1 %3313 }
  0xfd   : > { %7147 = vst [vmem:[#allocation24_spill] sm:$0xff] %v5142_v5 }
  0xfe   : > { %3588 = vrot.lane.b32.xlu0 %v4745_v58, %s3883_s10  ;;  %3603 = vrot.lane.b32.xlu1 %v4802_v55, %s3883_s10 }
 0x100   : > { %v5148_v0 = vpop.permute.xlu0 %3308  ;;  %v5150_v16 = vpop.permute.xlu1 %3323 }
 0x101   : > { %7148 = vst [vmem:[#allocation48_spill] sm:$0xff] %v5148_v0  ;;  %7149 = vst [vmem:[#allocation49_spill] sm:$0xff] %v5150_v16  ;;  %v7151_v16 = vld [vmem:[#allocation34_spill] sm:$0xff] }
 0x102   : > { %3598 = vrot.lane.b32.xlu0 %v4729_v9, %s3883_s10  ;;  %3613 = vrot.lane.b32.xlu1 %v4626_v15, %s3879_s6 }
 0x104   : > { %v5156_v17 = vpop.permute.xlu0 %3318  ;;  %v5158_v22 = vpop.permute.xlu1 %3333 }
 0x105   : > { %7150 = vst [vmem:[#allocation50_spill] sm:$0xff] %v5156_v17 }
 0x106   : > { %3608 = vrot.lane.b32.xlu0 %v7146_v14, %s3879_s6  ;;  %3623 = vrot.lane.b32.xlu1 %v4704_v42, %s3879_s6 }
 0x108   : > { %v5164_v58 = vpop.permute.xlu0 %3328  ;;  %v5166_v4 = vpop.permute.xlu1 %3343 }
 0x10a   : > { %3618 = vrot.lane.b32.xlu0 %v7151_v16, %s3879_s6  ;;  %3633 = vrot.lane.b32.xlu1 %v4802_v55, %s3880_s7 }
 0x10c   : > { %v5172_v15 = vpop.permute.xlu0 %3338  ;;  %v5174_v17 = vpop.permute.xlu1 %3353 }
 0x10d   : > { %7152 = vst [vmem:[#allocation34_spill] sm:$0xff] %v5172_v15  ;;  %7153 = vst [vmem:[#allocation51_spill] sm:$0xff] %v5174_v17 }
 0x10e   : > { %3628 = vrot.lane.b32.xlu0 %v4729_v9, %s3880_s7  ;;  %3643 = vrot.lane.b32.xlu1 %v4834_v32, %s3880_s7 }
 0x110   : > { %v5180_v14 = vpop.permute.xlu0 %3348  ;;  %v5182_v25 = vpop.permute.xlu1 %3363 }
 0x111   : > { %7154 = vst [vmem:[#allocation52_spill] sm:$0xff] %v5180_v14  ;;  %7155 = vst [vmem:[#allocation53_spill] sm:$0xff] %v5182_v25  ;;  %v252_v14 = vld [vmem:[%s3999_s14 + $0xe0] sm:$0xff] }
 0x112   : > { %3638 = vrot.lane.b32.xlu0 %v4766_v45, %s3880_s7  ;;  %3653 = vrot.lane.b32.xlu1 %v4943_v44, %s3881_s12  ;;  %v281_v44 = vld [vmem:[%s3999_s14 + $0x1c8] sm:$0xff]  ;;  %v319_v5 = vmul.f32 %v4830_v33, %v252_v14 }
 0x114   : > { %v5188_v55 = vpop.permute.xlu0 %3358  ;;  %v5190_v13 = vpop.permute.xlu1 %3373 }
 0x115   : > { %7156 = vst [vmem:[#allocation54_spill] sm:$0xff] %v5188_v55  ;;  %v282_v55 = vld [vmem:[%s3999_s14 + $0x1d0] sm:$0xff] }
 0x116   : > { %3648 = vrot.lane.b32.xlu0 %v4883_v3, %s3881_s12  ;;  %3663 = vrot.lane.b32.xlu1 %v4975_v12, %s3881_s12  ;;  %v488_v12 = vadd.s32 9, %v7116_v41  ;;  %v350_v41 = vmul.f32 %v4830_v33, %v283_v19 }
 0x118   : > { %v5196_v9 = vpop.permute.xlu0 %3368  ;;  %v5198_v25 = vpop.permute.xlu1 %3383  ;;  %vm502_vm6 = vcmp.ge.s32.totalorder %v488_v12, 1  ;;  %vm512_vm1 = vcmp.lt.s32.totalorder %v488_v12, 17 }
 0x119   : > { %7157 = vst [vmem:[#allocation55_spill] sm:$0xff] %v5198_v25  ;;  %vm5239_vm3 = vmand %vm502_vm6, %vm512_vm1  ;;  %v7178_v25 = vld [vmem:[#allocation15_spill] sm:$0xff]  ;;  %vm1936_vm6 = vcmask 392192   ;;  %vm1969_vm1 = vcmask 457728  }
 0x11a   : > { %3658 = vrot.lane.b32.xlu0 %v4914_v26, %s3881_s12  ;;  %3673 = vrot.lane.b32.xlu1 %v4704_v42, %s3882_s26  ;;  %v348_v26 = vmul.f32 %v4830_v33, %v281_v44  ;;  %v349_v42 = vmul.f32 %v4830_v33, %v282_v55  ;;  %v7162_v44 = vld [vmem:[#allocation30_spill] sm:$0xff]  ;;  %vm5257_vm15 = vmand %vm5239_vm3, %vm7166_vm0  ;;  %vm2094_vm0 = vcmask 588800  }
 0x11b   : > { %vm620_vm10 = vmand %vm5239_vm3, %vm7170_vm8  ;;  %vm2328_vm8 = vcmask 1042434  }
 0x11c   : > { %v5206_v8 = vpop.permute.xlu0 %3378  ;;  %v5208_v3 = vpop.permute.xlu1 %3393  ;;  %v415_v55 = vadd.f32 %v4847_v60, %v348_v26 }
 0x11d   : > { %7158 = vst [vmem:[#allocation56_spill] sm:$0xff] %v5206_v8  ;;  %7159 = vst [vmem:[#allocation57_spill] sm:$0xff] %v5208_v3  ;;  %v320_v3 = vmul.f32 %v4830_v33, %v253_v57  ;;  %v3211_v57 = vunpack.i.h.bf16 %v5064_v50 }
 0x11e   : > { %3668 = vrot.lane.b32.xlu0 %v7151_v16, %s3882_s26  ;;  %3683 = vrot.lane.b32.xlu1 %v4677_v59, %s3882_s26  ;;  %v318_v16 = vmul.f32 %v4830_v33, %v251_v37  ;;  %v417_v33 = vadd.f32 %v4847_v60, %v350_v41  ;;  %v475_v12 = vmax.f32 %v415_v55, 0.0 }
 0x11f   : > { %v387_v37 = vadd.f32 %v4847_v60, %v320_v3 }
 0x120   : > { %v5221_v17 = vpop.permute.xlu0 %3388  ;;  %v5223_v0 = vpop.permute.xlu1 %3403  ;;  %v385_v14 = vadd.f32 %v4847_v60, %v318_v16  ;;  %v477_v41 = vmax.f32 %v417_v33, 0.0  ;;  %v5277_v36 = vsel %vm5257_vm15, %v475_v12, 0.0  ;;  %v7171_v33 = vld [vmem:[#allocation14_spill] sm:$0xff] }
 0x121   : > { %7160 = vst [vmem:[#allocation58_spill] sm:$0xff] %v5221_v17  ;;  %7161 = vst [vmem:[#allocation59_spill] sm:$0xff] %v5223_v0  ;;  %v416_v0 = vadd.f32 %v4847_v60, %v349_v42  ;;  %v3171_v42 = vunpack.i.h.bf16 %v5009_v29  ;;  %v447_v16 = vmax.f32 %v387_v37, 0.0  ;;  %v7172_v37 = vld [vmem:[#allocation13_spill] sm:$0xff]  ;;  %v1670_v63 = vrot.slane %v5277_v36, 2 }
 0x122   : > { %3678 = vrot.lane.b32.xlu0 %v7162_v44, %s3882_s26  ;;  %3693 = vrot.lane.b32.xlu1 %v4834_v32, %s3883_s10  ;;  %v386_v32 = vadd.f32 %v4847_v60, %v319_v5  ;;  %v3175_v60 = vunpack.i.l.bf16 %v5017_v56  ;;  %v445_v55 = vmax.f32 %v385_v14, 0.0 }
 0x123   : > { %v476_v26 = vmax.f32 %v416_v0, 0.0  ;;  %v5285_v27 = vsel %vm1771_vm7, %v7171_v33, %v3171_v42  ;;  %v710_v6 = vsel %vm620_vm10, %v447_v16, 0.0 }
 0x124   : > { %v5235_v17 = vpop.permute.xlu0 %3398  ;;  %v5237_v19 = vpop.permute.xlu1 %3413  ;;  %v5306_v33 = vsel %vm5257_vm15, %v445_v55, 0.0  ;;  %v1562_v55 = vrot.slane %v710_v6, 1  ;;  %vm2325_vm15 = vcmask 1041409  }
 0x125   : > { %7163 = vst [vmem:[#allocation30_spill] sm:$0xff] %v5235_v17  ;;  %v3170_v17 = vunpack.i.l.bf16 %v5009_v29  ;;  %v446_v29 = vmax.f32 %v386_v32, 0.0  ;;  %v1559_v3 = vrot.slane %v5306_v33, 1  ;;  %v1665_v11 = vrot.slane %v5306_v33, 2 }
 0x126   : > { %3688 = vrot.lane.b32.xlu0 %v4766_v45, %s3883_s10  ;;  %3703 = vrot.lane.b32.xlu1 %v4822_v18, %s3883_s10  ;;  %v3176_v45 = vunpack.i.h.bf16 %v5017_v56  ;;  %v5281_v56 = vsel %vm5239_vm3, %v476_v26, 0.0  ;;  %v740_v26 = vsel %vm620_vm10, %v477_v41, 0.0  ;;  %v3215_v41 = vunpack.i.l.bf16 %v5055_v21 }
 0x127   : > { %v5289_v14 = vsel %vm1771_vm7, %v7172_v37, %v3170_v17  ;;  %v1565_v42 = vrot.slane %v5281_v56, 1  ;;  %v1567_v16 = vrot.slane %v740_v26, 1  ;;  %v1671_v17 = vrot.slane %v5281_v56, 2 }
 0x128   : > { %v5263_v5 = vpop.permute.xlu0 %3408  ;;  %v5265_v0 = vpop.permute.xlu1 %3423  ;;  %v5293_v32 = vsel %vm1771_vm7, %v4263_v7, %v3176_v45  ;;  %v5310_v7 = vsel %vm5239_vm3, %v446_v29, 0.0  ;;  %v1564_v45 = vrot.slane %v5277_v36, 1  ;;  %v3210_v29 = vunpack.i.l.bf16 %v5064_v50 }
 0x129   : > { %7169 = vst [vmem:[#allocation60_spill] sm:$0xff] %v5265_v0  ;;  %v1673_v54 = vrot.slane %v740_v26, 2  ;;  %v1666_v51 = vrot.slane %v5310_v7, 2  ;;  %vm2002_vm3 = vcmask 523264   ;;  %vm2331_vm10 = vcmask 1043459  }
 0x12a   : > { %3698 = vrot.lane.b32.xlu0 %v4749_v38, %s3883_s10  ;;  %3713 = vrot.lane.b32.xlu1 %v4677_v59, %s3879_s6  ;;  %v1774_v59 = vsel %vm1771_vm7, %v4256_v30, %v3175_v60  ;;  %v3216_v30 = vunpack.i.h.bf16 %v5055_v21  ;;  %v1560_v60 = vrot.slane %v5310_v7, 1  ;;  %v5340_v26 = vsel %vm7174_vm13, %v1564_v45, %v1565_v42 }
 0x12b   : > { %v1790_v21 = vsel %vm1771_vm7, %v4494_v10, %v3215_v41  ;;  %v3255_v45 = vunpack.i.l.bf16 %v5094_v1  ;;  %v5363_v10 = vsel %vm966_vm4, %v1670_v63, %v1671_v17  ;;  %v5366_v41 = vsel %vm966_vm4, %v1671_v17, %v1673_v54 }
 0x12c   : > { %v5297_v12 = vpop.permute.xlu0 %3418  ;;  %v5299_v24 = vpop.permute.xlu1 %3433  ;;  %v1791_v50 = vsel %vm1771_vm7, %v4502_v61, %v3216_v30  ;;  %v5343_v0 = vsel %vm7175_vm5, %v1559_v3, %v1560_v60  ;;  %v5350_v61 = vsel %vm7127_vm2, %v1565_v42, %v1567_v16  ;;  %v5353_v30 = vsel %vm7177_vm11, %v1560_v60, %v1562_v55 }
 0x12d   : > { %7173 = vst [vmem:[#allocation14_spill] sm:$0xff] %v5297_v12  ;;  %v1668_v12 = vrot.slane %v710_v6, 2  ;;  %v7176_v6 = vld [vmem:[#allocation35_spill] sm:$0xff]  ;;  %v3256_v42 = vunpack.i.h.bf16 %v5094_v1  ;;  %v3250_v60 = vunpack.i.l.bf16 %v5100_v31  ;;  %v3251_v16 = vunpack.i.h.bf16 %v5100_v31 }
 0x12e   : > { %3708 = vrot.lane.b32.xlu0 %v7162_v44, %s3879_s6  ;;  %3723 = vrot.lane.b32.xlu1 %v4981_v2, %s3879_s6  ;;  %v1789_v8 = vsel %vm1771_vm7, %v7176_v6, %v3211_v57  ;;  %v5371_v57 = vsel %vm966_vm4, %v1665_v11, %v1666_v51  ;;  %v3296_v55 = vunpack.i.h.bf16 %v5126_v28  ;;  %v3295_v63 = vunpack.i.l.bf16 %v5126_v28 }
 0x12f   : > { %v3290_v1 = vunpack.i.l.bf16 %v5132_v39  ;;  %v3335_v17 = vunpack.i.l.bf16 %v5158_v22  ;;  %v1808_v11 = vsel %vm1804_vm14, %v5293_v32, %v3256_v42  ;;  %v3331_v31 = vunpack.i.h.bf16 %v5164_v58 }
 0x130   : > { %v5323_v37 = vpop.permute.xlu0 %3428  ;;  %v5325_v44 = vpop.permute.xlu1 %3443  ;;  %v3376_v54 = vunpack.i.h.bf16 %v5190_v13  ;;  %v3375_v28 = vunpack.i.l.bf16 %v5190_v13  ;;  %v3371_v13 = vunpack.i.h.bf16 %v5196_v9  ;;  %vm2334_vm13 = vcmask 1044484  }
 0x131   : > { %vm2337_vm5 = vcmask 1045509   ;;  %vm2340_vm2 = vcmask 1046534   ;;  %vm2343_vm11 = vcmask 1047559  }
 0x132   : > { %3718 = vrot.lane.b32.xlu0 %v4983_v48, %s3879_s6  ;;  %3733 = vrot.lane.b32.xlu1 %v4822_v18, %s3880_s7  ;;  %v1788_v18 = vsel %vm1771_vm7, %v7178_v25, %v3210_v29  ;;  %v5374_v25 = vsel %vm966_vm4, %v1666_v51, %v1668_v12  ;;  %v3291_v51 = vunpack.i.h.bf16 %v5132_v39  ;;  %v3336_v12 = vunpack.i.h.bf16 %v5158_v22 }
 0x133   : > { %v1805_v39 = vsel %vm1804_vm14, %v5289_v14, %v3250_v60  ;;  %vm1903_vm4 = vcmask 326656   ;;  %v1806_v22 = vsel %vm1804_vm14, %v5285_v27, %v3251_v16  ;;  %v1823_v14 = vsel %vm1804_vm14, %v1790_v21, %v3295_v63 }
 0x134   : > { %v5358_v15 = vpop.permute.xlu0 %3438  ;;  %v5360_v3 = vpop.permute.xlu1 %3453  ;;  %v1822_v32 = vsel %vm1804_vm14, %v1789_v8, %v3291_v51  ;;  %v3370_v27 = vunpack.i.l.bf16 %v5196_v9  ;;  %v1841_v42 = vsel %vm1837_vm9, %v1808_v11, %v3336_v12  ;;  %v3415_v60 = vunpack.i.l.bf16 %v5237_v19 }
 0x135   : > { %v3416_v8 = vunpack.i.h.bf16 %v5237_v19  ;;  %v1856_v63 = vsel %vm1837_vm9, %v1823_v14, %v3375_v28  ;;  %v3411_v9 = vunpack.i.h.bf16 %v5263_v5  ;;  %v3435_v51 = vunpack.i.l.bf16 %v5299_v24 }
 0x136   : > { %3728 = vrot.lane.b32.xlu0 %v4749_v38, %s3880_s7  ;;  %3743 = vrot.lane.b32.xlu1 %v4999_v46, %s3880_s7  ;;  %v1807_v38 = vsel %vm1804_vm14, %v1774_v59, %v3255_v45  ;;  %v3330_v59 = vunpack.i.l.bf16 %v5164_v58  ;;  %v1824_v45 = vsel %vm1804_vm14, %v1791_v50, %v3296_v55  ;;  %v1821_v58 = vsel %vm1804_vm14, %v1788_v18, %v3290_v1 }
 0x137   : > { %v1840_v50 = vsel %vm1837_vm9, %v1807_v38, %v3335_v17  ;;  %v1839_v18 = vsel %vm1837_vm9, %v1806_v22, %v3331_v31  ;;  %v3410_v55 = vunpack.i.l.bf16 %v5263_v5  ;;  %v1857_v11 = vsel %vm1837_vm9, %v1824_v45, %v3376_v54 }
 0x138   : > { %v5394_v29 = vpop.permute.xlu0 %3448  ;;  %v5396_v6 = vpop.permute.xlu1 %3463  ;;  %v1838_v21 = vsel %vm1837_vm9, %v1805_v39, %v3330_v59  ;;  %v7179_v1 = vpack.i.bf16 %v5281_v56, %v5277_v36  ;;  %v1854_v19 = vsel %vm1837_vm9, %v1821_v58, %v3370_v27  ;;  %v3436_v31 = vunpack.i.h.bf16 %v5299_v24 }
 0x139   : > { %v3431_v38 = vunpack.i.h.bf16 %v5323_v37  ;;  %v3430_v54 = vunpack.i.l.bf16 %v5323_v37  ;;  %v1855_v5 = vsel %vm1837_vm9, %v1822_v32, %v3371_v13  ;;  %v5447_v12 = vsel %vm1870_vm12, %v1840_v50, %v3415_v60 }
 0x13a   : > { %3738 = vrot.lane.b32.xlu0 %v5003_v62, %s3880_s7  ;;  %3753 = vrot.lane.b32.xlu1 %v4963_v35, %s3881_s12  ;;  %v3445_v17 = vunpack.i.l.bf16 %v5325_v44  ;;  %v5454_v24 = vsel %vm1870_vm12, %v1841_v42, %v3416_v8  ;;  %v1871_v28 = vsel %vm1870_vm12, %v1838_v21, %v3410_v55  ;;  %v3441_v37 = vunpack.i.h.bf16 %v5358_v15 }
 0x13b   : > { %v3440_v39 = vunpack.i.l.bf16 %v5358_v15  ;;  %v1872_v59 = vsel %vm1870_vm12, %v1839_v18, %v3411_v9  ;;  %v1889_v22 = vsel %vm1870_vm12, %v1856_v63, %v3435_v51  ;;  %v3456_v45 = vunpack.i.h.bf16 %v5360_v3 }
 0x13c   : > { %v5423_v16 = vpop.permute.xlu0 %3458  ;;  %v5425_v35 = vpop.permute.xlu1 %3473  ;;  %v7180_v14 = vpack.i.bf16 %v5310_v7, %v5306_v33  ;;  %v1890_v58 = vsel %vm1870_vm12, %v1857_v11, %v3436_v31  ;;  %v1887_v15 = vsel %vm1870_vm12, %v1854_v19, %v3430_v54  ;;  %v1888_v32 = vsel %vm1870_vm12, %v1855_v5, %v3431_v38 }
 0x13d   : > { %v3465_v27 = vunpack.i.l.bf16 %v5396_v6  ;;  %v1920_v50 = vsel %vm1903_vm4, %v1887_v15, %v3445_v17  ;;  %v3466_v42 = vunpack.i.h.bf16 %v5396_v6  ;;  %v3475_v33 = vunpack.i.l.bf16 %v5425_v35 }
 0x13e   : > { %3748 = vrot.lane.b32.xlu0 %v4905_v23, %s3881_s12  ;;  %3763 = vrot.lane.b32.xlu1 %v7179_v1, %s3881_s12  ;;  %v3446_v23 = vunpack.i.h.bf16 %v5325_v44  ;;  %v3455_v44 = vunpack.i.l.bf16 %v5360_v3  ;;  %v1905_v60 = vsel %vm1903_vm4, %v1872_v59, %v3441_v37  ;;  %v3460_v21 = vunpack.i.l.bf16 %v5423_v16 }
 0x13f   : > { %v3476_v18 = vunpack.i.h.bf16 %v5425_v35  ;;  %v1923_v55 = vsel %vm1903_vm4, %v1890_v58, %v3456_v45  ;;  %v7181_v6 = vpack.i.bf16 %v5350_v61, %v5340_v26  ;;  %v3451_v9 = vunpack.i.h.bf16 %v5394_v29 }
 0x140   : > { %v5451_v36 = vpop.permute.xlu0 %3468  ;;  %v3484_v56 = vpop.permute.xlu1 %3483  ;;  %v1921_v3 = vsel %vm1903_vm4, %v1888_v32, %v3446_v23  ;;  %v1922_v8 = vsel %vm1903_vm4, %v1889_v22, %v3455_v44  ;;  %v3450_v51 = vunpack.i.l.bf16 %v5394_v29  ;;  %v3461_v35 = vunpack.i.h.bf16 %v5423_v16 }
 0x141   : > { %v3486_v63 = vunpack.i.h.bf16 %v3484_v56  ;;  %v3485_v11 = vunpack.i.l.bf16 %v3484_v56  ;;  %v1953_v1 = vsel %vm1936_vm6, %v1920_v50, %v3465_v27  ;;  %v1955_v19 = vsel %vm1936_vm6, %v1922_v8, %v3475_v33 }
 0x142   : > { %3758 = vrot.lane.b32.xlu0 %v7180_v14, %s3881_s12  ;;  %3773 = vrot.lane.b32.xlu1 %v4981_v2, %s3882_s26  ;;  %v1904_v2 = vsel %vm1903_vm4, %v1871_v28, %v3440_v39  ;;  %v1956_v23 = vsel %vm1936_vm6, %v1923_v55, %v3476_v18  ;;  %v7182_v16 = vpack.i.bf16 %v5353_v30, %v5343_v0  ;;  %v3471_v39 = vunpack.i.h.bf16 %v5451_v36 }
 0x143   : > { %v1937_v17 = vsel %vm1936_vm6, %v1904_v2, %v3460_v21  ;;  %v1986_v28 = vsel %vm1969_vm1, %v1953_v1, %v3485_v11  ;;  %v1938_v59 = vsel %vm1936_vm6, %v1905_v60, %v3461_v35  ;;  %v3470_v44 = vunpack.i.l.bf16 %v5451_v36 }
 0x144   : > { %v3479_v7 = vpop.permute.xlu0 %3478  ;;  %v3494_v13 = vpop.permute.xlu1 %3493  ;;  %v7183_v36 = vpack.i.bf16 %v5366_v41, %v5363_v10  ;;  %v1907_v10 = vsel %vm1903_vm4, %v5454_v24, %v3451_v9 }
 0x145   : > { %v3496_v31 = vunpack.i.h.bf16 %v3494_v13  ;;  %v3495_v38 = vunpack.i.l.bf16 %v3494_v13  ;;  %v3481_v56 = vunpack.i.h.bf16 %v3479_v7  ;;  %v3480_v29 = vunpack.i.l.bf16 %v3479_v7 }
 0x146   : > { %3768 = vrot.lane.b32.xlu0 %v4983_v48, %s3882_s26  ;;  %3783 = vrot.lane.b32.xlu1 %v7181_v6, %s3882_s26  ;;  %v1954_v48 = vsel %vm1936_vm6, %v1921_v3, %v3466_v42  ;;  %v1940_v11 = vsel %vm1936_vm6, %v1907_v10, %v3471_v39  ;;  %v7188_v39 = vld [vmem:[#allocation17_spill] sm:$0xff]  ;;  %v7194_v10 = vld [vmem:[#allocation55_spill] sm:$0xff] }
 0x147   : > { %v1987_v37 = vsel %vm1969_vm1, %v1954_v48, %v3486_v63  ;;  %v1988_v0 = vsel %vm1969_vm1, %v1955_v19, %v3495_v38  ;;  %v1989_v30 = vsel %vm1969_vm1, %v1956_v23, %v3496_v31  ;;  %v1970_v33 = vsel %vm1969_vm1, %v1937_v17, %v3480_v29  ;;  %v7186_v17 = vld [vmem:[#allocation8_spill] sm:$0xff] }
 0x148   : > { %v3489_v54 = vpop.permute.xlu0 %3488  ;;  %v3504_v5 = vpop.permute.xlu1 %3503  ;;  %v1971_v7 = vsel %vm1969_vm1, %v1938_v59, %v3481_v56  ;;  %v3180_v31 = vunpack.i.l.bf16 %v4995_v47  ;;  %v3226_v48 = vunpack.i.h.bf16 %v5066_v40  ;;  %v3225_v23 = vunpack.i.l.bf16 %v5066_v40 }
 0x149   : > { %v3506_v26 = vunpack.i.h.bf16 %v3504_v5  ;;  %v3505_v61 = vunpack.i.l.bf16 %v3504_v5  ;;  %v3491_v3 = vunpack.i.h.bf16 %v3489_v54  ;;  %v3490_v42 = vunpack.i.l.bf16 %v3489_v54 }
 0x14a   : > { %3778 = vrot.lane.b32.xlu0 %v7182_v16, %s3882_s26  ;;  %3793 = vrot.lane.b32.xlu1 %v4999_v46, %s3883_s10  ;;  %v1776_v56 = vsel %vm1771_vm7, %v7186_v17, %v3180_v31  ;;  %v3220_v29 = vunpack.i.l.bf16 %v5072_v20  ;;  %v3266_v16 = vunpack.i.h.bf16 %v5102_v49 }
 0x14b   : > { %v2019_v22 = vsel %vm2002_vm3, %v1986_v28, %v3505_v61  ;;  %v2020_v45 = vsel %vm2002_vm3, %v1987_v37, %v3506_v26  ;;  %v1973_v19 = vsel %vm1969_vm1, %v1940_v11, %v3491_v3  ;;  %v3221_v26 = vunpack.i.h.bf16 %v5072_v20  ;;  %v7185_v61 = vld [vmem:[#allocation9_spill] sm:$0xff]  ;;  %v7187_v37 = vld [vmem:[#allocation18_spill] sm:$0xff]  ;;  %v7195_v11 = vld [vmem:[#allocation56_spill] sm:$0xff] }
 0x14c   : > { %v3499_v14 = vpop.permute.xlu0 %3498  ;;  %v3514_v46 = vpop.permute.xlu1 %3513  ;;  %v2043_v58 = vpack.c.bf16 %v2020_v45, %v2019_v22  ;;  %v3265_v22 = vunpack.i.l.bf16 %v5102_v49  ;;  %v3261_v45 = vunpack.i.h.bf16 %v5108_v53  ;;  %v7190_v20 = vld [vmem:[#allocation37_spill] sm:$0xff]  ;;  %v3300_v49 = vunpack.i.l.bf16 %v5140_v34 }
 0x14d   : > { %v3501_v15 = vunpack.i.h.bf16 %v3499_v14  ;;  %v3500_v32 = vunpack.i.l.bf16 %v3499_v14  ;;  %v3516_v27 = vunpack.i.h.bf16 %v3514_v46  ;;  %v3515_v50 = vunpack.i.l.bf16 %v3514_v46 }
 0x14e   : > { %3788 = vrot.lane.b32.xlu0 %v5003_v62, %s3883_s10  ;;  %3803 = vrot.lane.b32.xlu1 %v7183_v36, %s3883_s10  ;;  %v1906_v62 = vsel %vm1903_vm4, %v5447_v12, %v3450_v51  ;;  %v7184_v12 = vpack.i.bf16 %v5374_v25, %v5371_v57  ;;  %v3181_v51 = vunpack.i.h.bf16 %v4995_v47  ;;  %v3186_v57 = vunpack.i.h.bf16 %v5011_v43 }
 0x14f   : > { %v2021_v13 = vsel %vm2002_vm3, %v1988_v0, %v3515_v50  ;;  %v2022_v2 = vsel %vm2002_vm3, %v1989_v30, %v3516_v27  ;;  %v2003_v60 = vsel %vm2002_vm3, %v1970_v33, %v3500_v32  ;;  %v2004_v21 = vsel %vm2002_vm3, %v1971_v7, %v3501_v15  ;;  %3082 = vmatprep.mubr.msk.bf16.mxu1 %vm2094_vm0, %v2043_v58  ;;  %v7191_v58 = vld [vmem:[#allocation39_spill] sm:$0xff]  ;;  %v7192_v50 = vld [vmem:[#allocation10_spill] sm:$0xff] }
 0x150   : > { %v2044_v41 = vpack.c.bf16 %v2022_v2, %v2021_v13  ;;  %v3509_v18 = vpop.permute.xlu0 %3508  ;;  %v2035_v8 = vpack.c.bf16 %v2004_v21, %v2003_v60  ;;  %v5529_v55 = vpop.permute.xlu1 %3523  ;;  %v1939_v63 = vsel %vm1936_vm6, %v1906_v62, %v3470_v44  ;;  %v3185_v25 = vunpack.i.l.bf16 %v5011_v43  ;;  %v7189_v44 = vld [vmem:[#allocation38_spill] sm:$0xff] }
 0x151   : > { %v3511_v6 = vunpack.i.h.bf16 %v3509_v18  ;;  %v3510_v35 = vunpack.i.l.bf16 %v3509_v18  ;;  %v1972_v1 = vsel %vm1969_vm1, %v1939_v63, %v3490_v42  ;;  %v1777_v47 = vsel %vm1771_vm7, %v7185_v61, %v3181_v51  ;;  %v7193_v2 = vld [vmem:[#allocation34_spill] sm:$0xff] }
 0x152   : > { %3798 = vrot.lane.b32.xlu0 %v7184_v12, %s3883_s10  ;;  %3066 = vmatprep.mubr.msk.bf16.mxu0 %vm2094_vm0, %v2035_v8  ;;  %v1779_v40 = vsel %vm1771_vm7, %v7187_v37, %v3186_v57  ;;  %v1778_v59 = vsel %vm1771_vm7, %v7188_v39, %v3185_v25  ;;  %v1795_v0 = vsel %vm1771_vm7, %v7189_v44, %v3226_v48  ;;  %v3260_v14 = vunpack.i.l.bf16 %v5108_v53  ;;  %v7196_v12 = vld [vmem:[#allocation60_spill] sm:$0xff]  ;;  %v7197_v25 = vld [vmem:[#allocation14_spill] sm:$0xff] }
 0x153   : > { %v2005_v24 = vsel %vm2002_vm3, %v1972_v1, %v3510_v35  ;;  %v2006_v9 = vsel %vm2002_vm3, %v1973_v19, %v3511_v6  ;;  %3083 = vmatmul.mubr.msk.bf16.vlgmr.msra.gmra.mxu1 %vm2094_vm0, %v2044_v41  ;;  %v1794_v30 = vsel %vm1771_vm7, %v7190_v20, %v3225_v23  ;;  %v3306_v46 = vunpack.i.h.bf16 %v5134_v52 }
 0x154   : > { %v2036_v38 = vpack.c.bf16 %v2006_v9, %v2005_v24  ;;  %v5545_v54 = vpop.permute.xlu0 %3518  ;;  %v5547_v5 = vpop.permute.xlu1 %3533  ;;  %v1793_v15 = vsel %vm1771_vm7, %v7191_v58, %v3221_v26  ;;  %v3305_v32 = vunpack.i.l.bf16 %v5134_v52  ;;  %v3301_v27 = vunpack.i.h.bf16 %v5140_v34 }
 0x155   : > { %v1792_v3 = vsel %vm1771_vm7, %v7192_v50, %v3220_v29  ;;  %v1812_v42 = vsel %vm1804_vm14, %v1779_v40, %v3266_v16  ;;  %v3346_v36 = vunpack.i.h.bf16 %v5166_v4  ;;  %v3345_v53 = vunpack.i.l.bf16 %v5166_v4 }
 0x156   : > { %3067 = vmatmul.mubr.msk.bf16.vlgmr.msra.gmra.mxu0 %vm2094_vm0, %v2036_v38  ;;  %v1811_v13 = vsel %vm1804_vm14, %v1778_v59, %v3265_v22  ;;  %v1810_v52 = vsel %vm1804_vm14, %v1777_v47, %v3261_v45  ;;  %v3341_v60 = vunpack.i.h.bf16 %v7193_v2  ;;  %v3340_v34 = vunpack.i.l.bf16 %v7193_v2 }
 0x157   : > { %v1809_v21 = vsel %vm1804_vm14, %v1776_v56, %v3260_v14  ;;  %v1828_v62 = vsel %vm1804_vm14, %v1795_v0, %v3306_v46  ;;  %v3386_v41 = vunpack.i.h.bf16 %v7194_v10  ;;  %v3385_v4 = vunpack.i.l.bf16 %v7194_v10 }
 0x158   : > { %v5561_v28 = vpop.permute.xlu0 %3528  ;;  %v5563_v43 = vpop.permute.xlu1 %3543  ;;  %v1827_v18 = vsel %vm1804_vm14, %v1794_v30, %v3305_v32  ;;  %v1825_v8 = vsel %vm1804_vm14, %v1792_v3, %v3300_v49  ;;  %v1826_v63 = vsel %vm1804_vm14, %v1793_v15, %v3301_v27  ;;  %v3380_v6 = vunpack.i.l.bf16 %v7195_v11 }
 0x159   : > { %v1844_v35 = vsel %vm1837_vm9, %v1811_v13, %v3345_v53  ;;  %v1845_v1 = vsel %vm1837_vm9, %v1812_v42, %v3346_v36  ;;  %v3381_v19 = vunpack.i.h.bf16 %v7195_v11  ;;  %v3425_v24 = vunpack.i.l.bf16 %v7196_v12 }
 0x15a   : > { %v1842_v31 = vsel %vm1837_vm9, %v1809_v21, %v3340_v34  ;;  %v1843_v38 = vsel %vm1837_vm9, %v1810_v52, %v3341_v60  ;;  %v3426_v57 = vunpack.i.h.bf16 %v7196_v12  ;;  %v3420_v48 = vunpack.i.l.bf16 %v7197_v25 }
 0x15b   : > { %v1860_v23 = vsel %vm1837_vm9, %v1827_v18, %v3385_v4  ;;  %v1861_v26 = vsel %vm1837_vm9, %v1828_v62, %v3386_v41  ;;  %v3421_v61 = vunpack.i.h.bf16 %v7197_v25  ;;  %v3525_v47 = vunpack.i.l.bf16 %v5529_v55 }
 0x15c   : > { %v5587_v33 = vpop.permute.xlu0 %3538  ;;  %v5589_v7 = vpop.permute.xlu1 %3553  ;;  %v1858_v17 = vsel %vm1837_vm9, %v1825_v8, %v3380_v6  ;;  %v3526_v56 = vunpack.i.h.bf16 %v5529_v55  ;;  %v3521_v29 = vunpack.i.h.bf16 %v5545_v54  ;;  %v3520_v16 = vunpack.i.l.bf16 %v5545_v54 }
 0x15d   : > { %v1859_v37 = vsel %vm1837_vm9, %v1826_v63, %v3381_v19  ;;  %v5623_v40 = vsel %vm1870_vm12, %v1844_v35, %v3425_v24  ;;  %v3536_v39 = vunpack.i.h.bf16 %v5547_v5  ;;  %v3535_v59 = vunpack.i.l.bf16 %v5547_v5 }
 0x15e   : > { %v5630_v44 = vsel %vm1870_vm12, %v1845_v1, %v3426_v57  ;;  %v1875_v55 = vsel %vm1870_vm12, %v1842_v31, %v3420_v48  ;;  %v3531_v0 = vunpack.i.h.bf16 %v5561_v28  ;;  %v3530_v54 = vunpack.i.l.bf16 %v5561_v28 }
 0x15f   : > { %v1876_v20 = vsel %vm1870_vm12, %v1843_v38, %v3421_v61  ;;  %v1893_v30 = vsel %vm1870_vm12, %v1860_v23, %v3525_v47  ;;  %v3546_v14 = vunpack.i.h.bf16 %v5563_v43  ;;  %v3545_v5 = vunpack.i.l.bf16 %v5563_v43 }
 0x160   : > { %v3549_v9 = vpop.permute.xlu0 %3548  ;;  %v5607_v51 = vpop.permute.xlu1 %3563  ;;  %v1894_v46 = vsel %vm1870_vm12, %v1861_v26, %v3526_v56  ;;  %v1891_v58 = vsel %vm1870_vm12, %v1858_v17, %v3520_v16  ;;  %v1892_v15 = vsel %vm1870_vm12, %v1859_v37, %v3521_v29  ;;  %v3555_v32 = vunpack.i.l.bf16 %v5589_v7 }
 0x161   : > { %v1924_v27 = vsel %vm1903_vm4, %v1891_v58, %v3535_v59  ;;  %v1925_v28 = vsel %vm1903_vm4, %v1892_v15, %v3536_v39  ;;  %v3556_v49 = vunpack.i.h.bf16 %v5589_v7  ;;  %v3550_v50 = vunpack.i.l.bf16 %v3549_v9 }
 0x162   : > { %v1908_v36 = vsel %vm1903_vm4, %v1875_v55, %v3530_v54  ;;  %v1909_v43 = vsel %vm1903_vm4, %v1876_v20, %v3531_v0  ;;  %v3551_v53 = vunpack.i.h.bf16 %v3549_v9  ;;  %v3565_v13 = vunpack.i.l.bf16 %v5607_v51 }
 0x163   : > { %v1926_v52 = vsel %vm1903_vm4, %v1893_v30, %v3545_v5  ;;  %v1927_v2 = vsel %vm1903_vm4, %v1894_v46, %v3546_v14  ;;  %v3541_v21 = vunpack.i.h.bf16 %v5587_v33  ;;  %v3540_v7 = vunpack.i.l.bf16 %v5587_v33 }
 0x164   : > { %v5627_v22 = vpop.permute.xlu0 %3558  ;;  %v3574_v45 = vpop.permute.xlu1 %3573  ;;  %v1957_v62 = vsel %vm1936_vm6, %v1924_v27, %v3555_v32  ;;  %v3566_v10 = vunpack.i.h.bf16 %v5607_v51  ;;  %v1958_v41 = vsel %vm1936_vm6, %v1925_v28, %v3556_v49  ;;  %v1941_v4 = vsel %vm1936_vm6, %v1908_v36, %v3550_v50 }
 0x165   : > { %v3576_v60 = vunpack.i.h.bf16 %v3574_v45  ;;  %v3575_v34 = vunpack.i.l.bf16 %v3574_v45  ;;  %v1942_v6 = vsel %vm1936_vm6, %v1909_v43, %v3551_v53  ;;  %v1959_v35 = vsel %vm1936_vm6, %v1926_v52, %v3565_v13  ;;  %v7198_v43 = vld [vmem:[#allocation29_spill] sm:$0xff] }
 0x166   : > { %v1960_v51 = vsel %vm1936_vm6, %v1927_v2, %v3566_v10  ;;  %v3561_v31 = vunpack.i.h.bf16 %v5627_v22  ;;  %v3560_v25 = vunpack.i.l.bf16 %v5627_v22  ;;  %v1911_v20 = vsel %vm1903_vm4, %v5630_v44, %v3541_v21 }
 0x167   : > { %v1990_v33 = vsel %vm1969_vm1, %v1957_v62, %v3575_v34  ;;  %v1991_v12 = vsel %vm1969_vm1, %v1958_v41, %v3576_v60  ;;  %v1910_v30 = vsel %vm1903_vm4, %v5623_v40, %v3540_v7  ;;  %v3196_v53 = vunpack.i.h.bf16 %v7198_v43  ;;  %v7199_v60 = vld [vmem:[#allocation33_spill] sm:$0xff]  ;;  %v7201_v41 = vld [vmem:[#allocation6_spill] sm:$0xff] }
 0x168   : > { %v3569_v3 = vpop.permute.xlu0 %3568  ;;  %v3584_v42 = vpop.permute.xlu1 %3583  ;;  %v1943_v15 = vsel %vm1936_vm6, %v1910_v30, %v3560_v25  ;;  %v1944_v32 = vsel %vm1936_vm6, %v1911_v20, %v3561_v31  ;;  %v3195_v13 = vunpack.i.l.bf16 %v7198_v43  ;;  %v3191_v34 = vunpack.i.h.bf16 %v7199_v60  ;;  %v7200_v7 = vld [vmem:[#allocation5_spill] sm:$0xff] }
 0x169   : > { %v3571_v18 = vunpack.i.h.bf16 %v3569_v3  ;;  %v3570_v8 = vunpack.i.l.bf16 %v3569_v3  ;;  %v3586_v24 = vunpack.i.h.bf16 %v3584_v42  ;;  %v3585_v9 = vunpack.i.l.bf16 %v3584_v42  ;;  %v7208_v25 = vld [vmem:[#allocation41_spill] sm:$0xff] }
 0x16a   : > { %v3190_v21 = vunpack.i.l.bf16 %v7199_v60  ;;  %v3236_v62 = vunpack.i.h.bf16 %v7200_v7  ;;  %v3235_v10 = vunpack.i.l.bf16 %v7200_v7 }
 0x16b   : > { %v1974_v48 = vsel %vm1969_vm1, %v1941_v4, %v3570_v8  ;;  %v1975_v23 = vsel %vm1969_vm1, %v1942_v6, %v3571_v18  ;;  %v1992_v37 = vsel %vm1969_vm1, %v1959_v35, %v3585_v9  ;;  %v1993_v39 = vsel %vm1969_vm1, %v1960_v51, %v3586_v24  ;;  %v7202_v18 = vld [vmem:[#allocation22_spill] sm:$0xff]  ;;  %v7204_v35 = vld [vmem:[#allocation20_spill] sm:$0xff]  ;;  %v7206_v9 = vld [vmem:[#allocation23_spill] sm:$0xff] }
 0x16c   : > { %v3579_v63 = vpop.permute.xlu0 %3578  ;;  %v3594_v11 = vpop.permute.xlu1 %3593  ;;  %v3231_v4 = vunpack.i.h.bf16 %v7201_v41  ;;  %v1783_v8 = vsel %vm1771_vm7, %v7202_v18, %v3196_v53  ;;  %v3230_v6 = vunpack.i.l.bf16 %v7201_v41  ;;  %v1780_v51 = vsel %vm1771_vm7, %v7206_v9, %v3190_v21 }
 0x16d   : > { %v3596_v1 = vunpack.i.h.bf16 %v3594_v11  ;;  %v3595_v19 = vunpack.i.l.bf16 %v3594_v11  ;;  %v3581_v59 = vunpack.i.h.bf16 %v3579_v63  ;;  %v3580_v45 = vunpack.i.l.bf16 %v3579_v63  ;;  %v7203_v63 = vld [vmem:[#allocation21_spill] sm:$0xff] }
 0x16e   : > { %v1782_v11 = vsel %vm1771_vm7, %v7203_v63, %v3195_v13  ;;  %v3275_v31 = vunpack.i.l.bf16 %v7204_v35  ;;  %v7217_v13 = vld [vmem:[#allocation58_spill] sm:$0xff] }
 0x16f   : > { %v2023_v38 = vsel %vm2002_vm3, %v1990_v33, %v3595_v19  ;;  %v2024_v57 = vsel %vm2002_vm3, %v1991_v12, %v3596_v1  ;;  %v1976_v49 = vsel %vm1969_vm1, %v1943_v15, %v3580_v45  ;;  %v1977_v50 = vsel %vm1969_vm1, %v1944_v32, %v3581_v59  ;;  %v7205_v12 = vld [vmem:[#allocation25_spill] sm:$0xff]  ;;  %v7213_v45 = vld [vmem:[#allocation42_spill] sm:$0xff]  ;;  %v7215_v15 = vld [vmem:[#allocation52_spill] sm:$0xff] }
 0x170   : > { %v2045_v26 = vpack.c.bf16 %v2024_v57, %v2023_v38  ;;  %v3589_v61 = vpop.permute.xlu0 %3588  ;;  %v3604_v47 = vpop.permute.xlu1 %3603  ;;  %v3276_v1 = vunpack.i.h.bf16 %v7204_v35  ;;  %v1781_v24 = vsel %vm1771_vm7, %v7205_v12, %v3191_v34  ;;  %v7207_v38 = vld [vmem:[#allocation28_spill] sm:$0xff]  ;;  %v3351_v32 = vunpack.i.h.bf16 %v7215_v15 }
 0x171   : > { %v3591_v17 = vunpack.i.h.bf16 %v3589_v61  ;;  %v3590_v56 = vunpack.i.l.bf16 %v3589_v61  ;;  %v3606_v29 = vunpack.i.h.bf16 %v3604_v47  ;;  %v3605_v16 = vunpack.i.l.bf16 %v3604_v47  ;;  %v7210_v47 = vld [vmem:[#allocation24_spill] sm:$0xff] }
 0x172   : > { %3086 = vmatprep.mubr.msk.bf16.mxu1 %vm2094_vm0, %v2045_v26  ;;  %v3270_v57 = vunpack.i.l.bf16 %v7207_v38  ;;  %v3271_v61 = vunpack.i.h.bf16 %v7207_v38  ;;  %v3390_v60 = vunpack.i.l.bf16 %v7217_v13  ;;  %v3391_v7 = vunpack.i.h.bf16 %v7217_v13 }
 0x173   : > { %v2007_v22 = vsel %vm2002_vm3, %v1974_v48, %v3590_v56  ;;  %v2008_v55 = vsel %vm2002_vm3, %v1975_v23, %v3591_v17  ;;  %v2025_v0 = vsel %vm2002_vm3, %v1992_v37, %v3605_v16  ;;  %v2026_v54 = vsel %vm2002_vm3, %v1993_v39, %v3606_v29  ;;  %v7209_v23 = vld [vmem:[#allocation40_spill] sm:$0xff]  ;;  %v7211_v56 = vld [vmem:[#allocation43_spill] sm:$0xff] }
 0x174   : > { %v2037_v14 = vpack.c.bf16 %v2008_v55, %v2007_v22  ;;  %v2046_v5 = vpack.c.bf16 %v2026_v54, %v2025_v0  ;;  %v3599_v46 = vpop.permute.xlu0 %3598  ;;  %v5679_v58 = vpop.permute.xlu1 %3613  ;;  %v1799_v48 = vsel %vm1771_vm7, %v7208_v25, %v3236_v62  ;;  %v1798_v26 = vsel %vm1771_vm7, %v7209_v23, %v3235_v10  ;;  %v7212_v37 = vld [vmem:[#allocation48_spill] sm:$0xff]  ;;  %v7214_v0 = vld [vmem:[#allocation51_spill] sm:$0xff] }
 0x175   : > { %v3601_v27 = vunpack.i.h.bf16 %v3599_v46  ;;  %v3600_v28 = vunpack.i.l.bf16 %v3599_v46  ;;  %v3316_v17 = vunpack.i.h.bf16 %v7210_v47  ;;  %v1797_v29 = vsel %vm1771_vm7, %v7211_v56, %v3231_v4 }
 0x176   : > { %3070 = vmatprep.mubr.msk.bf16.mxu0 %vm2094_vm0, %v2037_v14  ;;  %3087 = vmatmul.mubr.msk.bf16.gmra.mxu1 %vm2094_vm0, %v2046_v5  ;;  %v3315_v16 = vunpack.i.l.bf16 %v7210_v47  ;;  %v3311_v39 = vunpack.i.h.bf16 %v7212_v37  ;;  %v3310_v59 = vunpack.i.l.bf16 %v7212_v37  ;;  %v1796_v22 = vsel %vm1771_vm7, %v7213_v45, %v3230_v6 }
 0x177   : > { %v2009_v40 = vsel %vm2002_vm3, %v1976_v49, %v3600_v28  ;;  %v2010_v44 = vsel %vm2002_vm3, %v1977_v50, %v3601_v27  ;;  %v1816_v55 = vsel %vm1804_vm14, %v1783_v8, %v3276_v1  ;;  %v3356_v54 = vunpack.i.h.bf16 %v7214_v0  ;;  %v7216_v50 = vld [vmem:[#allocation57_spill] sm:$0xff] }
 0x178   : > { %v2038_v3 = vpack.c.bf16 %v2010_v44, %v2009_v40  ;;  %v5689_v42 = vpop.permute.xlu0 %3608  ;;  %v5691_v36 = vpop.permute.xlu1 %3623  ;;  %v3355_v20 = vunpack.i.l.bf16 %v7214_v0  ;;  %v1815_v5 = vsel %vm1804_vm14, %v1782_v11, %v3275_v31  ;;  %v1813_v46 = vsel %vm1804_vm14, %v1780_v51, %v3270_v57 }
 0x179   : > { %v3350_v27 = vunpack.i.l.bf16 %v7215_v15  ;;  %v1814_v28 = vsel %vm1804_vm14, %v1781_v24, %v3271_v61  ;;  %v1832_v49 = vsel %vm1804_vm14, %v1799_v48, %v3316_v17  ;;  %v3396_v40 = vunpack.i.h.bf16 %v7216_v50 }
 0x17a   : > { %3071 = vmatmul.mubr.msk.bf16.gmra.mxu0 %vm2094_vm0, %v2038_v3  ;;  %v3395_v44 = vunpack.i.l.bf16 %v7216_v50  ;;  %v1831_v3 = vsel %vm1804_vm14, %v1798_v26, %v3315_v16  ;;  %v1829_v43 = vsel %vm1804_vm14, %v1796_v22, %v3310_v59  ;;  %v1830_v53 = vsel %vm1804_vm14, %v1797_v29, %v3311_v39 }
 0x17b   : > { %v1848_v34 = vsel %vm1837_vm9, %v1815_v5, %v3355_v20  ;;  %v1849_v21 = vsel %vm1837_vm9, %v1816_v55, %v3356_v54  ;;  %v3615_v62 = vunpack.i.l.bf16 %v5679_v58  ;;  %v1846_v4 = vsel %vm1837_vm9, %v1813_v46, %v3350_v27 }
 0x17c   : > { %v5696_v52 = vpop.permute.xlu0 %3618  ;;  %v5698_v2 = vpop.permute.xlu1 %3633  ;;  %v1847_v18 = vsel %vm1837_vm9, %v1814_v28, %v3351_v32  ;;  %v3616_v8 = vunpack.i.h.bf16 %v5679_v58  ;;  %v3610_v63 = vunpack.i.l.bf16 %v5689_v42  ;;  %v1864_v11 = vsel %vm1837_vm9, %v1831_v3, %v3395_v44 }
 0x17d   : > { %v1865_v6 = vsel %vm1837_vm9, %v1832_v49, %v3396_v40  ;;  %v3611_v35 = vunpack.i.h.bf16 %v5689_v42  ;;  %v3625_v1 = vunpack.i.l.bf16 %v5691_v36  ;;  %v1862_v12 = vsel %vm1837_vm9, %v1829_v43, %v3390_v60 }
 0x17e   : > { %v3626_v24 = vunpack.i.h.bf16 %v5691_v36  ;;  %v3621_v9 = vunpack.i.h.bf16 %v5696_v52  ;;  %v3620_v51 = vunpack.i.l.bf16 %v5696_v52  ;;  %v1863_v58 = vsel %vm1837_vm9, %v1830_v53, %v3391_v7 }
 0x17f   : > { %v1895_v31 = vsel %vm1870_vm12, %v1862_v12, %v3615_v62  ;;  %v3636_v38 = vunpack.i.h.bf16 %v5698_v2  ;;  %v3635_v57 = vunpack.i.l.bf16 %v5698_v2  ;;  %v1896_v48 = vsel %vm1870_vm12, %v1863_v58, %v3616_v8 }
 0x180   : > { %v5711_v19 = vpop.permute.xlu0 %3628  ;;  %v5713_v33 = vpop.permute.xlu1 %3643  ;;  %v1879_v23 = vsel %vm1870_vm12, %v1846_v4, %v3610_v63  ;;  %v1880_v52 = vsel %vm1870_vm12, %v1847_v18, %v3611_v35  ;;  %v1897_v61 = vsel %vm1870_vm12, %v1864_v11, %v3625_v1  ;;  %v1898_v2 = vsel %vm1870_vm12, %v1865_v6, %v3626_v24 }
 0x181   : > { %v3631_v36 = vunpack.i.h.bf16 %v5711_v19  ;;  %v3630_v26 = vunpack.i.l.bf16 %v5711_v19  ;;  %v3646_v47 = vunpack.i.h.bf16 %v5713_v33  ;;  %v3645_v17 = vunpack.i.l.bf16 %v5713_v33 }
 0x182   : > { %v1882_v56 = vsel %vm1870_vm12, %v1849_v21, %v3621_v9  ;;  %v1881_v29 = vsel %vm1870_vm12, %v1848_v34, %v3620_v51  ;;  %v1928_v37 = vsel %vm1903_vm4, %v1895_v31, %v3635_v57  ;;  %v1929_v19 = vsel %vm1903_vm4, %v1896_v48, %v3636_v38 }
 0x183   : > { %v1912_v55 = vsel %vm1903_vm4, %v1879_v23, %v3630_v26  ;;  %v1913_v33 = vsel %vm1903_vm4, %v1880_v52, %v3631_v36  ;;  %v1930_v20 = vsel %vm1903_vm4, %v1897_v61, %v3645_v17  ;;  %v1931_v5 = vsel %vm1903_vm4, %v1898_v2, %v3646_v47 }
 0x184   : > { %v5737_v30 = vpop.permute.xlu0 %3638  ;;  %v5739_v14 = vpop.permute.xlu1 %3653 }
 0x185   : > { %v3655_v16 = vunpack.i.l.bf16 %v5739_v14  ;;  %v3656_v39 = vunpack.i.h.bf16 %v5739_v14  ;;  %v3641_v32 = vunpack.i.h.bf16 %v5737_v30  ;;  %v3640_v14 = vunpack.i.l.bf16 %v5737_v30 }
 0x187   : > { %v1961_v27 = vsel %vm1936_vm6, %v1928_v37, %v3655_v16  ;;  %v1962_v49 = vsel %vm1936_vm6, %v1929_v19, %v3656_v39  ;;  %v1914_v36 = vsel %vm1903_vm4, %v1881_v29, %v3640_v14  ;;  %v1915_v26 = vsel %vm1903_vm4, %v1882_v56, %v3641_v32  ;;  %v7220_v14 = vld [vmem:[#allocation7_spill] sm:$0xff] }
 0x188   : > { %v3649_v10 = vpop.permute.xlu0 %3648  ;;  %v5757_v41 = vpop.permute.xlu1 %3663 }
 0x189   : > { %v3650_v59 = vunpack.i.l.bf16 %v3649_v10  ;;  %v3651_v0 = vunpack.i.h.bf16 %v3649_v10  ;;  %v3665_v54 = vunpack.i.l.bf16 %v5757_v41  ;;  %v3666_v28 = vunpack.i.h.bf16 %v5757_v41 }
 0x18b   : > { %v1945_v50 = vsel %vm1936_vm6, %v1912_v55, %v3650_v59  ;;  %v1946_v53 = vsel %vm1936_vm6, %v1913_v33, %v3651_v0  ;;  %v1963_v13 = vsel %vm1936_vm6, %v1930_v20, %v3665_v54  ;;  %v1964_v10 = vsel %vm1936_vm6, %v1931_v5, %v3666_v28  ;;  %v7218_v33 = vld [vmem:[#allocation16_spill] sm:$0xff] }
 0x18c   : > { %v5775_v25 = vpop.permute.xlu0 %3658  ;;  %v3674_v42 = vpop.permute.xlu1 %3673  ;;  %v3206_v0 = vunpack.i.h.bf16 %v7218_v33  ;;  %v3205_v54 = vunpack.i.l.bf16 %v7218_v33  ;;  %v3245_v28 = vunpack.i.l.bf16 %v7220_v14 }
 0x18d   : > { %v3676_v46 = vunpack.i.h.bf16 %v3674_v42  ;;  %v3675_v15 = vunpack.i.l.bf16 %v3674_v42  ;;  %v3661_v41 = vunpack.i.h.bf16 %v5775_v25  ;;  %v3660_v8 = vunpack.i.l.bf16 %v5775_v25 }
 0x18f   : > { %v1994_v30 = vsel %vm1969_vm1, %v1961_v27, %v3675_v15  ;;  %v1995_v21 = vsel %vm1969_vm1, %v1962_v49, %v3676_v46  ;;  %v1947_v2 = vsel %vm1936_vm6, %v1914_v36, %v3660_v8  ;;  %v1948_v16 = vsel %vm1936_vm6, %v1915_v26, %v3661_v41  ;;  %v7219_v46 = vld [vmem:[#allocation11_spill] sm:$0xff]  ;;  %v7221_v49 = vld [vmem:[#allocation12_spill] sm:$0xff]  ;;  %v7228_v8 = vld [vmem:[#allocation45_spill] sm:$0xff] }
 0x190   : > { %v3669_v45 = vpop.permute.xlu0 %3668  ;;  %v3684_v22 = vpop.permute.xlu1 %3683  ;;  %v3201_v15 = vunpack.i.h.bf16 %v7219_v46  ;;  %v3200_v32 = vunpack.i.l.bf16 %v7219_v46  ;;  %v3246_v27 = vunpack.i.h.bf16 %v7220_v14 }
 0x191   : > { %v3671_v40 = vunpack.i.h.bf16 %v3669_v45  ;;  %v3670_v44 = vunpack.i.l.bf16 %v3669_v45  ;;  %v3686_v7 = vunpack.i.h.bf16 %v3684_v22  ;;  %v3685_v62 = vunpack.i.l.bf16 %v3684_v22 }
 0x193   : > { %v1978_v63 = vsel %vm1969_vm1, %v1945_v50, %v3670_v44  ;;  %v1979_v11 = vsel %vm1969_vm1, %v1946_v53, %v3671_v40  ;;  %v1996_v58 = vsel %vm1969_vm1, %v1963_v13, %v3685_v62  ;;  %v1997_v31 = vsel %vm1969_vm1, %v1964_v10, %v3686_v7  ;;  %v7222_v40 = vld [vmem:[#allocation27_spill] sm:$0xff]  ;;  %v7226_v62 = vld [vmem:[#allocation32_spill] sm:$0xff] }
 0x194   : > { %v3679_v3 = vpop.permute.xlu0 %3678  ;;  %v3694_v43 = vpop.permute.xlu1 %3693  ;;  %v3241_v50 = vunpack.i.h.bf16 %v7221_v49  ;;  %v1787_v44 = vsel %vm1771_vm7, %v7222_v40, %v3206_v0  ;;  %v3240_v53 = vunpack.i.l.bf16 %v7221_v49  ;;  %v7224_v13 = vld [vmem:[#allocation19_spill] sm:$0xff]  ;;  %v1784_v10 = vsel %vm1771_vm7, %v7226_v62, %v3200_v32 }
 0x195   : > { %v3696_v60 = vunpack.i.h.bf16 %v3694_v43  ;;  %v3695_v34 = vunpack.i.l.bf16 %v3694_v43  ;;  %v3681_v38 = vunpack.i.h.bf16 %v3679_v3  ;;  %v3680_v57 = vunpack.i.l.bf16 %v3679_v3  ;;  %v7223_v3 = vld [vmem:[#allocation26_spill] sm:$0xff] }
 0x196   : > { %v1786_v43 = vsel %vm1771_vm7, %v7223_v3, %v3205_v54  ;;  %v3285_v41 = vunpack.i.l.bf16 %v7224_v13  ;;  %v7237_v54 = vld [vmem:[#allocation30_spill] sm:$0xff] }
 0x197   : > { %v2027_v4 = vsel %vm2002_vm3, %v1994_v30, %v3695_v34  ;;  %v2028_v18 = vsel %vm2002_vm3, %v1995_v21, %v3696_v60  ;;  %v1980_v39 = vsel %vm1969_vm1, %v1947_v2, %v3680_v57  ;;  %v1981_v59 = vsel %vm1969_vm1, %v1948_v16, %v3681_v38  ;;  %v7225_v21 = vld [vmem:[#allocation31_spill] sm:$0xff]  ;;  %v7233_v57 = vld [vmem:[#allocation46_spill] sm:$0xff] }
 0x198   : > { %v2047_v6 = vpack.c.bf16 %v2028_v18, %v2027_v4  ;;  %v3689_v35 = vpop.permute.xlu0 %3688  ;;  %v3704_v1 = vpop.permute.xlu1 %3703  ;;  %v3286_v60 = vunpack.i.h.bf16 %v7224_v13  ;;  %v1785_v7 = vsel %vm1771_vm7, %v7225_v21, %v3201_v15  ;;  %v7227_v4 = vld [vmem:[#allocation36_spill] sm:$0xff]  ;;  %v7235_v2 = vld [vmem:[#allocation54_spill] sm:$0xff]  ;;  %v3400_v46 = vunpack.i.l.bf16 %v7237_v54 }
 0x199   : > { %v3691_v12 = vunpack.i.h.bf16 %v3689_v35  ;;  %v3690_v24 = vunpack.i.l.bf16 %v3689_v35  ;;  %v3706_v9 = vunpack.i.h.bf16 %v3704_v1  ;;  %v3705_v51 = vunpack.i.l.bf16 %v3704_v1  ;;  %v7230_v1 = vld [vmem:[#allocation49_spill] sm:$0xff] }
 0x19a   : > { %3090 = vmatprep.mubr.msk.bf16.mxu1 %vm2094_vm0, %v2047_v6  ;;  %v3280_v18 = vunpack.i.l.bf16 %v7227_v4  ;;  %v3281_v35 = vunpack.i.h.bf16 %v7227_v4  ;;  %v3361_v16 = vunpack.i.h.bf16 %v7235_v2  ;;  %v3401_v14 = vunpack.i.h.bf16 %v7237_v54 }
 0x19b   : > { %v2011_v25 = vsel %vm2002_vm3, %v1978_v63, %v3690_v24  ;;  %v2012_v42 = vsel %vm2002_vm3, %v1979_v11, %v3691_v12  ;;  %v2029_v48 = vsel %vm2002_vm3, %v1996_v58, %v3705_v51  ;;  %v2030_v23 = vsel %vm2002_vm3, %v1997_v31, %v3706_v9  ;;  %v7229_v11 = vld [vmem:[#allocation44_spill] sm:$0xff]  ;;  %v7231_v24 = vld [vmem:[#allocation47_spill] sm:$0xff]  ;;  %v7232_v58 = vld [vmem:[#allocation50_spill] sm:$0xff] }
 0x19c   : > { %v2039_v52 = vpack.c.bf16 %v2012_v42, %v2011_v25  ;;  %v2048_v61 = vpack.c.bf16 %v2030_v23, %v2029_v48  ;;  %v3699_v47 = vpop.permute.xlu0 %3698  ;;  %v5823_v17 = vpop.permute.xlu1 %3713  ;;  %v1803_v63 = vsel %vm1771_vm7, %v7228_v8, %v3246_v27  ;;  %v1802_v6 = vsel %vm1771_vm7, %v7229_v11, %v3245_v28  ;;  %v7234_v48 = vld [vmem:[#allocation53_spill] sm:$0xff] }
 0x19d   : > { %v3701_v37 = vunpack.i.h.bf16 %v3699_v47  ;;  %v3700_v19 = vunpack.i.l.bf16 %v3699_v47  ;;  %v3326_v12 = vunpack.i.h.bf16 %v7230_v1  ;;  %v1801_v9 = vsel %vm1771_vm7, %v7231_v24, %v3241_v50 }
 0x19e   : > { %3074 = vmatprep.mubr.msk.bf16.mxu0 %vm2094_vm0, %v2039_v52  ;;  %3091 = vmatmul.mubr.msk.bf16.gmra.mxu1 %vm2094_vm0, %v2048_v61  ;;  %v3325_v51 = vunpack.i.l.bf16 %v7230_v1  ;;  %v3321_v31 = vunpack.i.h.bf16 %v7232_v58  ;;  %v3320_v38 = vunpack.i.l.bf16 %v7232_v58  ;;  %v1800_v25 = vsel %vm1771_vm7, %v7233_v57, %v3240_v53 }
 0x19f   : > { %v2013_v56 = vsel %vm2002_vm3, %v1980_v39, %v3700_v19  ;;  %v2014_v29 = vsel %vm2002_vm3, %v1981_v59, %v3701_v37  ;;  %v1820_v42 = vsel %vm1804_vm14, %v1787_v44, %v3286_v60  ;;  %v3366_v23 = vunpack.i.h.bf16 %v7234_v48  ;;  %v7236_v59 = vld [vmem:[#allocation59_spill] sm:$0xff] }
 0x1a0   : > { %v2040_v45 = vpack.c.bf16 %v2014_v29, %v2013_v56  ;;  %v5833_v22 = vpop.permute.xlu0 %3708  ;;  %v5835_v55 = vpop.permute.xlu1 %3723  ;;  %v3365_v36 = vunpack.i.l.bf16 %v7234_v48  ;;  %v1819_v61 = vsel %vm1804_vm14, %v1786_v43, %v3285_v41  ;;  %v1817_v47 = vsel %vm1804_vm14, %v1784_v10, %v3280_v18 }
 0x1a1   : > { %v3360_v37 = vunpack.i.l.bf16 %v7235_v2  ;;  %v1818_v19 = vsel %vm1804_vm14, %v1785_v7, %v3281_v35  ;;  %v1836_v39 = vsel %vm1804_vm14, %v1803_v63, %v3326_v12  ;;  %v3406_v56 = vunpack.i.h.bf16 %v7236_v59 }
 0x1a2   : > { %3075 = vmatmul.mubr.msk.bf16.gmra.mxu0 %vm2094_vm0, %v2040_v45  ;;  %v3405_v29 = vunpack.i.l.bf16 %v7236_v59  ;;  %v1835_v45 = vsel %vm1804_vm14, %v1802_v6, %v3325_v51  ;;  %v1833_v33 = vsel %vm1804_vm14, %v1800_v25, %v3320_v38  ;;  %v1834_v0 = vsel %vm1804_vm14, %v1801_v9, %v3321_v31 }
 0x1a3   : > { %v1852_v15 = vsel %vm1837_vm9, %v1819_v61, %v3365_v36  ;;  %v1853_v32 = vsel %vm1837_vm9, %v1820_v42, %v3366_v23  ;;  %v3715_v27 = vunpack.i.l.bf16 %v5823_v17  ;;  %v1850_v50 = vsel %vm1837_vm9, %v1817_v47, %v3360_v37 }
 0x1a4   : > { %v5840_v20 = vpop.permute.xlu0 %3718  ;;  %v5842_v5 = vpop.permute.xlu1 %3733  ;;  %v1851_v40 = vsel %vm1837_vm9, %v1818_v19, %v3361_v16  ;;  %v3716_v44 = vunpack.i.h.bf16 %v5823_v17  ;;  %v3710_v3 = vunpack.i.l.bf16 %v5833_v22  ;;  %v1868_v43 = vsel %vm1837_vm9, %v1835_v45, %v3405_v29 }
 0x1a5   : > { %v1869_v53 = vsel %vm1837_vm9, %v1836_v39, %v3406_v56  ;;  %v3711_v13 = vunpack.i.h.bf16 %v5833_v22  ;;  %v3725_v60 = vunpack.i.l.bf16 %v5835_v55  ;;  %v1866_v21 = vsel %vm1837_vm9, %v1833_v33, %v3400_v46 }
 0x1a6   : > { %v3726_v7 = vunpack.i.h.bf16 %v5835_v55  ;;  %v3721_v62 = vunpack.i.h.bf16 %v5840_v20  ;;  %v3720_v10 = vunpack.i.l.bf16 %v5840_v20  ;;  %v1867_v17 = vsel %vm1837_vm9, %v1834_v0, %v3401_v14 }
 0x1a7   : > { %v1899_v41 = vsel %vm1870_vm12, %v1866_v21, %v3715_v27  ;;  %v3736_v4 = vunpack.i.h.bf16 %v5842_v5  ;;  %v3735_v18 = vunpack.i.l.bf16 %v5842_v5  ;;  %v1900_v63 = vsel %vm1870_vm12, %v1867_v17, %v3716_v44 }
 0x1a8   : > { %v5855_v34 = vpop.permute.xlu0 %3728  ;;  %v5857_v30 = vpop.permute.xlu1 %3743  ;;  %v1883_v11 = vsel %vm1870_vm12, %v1850_v50, %v3710_v3  ;;  %v1884_v20 = vsel %vm1870_vm12, %v1851_v40, %v3711_v13  ;;  %v1901_v35 = vsel %vm1870_vm12, %v1868_v43, %v3725_v60  ;;  %v1902_v5 = vsel %vm1870_vm12, %v1869_v53, %v3726_v7 }
 0x1a9   : > { %v3731_v55 = vunpack.i.h.bf16 %v5855_v34  ;;  %v3730_v6 = vunpack.i.l.bf16 %v5855_v34  ;;  %v3746_v1 = vunpack.i.h.bf16 %v5857_v30  ;;  %v3745_v12 = vunpack.i.l.bf16 %v5857_v30 }
 0x1aa   : > { %v1886_v24 = vsel %vm1870_vm12, %v1853_v32, %v3721_v62  ;;  %v1885_v9 = vsel %vm1870_vm12, %v1852_v15, %v3720_v10  ;;  %v1932_v58 = vsel %vm1903_vm4, %v1899_v41, %v3735_v18  ;;  %v1933_v34 = vsel %vm1903_vm4, %v1900_v63, %v3736_v4 }
 0x1ab   : > { %v1916_v42 = vsel %vm1903_vm4, %v1883_v11, %v3730_v6  ;;  %v1917_v30 = vsel %vm1903_vm4, %v1884_v20, %v3731_v55  ;;  %v1934_v36 = vsel %vm1903_vm4, %v1901_v35, %v3745_v12  ;;  %v1935_v61 = vsel %vm1903_vm4, %v1902_v5, %v3746_v1 }
 0x1ac   : > { %v5881_v26 = vpop.permute.xlu0 %3738  ;;  %v5883_v52 = vpop.permute.xlu1 %3753 }
 0x1ad   : > { %v3755_v51 = vunpack.i.l.bf16 %v5883_v52  ;;  %v3756_v31 = vunpack.i.h.bf16 %v5883_v52  ;;  %v3741_v16 = vunpack.i.h.bf16 %v5881_v26  ;;  %v3740_v52 = vunpack.i.l.bf16 %v5881_v26 }
 0x1af   : > { %v1965_v37 = vsel %vm1936_vm6, %v1932_v58, %v3755_v51  ;;  %v1966_v39 = vsel %vm1936_vm6, %v1933_v34, %v3756_v31  ;;  %v1918_v55 = vsel %vm1903_vm4, %v1885_v9, %v3740_v52  ;;  %v1919_v6 = vsel %vm1903_vm4, %v1886_v24, %v3741_v16 }
 0x1b0   : > { %v3749_v28 = vpop.permute.xlu0 %3748  ;;  %v5901_v49 = vpop.permute.xlu1 %3763 }
 0x1b1   : > { %v3750_v38 = vunpack.i.l.bf16 %v3749_v28  ;;  %v3751_v48 = vunpack.i.h.bf16 %v3749_v28  ;;  %v3765_v23 = vunpack.i.l.bf16 %v5901_v49  ;;  %v3766_v19 = vunpack.i.h.bf16 %v5901_v49 }
 0x1b3   : > { %v1949_v59 = vsel %vm1936_vm6, %v1916_v42, %v3750_v38  ;;  %v1950_v0 = vsel %vm1936_vm6, %v1917_v30, %v3751_v48  ;;  %v1967_v54 = vsel %vm1936_vm6, %v1934_v36, %v3765_v23  ;;  %v1968_v28 = vsel %vm1936_vm6, %v1935_v61, %v3766_v19  ;;  %v5979_v42 = vld [vmem:[%s6869_s4] ss:$0 sm:$0xff] }
 0x1b4   : > { %v5919_v8 = vpop.permute.xlu0 %3758  ;;  %v3774_v22 = vpop.permute.xlu1 %3773 }
 0x1b5   : > { %v3776_v47 = vunpack.i.h.bf16 %v3774_v22  ;;  %v3775_v2 = vunpack.i.l.bf16 %v3774_v22  ;;  %v3761_v49 = vunpack.i.h.bf16 %v5919_v8  ;;  %v3760_v44 = vunpack.i.l.bf16 %v5919_v8 }
 0x1b7   : > { %v1998_v26 = vsel %vm1969_vm1, %v1965_v37, %v3775_v2  ;;  %v1999_v32 = vsel %vm1969_vm1, %v1966_v39, %v3776_v47  ;;  %v1951_v12 = vsel %vm1936_vm6, %v1918_v55, %v3760_v44  ;;  %v1952_v5 = vsel %vm1936_vm6, %v1919_v6, %v3761_v49 }
 0x1b8   : > { %v3769_v57 = vpop.permute.xlu0 %3768  ;;  %v3784_v25 = vpop.permute.xlu1 %3783 }
 0x1b9   : > { %v3771_v56 = vunpack.i.h.bf16 %v3769_v57  ;;  %v3770_v29 = vunpack.i.l.bf16 %v3769_v57  ;;  %v3786_v14 = vunpack.i.h.bf16 %v3784_v25  ;;  %v3785_v27 = vunpack.i.l.bf16 %v3784_v25 }
 0x1bb   : > { %v1982_v3 = vsel %vm1969_vm1, %v1949_v59, %v3770_v29  ;;  %v1983_v43 = vsel %vm1969_vm1, %v1950_v0, %v3771_v56  ;;  %v2000_v17 = vsel %vm1969_vm1, %v1967_v54, %v3785_v27  ;;  %v2001_v41 = vsel %vm1969_vm1, %v1968_v28, %v3786_v14 }
 0x1bc   : > { %v3779_v45 = vpop.permute.xlu0 %3778  ;;  %v3794_v33 = vpop.permute.xlu1 %3793 }
 0x1bd   : > { %v3796_v46 = vunpack.i.h.bf16 %v3794_v33  ;;  %v3795_v15 = vunpack.i.l.bf16 %v3794_v33  ;;  %v3781_v4 = vunpack.i.h.bf16 %v3779_v45  ;;  %v3780_v18 = vunpack.i.l.bf16 %v3779_v45 }
 0x1bf   : > { %v2031_v50 = vsel %vm2002_vm3, %v1998_v26, %v3795_v15  ;;  %v2032_v40 = vsel %vm2002_vm3, %v1999_v32, %v3796_v46  ;;  %v1984_v34 = vsel %vm1969_vm1, %v1951_v12, %v3780_v18  ;;  %v1985_v31 = vsel %vm1969_vm1, %v1952_v5, %v3781_v4 }
 0x1c0   : > { %v2049_v53 = vpack.c.bf16 %v2032_v40, %v2031_v50  ;;  %v3789_v13 = vpop.permute.xlu0 %3788  ;;  %v3804_v60 = vpop.permute.xlu1 %3803 }
 0x1c1   : > { %v3791_v21 = vunpack.i.h.bf16 %v3789_v13  ;;  %v3790_v7 = vunpack.i.l.bf16 %v3789_v13  ;;  %v3806_v62 = vunpack.i.h.bf16 %v3804_v60  ;;  %v3805_v10 = vunpack.i.l.bf16 %v3804_v60 }
 0x1c2   : > { %3094 = vmatprep.mubr.msk.bf16.mxu1 %vm2094_vm0, %v2049_v53 }
 0x1c3   : > { %v2015_v8 = vsel %vm2002_vm3, %v1982_v3, %v3790_v7  ;;  %v2016_v22 = vsel %vm2002_vm3, %v1983_v43, %v3791_v21  ;;  %v2033_v63 = vsel %vm2002_vm3, %v2000_v17, %v3805_v10  ;;  %v2034_v11 = vsel %vm2002_vm3, %v2001_v41, %v3806_v62 }
 0x1c4   : > { %v2041_v20 = vpack.c.bf16 %v2016_v22, %v2015_v8  ;;  %v2050_v35 = vpack.c.bf16 %v2034_v11, %v2033_v63  ;;  %v3799_v1 = vpop.permute.xlu0 %3798 }
 0x1c5   : > { %v3801_v51 = vunpack.i.h.bf16 %v3799_v1  ;;  %v3800_v58 = vunpack.i.l.bf16 %v3799_v1 }
 0x1c6   : > { %3078 = vmatprep.mubr.msk.bf16.mxu0 %vm2094_vm0, %v2041_v20  ;;  %3095 = vmatmul.mubr.msk.bf16.gmra.mxu1 %vm2094_vm0, %v2050_v35 }
 0x1c7   : > { %v2017_v9 = vsel %vm2002_vm3, %v1984_v34, %v3800_v58  ;;  %v2018_v24 = vsel %vm2002_vm3, %v1985_v31, %v3801_v51 }
 0x1c8   : > { %v2042_v38 = vpack.c.bf16 %v2018_v24, %v2017_v9 }
 0x1ca   : > { %3079 = vmatmul.mubr.msk.bf16.gmra.mxu0 %vm2094_vm0, %v2042_v38 }
 0x213   : > { %v3084_v25 = vpop.f32.mrf.mxu1 }
 0x214   : > { %v5985_v36 = vadd.f32 %v3084_v25, %v5979_v42 }
 0x215   : > { %v2245_v48 = vpop.f32.mrf.mxu1 }
 0x216   : > { %v3068_v57 = vpop.f32.mrf.mxu0  ;;  %v5991_v47 = vadd.f32 %v5979_v42, %v2245_v48  ;;  %v2345_v2 = vrot.slane %v5985_v36, 7  ;;  %v2546_v33 = vrot.slane %v5985_v36, 5  ;;  %v2410_v54 = vrot.slane %v5985_v36, 1 }
 0x217   : > { %v5982_v23 = vadd.f32 %v3068_v57, %v5979_v42  ;;  %v3085_v19 = vpop.f32.mrf.mxu1  ;;  %v2444_v46 = vrot.slane %v5985_v36, 2  ;;  %v2478_v15 = vrot.slane %v5985_v36, 3  ;;  %v2512_v27 = vrot.slane %v5985_v36, 4 }
 0x218   : > { %v2181_v30 = vpop.f32.mrf.mxu0  ;;  %v2346_v52 = vsel %vm2325_vm15, %v2345_v2, %v5991_v47  ;;  %v2545_v0 = vrot.slane %v5991_v47, 6  ;;  %v2375_v32 = vrot.slane %v5991_v47, 1  ;;  %v2409_v14 = vrot.slane %v5991_v47, 2 }
 0x219   : > { %v5988_v61 = vadd.f32 %v5979_v42, %v2181_v30  ;;  %v2324_v16 = vrot.slane %v5982_v23, 7  ;;  %v2248_v59 = vpop.f32.mrf.mxu1  ;;  %v2580_v28 = vrot.slane %v5985_v36, 6  ;;  %v6009_v49 = vadd.f32 %v3085_v19, %v5979_v42 }
 0x21a   : > { %v3069_v39 = vpop.f32.mrf.mxu0  ;;  %v2532_v40 = vrot.slane %v5982_v23, 5  ;;  %v2396_v44 = vrot.slane %v5982_v23, 1  ;;  %v2443_v3 = vrot.slane %v5991_v47, 3  ;;  %v6015_v43 = vadd.f32 %v5979_v42, %v2248_v59 }
 0x21b   : > { %v2326_v37 = vsel %vm2325_vm15, %v2324_v16, %v5988_v61  ;;  %v2531_v53 = vrot.slane %v5988_v61, 6  ;;  %v2361_v13 = vrot.slane %v5988_v61, 1  ;;  %v2395_v60 = vrot.slane %v5988_v61, 2 }
 0x21c   : > { %v2184_v56 = vpop.f32.mrf.mxu0  ;;  %v6024_v7 = vsel %vm2325_vm15, %v2546_v33, %v2545_v0  ;;  %v2429_v62 = vrot.slane %v5988_v61, 3  ;;  %v2477_v10 = vrot.slane %v5991_v47, 4  ;;  %v6036_v4 = vsel %vm2325_vm15, %v5985_v36, %v2375_v32 }
 0x21d   : > { %v6039_v18 = vsel %vm2325_vm15, %v2410_v54, %v2409_v14  ;;  %v6042_v8 = vadd.f32 %v3069_v39, %v5979_v42  ;;  %v6048_v63 = vsel %vm2325_vm15, %v2444_v46, %v2443_v3  ;;  %v2430_v11 = vrot.slane %v5982_v23, 2 }
 0x21e   : > { %v6052_v55 = vadd.f32 %v5979_v42, %v2184_v56  ;;  %v6055_v6 = vsel %vm2325_vm15, %v2532_v40, %v2531_v53  ;;  %v6059_v20 = vsel %vm2325_vm15, %v5982_v23, %v2361_v13  ;;  %v6062_v35 = vsel %vm2325_vm15, %v2396_v44, %v2395_v60 }
 0x21f   : > { %v6065_v1 = vsel %vm2325_vm15, %v2430_v11, %v2429_v62  ;;  %v6068_v12 = vsel %vm2325_vm15, %v2478_v15, %v2477_v10  ;;  %v2463_v5 = vrot.slane %v5988_v61, 4  ;;  %v2464_v58 = vrot.slane %v5982_v23, 3 }
 0x220   : > { %v2511_v34 = vrot.slane %v5991_v47, 5  ;;  %v2497_v24 = vrot.slane %v5988_v61, 5  ;;  %v2498_v38 = vrot.slane %v5982_v23, 4  ;;  %v2579_v30 = vrot.slane %v5991_v47, 7 }
 0x221   : > { %v2565_v48 = vrot.slane %v5988_v61, 7  ;;  %v2833_v16 = vrot.slane %v6015_v43, 6  ;;  %v2819_v19 = vrot.slane %v6052_v55, 6  ;;  %v2629_v39 = vrot.slane %v6009_v49, 7 }
 0x222   : > { %v2566_v47 = vrot.slane %v5982_v23, 6  ;;  %v2615_v61 = vrot.slane %v6042_v8, 7  ;;  %v2663_v56 = vrot.slane %v6015_v43, 1  ;;  %v2697_v33 = vrot.slane %v6015_v43, 2 }
 0x223   : > { %v6103_v0 = vsel %vm2325_vm15, %v2512_v27, %v2511_v34  ;;  %v6106_v54 = vsel %vm2325_vm15, %v2498_v38, %v2497_v24  ;;  %v6109_v23 = vsel %vm2325_vm15, %v2580_v28, %v2579_v30  ;;  %v6122_v32 = vsel %vm2325_vm15, %v2629_v39, %v6015_v43 }
 0x224   : > { %v6112_v46 = vsel %vm2325_vm15, %v2566_v47, %v2565_v48  ;;  %v2698_v14 = vrot.slane %v6009_v49, 1  ;;  %v6127_v27 = vsel %vm2325_vm15, %v2615_v61, %v6052_v55  ;;  %v6131_v28 = vsel %vm2325_vm15, %v6009_v49, %v2663_v56 }
 0x225   : > { %v2731_v40 = vrot.slane %v6015_v43, 3  ;;  %v2684_v53 = vrot.slane %v6042_v8, 1  ;;  %v2717_v13 = vrot.slane %v6052_v55, 3  ;;  %v2732_v60 = vrot.slane %v6009_v49, 2 }
 0x226   : > { %v6140_v3 = vsel %vm2325_vm15, %v2698_v14, %v2697_v33  ;;  %v2718_v62 = vrot.slane %v6042_v8, 2  ;;  %v2765_v10 = vrot.slane %v6015_v43, 4  ;;  %v2751_v11 = vrot.slane %v6052_v55, 4 }
 0x227   : > { %v2867_v34 = vrot.slane %v6015_v43, 7  ;;  %v2752_v24 = vrot.slane %v6042_v8, 3  ;;  %v2853_v38 = vrot.slane %v6052_v55, 7  ;;  %v2800_v30 = vrot.slane %v6009_v49, 4 }
 0x228   : > { %v2786_v48 = vrot.slane %v6042_v8, 4 }
 0x236   : > { %v3088_v29 = vpop.f32.mrf.mxu1 }
 0x237   : > { %v6029_v17 = vadd.f32 %v3088_v29, %v5979_v42  ;;  %v2820_v29 = vrot.slane %v6042_v8, 5 }
 0x238   : > { %v2261_v26 = vpop.f32.mrf.mxu1 }
 0x239   : > { %v6021_v21 = vadd.f32 %v5979_v42, %v2261_v26  ;;  %v2349_v31 = vrot.slane %v6029_v17, 5  ;;  %v6118_v26 = vsel %vm2325_vm15, %v2820_v29, %v2819_v19  ;;  %v6171_v19 = vsel %vm2325_vm15, %v2752_v24, %v2751_v11 }
 0x23a   : > { %v3072_v45 = vpop.f32.mrf.mxu0  ;;  %v2379_v29 = vrot.slane %v6029_v17, 6 }
 0x23b   : > { %v6045_v22 = vadd.f32 %v3072_v45, %v5979_v42  ;;  %v2347_v51 = vrot.slane %v6021_v21, 6  ;;  %v2649_v45 = vrot.slane %v6052_v55, 1  ;;  %v2377_v47 = vrot.slane %v6021_v21, 7 }
 0x23c   : > { %v2197_v50 = vpop.f32.mrf.mxu0 }
 0x23d   : > { %v6032_v41 = vadd.f32 %v5979_v42, %v2197_v50  ;;  %v2348_v57 = vsel %vm2328_vm8, %v2347_v51, %v2346_v52  ;;  %v2330_v25 = vrot.slane %v6045_v22, 5  ;;  %v6093_v52 = vsel %vm2325_vm15, %v2464_v58, %v2463_v5 }
 0x23e   : > { %v6083_v36 = vsel %vm2331_vm10, %v2349_v31, %v2348_v57  ;;  %v2683_v50 = vrot.slane %v6052_v55, 2  ;;  %v6137_v44 = vsel %vm2325_vm15, %v6042_v8, %v2649_v45  ;;  %v2766_v5 = vrot.slane %v6009_v49, 3  ;;  %v3089_v57 = vpop.f32.mrf.mxu1  ;;  %v3073_v39 = vpop.f32.mrf.mxu0 }
 0x23f   : > { %v2327_v9 = vrot.slane %v6032_v41, 6  ;;  %v2799_v51 = vrot.slane %v6015_v43, 5  ;;  %v2785_v58 = vrot.slane %v6052_v55, 5  ;;  %v2868_v43 = vrot.slane %v6009_v49, 6 }
 0x240   : > { %v6153_v31 = vsel %vm2325_vm15, %v2684_v53, %v2683_v50  ;;  %v2854_v55 = vrot.slane %v6042_v8, 6  ;;  %v2446_v45 = vrot.slane %v6021_v21, 1  ;;  %v2264_v33 = vpop.f32.mrf.mxu1  ;;  %v2534_v14 = vrot.slane %v6032_v41, 4  ;;  %v2200_v11 = vpop.f32.mrf.mxu0 }
 0x241   : > { %v2329_v2 = vsel %vm2328_vm8, %v2327_v9, %v2326_v37  ;;  %v2834_v37 = vrot.slane %v6009_v49, 5  ;;  %v6156_v9 = vsel %vm2325_vm15, %v2732_v60, %v2731_v40  ;;  %v6176_v61 = vsel %vm2325_vm15, %v2800_v30, %v2799_v51 }
 0x242   : > { %v6090_v59 = vsel %vm2331_vm10, %v2330_v25, %v2329_v2  ;;  %v6161_v25 = vsel %vm2325_vm15, %v2718_v62, %v2717_v13  ;;  %v2548_v2 = vrot.slane %v6021_v21, 4  ;;  %v6179_v56 = vsel %vm2325_vm15, %v2786_v48, %v2785_v58 }
 0x243   : > { %v6115_v15 = vsel %vm2325_vm15, %v2834_v37, %v2833_v16  ;;  %v6168_v16 = vsel %vm2325_vm15, %v2766_v5, %v2765_v10  ;;  %v6182_v49 = vsel %vm2325_vm15, %v2868_v43, %v2867_v34  ;;  %v2550_v37 = vrot.slane %v6029_v17, 3 }
 0x244   : > { %7238 = vst [vmem:[#allocation13_spill] sm:$0xff] %v6182_v49  ;;  %v6188_v8 = vsel %vm2325_vm15, %v2854_v55, %v2853_v38  ;;  %v2413_v50 = vrot.slane %v6029_v17, 7  ;;  %v2482_v40 = vrot.slane %v6029_v17, 1  ;;  %v2516_v53 = vrot.slane %v6029_v17, 2 }
 0x245   : > { %7239 = vst [vmem:[#allocation35_spill] sm:$0xff] %v6188_v8  ;;  %v6195_v13 = vadd.f32 %v3089_v57, %v5979_v42  ;;  %v2549_v60 = vsel %vm2328_vm8, %v2548_v2, %v6024_v7  ;;  %v2412_v62 = vsel %vm2328_vm8, %v6021_v21, %v6039_v18  ;;  %v2584_v10 = vrot.slane %v6029_v17, 4 }
 0x246   : > { %v2378_v5 = vsel %vm2328_vm8, %v2377_v47, %v6036_v4  ;;  %v2363_v51 = vrot.slane %v6032_v41, 7  ;;  %v2480_v58 = vrot.slane %v6021_v21, 2  ;;  %v2514_v34 = vrot.slane %v6021_v21, 3 }
 0x247   : > { %v6209_v24 = vadd.f32 %v5979_v42, %v2264_v33  ;;  %v2536_v7 = vrot.slane %v6045_v22, 3  ;;  %v2447_v18 = vsel %vm2328_vm8, %v2446_v45, %v6048_v63  ;;  %v2432_v38 = vrot.slane %v6032_v41, 1 }
 0x248   : > { %v6216_v57 = vsel %vm2331_vm10, %v2550_v37, %v2549_v60  ;;  %v2535_v4 = vsel %vm2328_vm8, %v2534_v14, %v6055_v6  ;;  %v2365_v30 = vrot.slane %v6045_v22, 6  ;;  %v2466_v48 = vrot.slane %v6032_v41, 2 }
 0x249   : > { %7240 = vst [vmem:[#allocation15_spill] sm:$0xff] %v6209_v24  ;;  %v6223_v43 = vadd.f32 %v3073_v39, %v5979_v42  ;;  %v6226_v2 = vadd.f32 %v5979_v42, %v2200_v11  ;;  %v6229_v63 = vsel %vm2331_vm10, %v2379_v29, %v2378_v5  ;;  %v6232_v55 = vsel %vm2331_vm10, %v2413_v50, %v2412_v62 }
 0x24a   : > { %v2364_v47 = vsel %vm2328_vm8, %v2363_v51, %v6059_v20  ;;  %v2398_v6 = vsel %vm2328_vm8, %v6032_v41, %v6062_v35  ;;  %v2399_v37 = vrot.slane %v6045_v22, 7  ;;  %v6242_v39 = vsel %vm2331_vm10, %v6029_v17, %v2447_v18 }
 0x24b   : > { %v6245_v45 = vsel %vm2331_vm10, %v2536_v7, %v2535_v4  ;;  %v2433_v29 = vsel %vm2328_vm8, %v2432_v38, %v6065_v1  ;;  %v2481_v33 = vsel %vm2328_vm8, %v2480_v58, %v6068_v12  ;;  %v2515_v20 = vsel %vm2328_vm8, %v2514_v34, %v6103_v0 }
 0x24c   : > { %v2467_v35 = vsel %vm2328_vm8, %v2466_v48, %v6093_v52  ;;  %v2500_v14 = vrot.slane %v6032_v41, 3  ;;  %v2582_v17 = vrot.slane %v6021_v21, 5  ;;  %v2568_v50 = vrot.slane %v6032_v41, 5 }
 0x24d   : > { %v6259_v60 = vsel %vm2331_vm10, %v2365_v30, %v2364_v47  ;;  %v2468_v1 = vrot.slane %v6045_v22, 1  ;;  %v2836_v62 = vrot.slane %v6209_v24, 4  ;;  %v2822_v12 = vrot.slane %v6226_v2, 4 }
 0x24e   : > { %v6265_v0 = vsel %vm2331_vm10, %v2399_v37, %v2398_v6  ;;  %v6269_v52 = vsel %vm2331_vm10, %v6045_v22, %v2433_v29  ;;  %v2631_v21 = vrot.slane %v6209_v24, 6  ;;  %v2617_v41 = vrot.slane %v6226_v2, 6 }
 0x24f   : > { %v6274_v5 = vsel %vm2331_vm10, %v2482_v40, %v2481_v33  ;;  %v6277_v51 = vsel %vm2331_vm10, %v2468_v1, %v2467_v35  ;;  %v6280_v58 = vsel %vm2331_vm10, %v2516_v53, %v2515_v20  ;;  %v2502_v34 = vrot.slane %v6045_v22, 2 }
 0x250   : > { %v2501_v7 = vsel %vm2328_vm8, %v2500_v14, %v6106_v54  ;;  %v2583_v18 = vsel %vm2328_vm8, %v2582_v17, %v6109_v23  ;;  %v2569_v38 = vsel %vm2328_vm8, %v2568_v50, %v6112_v46  ;;  %v2570_v40 = vrot.slane %v6045_v22, 4 }
 0x251   : > { %v2837_v30 = vsel %vm2328_vm8, %v2836_v62, %v6115_v15  ;;  %v2838_v53 = vrot.slane %v6195_v13, 3  ;;  %v2823_v48 = vsel %vm2328_vm8, %v2822_v12, %v6118_v26  ;;  %v2665_v47 = vrot.slane %v6209_v24, 7 }
 0x252   : > { %v2824_v54 = vrot.slane %v6223_v43, 3  ;;  %v2632_v23 = vsel %vm2328_vm8, %v2631_v21, %v6122_v32  ;;  %v2618_v46 = vsel %vm2328_vm8, %v2617_v41, %v6127_v27  ;;  %v2651_v22 = vrot.slane %v6226_v2, 7 }
 0x253   : > { %v6303_v15 = vsel %vm2331_vm10, %v2502_v34, %v2501_v7  ;;  %v6306_v37 = vsel %vm2331_vm10, %v2584_v10, %v2583_v18  ;;  %v2633_v26 = vrot.slane %v6195_v13, 5  ;;  %v2619_v29 = vrot.slane %v6223_v43, 5 }
 0x254   : > { %v6311_v32 = vsel %vm2331_vm10, %v2570_v40, %v2569_v38  ;;  %v6314_v27 = vsel %vm2331_vm10, %v2838_v53, %v2837_v30  ;;  %v6317_v33 = vsel %vm2331_vm10, %v2824_v54, %v2823_v48  ;;  %v2667_v20 = vrot.slane %v6195_v13, 6 }
 0x255   : > { %v6321_v10 = vsel %vm2331_vm10, %v2633_v26, %v2632_v23  ;;  %v6324_v14 = vsel %vm2331_vm10, %v2619_v29, %v2618_v46  ;;  %v2666_v17 = vsel %vm2328_vm8, %v2665_v47, %v6131_v28  ;;  %v2653_v50 = vrot.slane %v6223_v43, 6 }
 0x256   : > { %v2652_v62 = vsel %vm2328_vm8, %v2651_v22, %v6137_v44  ;;  %v2734_v12 = vrot.slane %v6209_v24, 1  ;;  %v2720_v21 = vrot.slane %v6226_v2, 1  ;;  %v2701_v34 = vrot.slane %v6195_v13, 7 }
 0x257   : > { %v2768_v7 = vrot.slane %v6209_v24, 2  ;;  %v2754_v28 = vrot.slane %v6226_v2, 2  ;;  %v6346_v38 = vsel %vm2331_vm10, %v2667_v20, %v2666_v17  ;;  %v2700_v44 = vsel %vm2328_vm8, %v6209_v24, %v6140_v3 }
 0x258   : > { %v2687_v40 = vrot.slane %v6223_v43, 7  ;;  %v6356_v30 = vsel %vm2331_vm10, %v2653_v50, %v2652_v62  ;;  %v2686_v53 = vsel %vm2328_vm8, %v6226_v2, %v6153_v31  ;;  %v2770_v48 = vrot.slane %v6195_v13, 1 }
 0x259   : > { %v2735_v47 = vsel %vm2328_vm8, %v2734_v12, %v6156_v9  ;;  %v2721_v3 = vsel %vm2328_vm8, %v2720_v21, %v6161_v25  ;;  %v2802_v54 = vrot.slane %v6209_v24, 3  ;;  %v6369_v23 = vsel %vm2331_vm10, %v2701_v34, %v2700_v44 }
 0x25a   : > { %v2769_v46 = vsel %vm2328_vm8, %v2768_v7, %v6168_v16  ;;  %v2755_v31 = vsel %vm2328_vm8, %v2754_v28, %v6171_v19  ;;  %v6377_v9 = vsel %vm2331_vm10, %v2687_v40, %v2686_v53  ;;  %v2756_v25 = vrot.slane %v6223_v43, 1 }
 0x25b   : > { %v6385_v16 = vsel %vm2331_vm10, %v6195_v13, %v2735_v47  ;;  %v6389_v19 = vsel %vm2331_vm10, %v6223_v43, %v2721_v3  ;;  %v6403_v50 = vsel %vm2328_vm8, %v2802_v54, %v6176_v61  ;;  %vm2905_vm15 = vcmask 654336  }
 0x25c   : > { %v6399_v17 = vsel %vm2331_vm10, %v2756_v25, %v2755_v31 }
 0x25d   : > { %7241 = vst [vmem:[#allocation9_spill] sm:$0xff] %v6399_v17 }
 0x25e   : > { %v3092_v11 = vpop.f32.mrf.mxu1 }
 0x25f   : > { %v6337_v41 = vadd.f32 %v3092_v11, %v5979_v42 }
 0x260   : > { %v2277_v6 = vpop.f32.mrf.mxu1 }
 0x261   : > { %v6330_v1 = vadd.f32 %v5979_v42, %v2277_v6  ;;  %v2353_v22 = vrot.slane %v6337_v41, 3  ;;  %v2383_v47 = vrot.slane %v6337_v41, 4  ;;  %v2485_v31 = vrot.slane %v6337_v41, 7 }
 0x262   : > { %v3076_v4 = vpop.f32.mrf.mxu0  ;;  %v3093_v29 = vpop.f32.mrf.mxu1 }
 0x263   : > { %v6353_v11 = vadd.f32 %v3076_v4, %v5979_v42  ;;  %v2351_v4 = vrot.slane %v6330_v1, 4  ;;  %v2552_v12 = vrot.slane %v6330_v1, 2  ;;  %v2381_v28 = vrot.slane %v6330_v1, 5 }
 0x264   : > { %v2213_v35 = vpop.f32.mrf.mxu0  ;;  %v2415_v44 = vrot.slane %v6330_v1, 6  ;;  %v6426_v25 = vadd.f32 %v3093_v29, %v5979_v42 }
 0x265   : > { %v6343_v18 = vadd.f32 %v5979_v42, %v2213_v35  ;;  %v2352_v6 = vsel %vm2334_vm13, %v2351_v4, %v6083_v36  ;;  %v2336_v35 = vrot.slane %v6353_v11, 3  ;;  %v6396_v36 = vsel %vm2331_vm10, %v2770_v48, %v2769_v46  ;;  %v2280_v48 = vpop.f32.mrf.mxu1 }
 0x266   : > { %v6392_v20 = vsel %vm2337_vm5, %v2353_v22, %v2352_v6  ;;  %v3077_v53 = vpop.f32.mrf.mxu0  ;;  %v2417_v4 = vrot.slane %v6337_v41, 5  ;;  %v2451_v46 = vrot.slane %v6337_v41, 6  ;;  %v2382_v40 = vsel %vm2334_vm13, %v2381_v28, %v6229_v63 }
 0x267   : > { %v2333_v26 = vrot.slane %v6343_v18, 4  ;;  %v2538_v54 = vrot.slane %v6343_v18, 2  ;;  %v2416_v29 = vsel %vm2334_vm13, %v2415_v44, %v6232_v55  ;;  %v2367_v34 = vrot.slane %v6343_v18, 5 }
 0x268   : > { %v2216_v61 = vpop.f32.mrf.mxu0  ;;  %v2540_v55 = vrot.slane %v6353_v11, 1  ;;  %v6455_v28 = vadd.f32 %v3077_v53, %v5979_v42  ;;  %v2369_v8 = vrot.slane %v6353_v11, 4  ;;  %v2418_v17 = vsel %vm2337_vm5, %v2417_v4, %v2416_v29 }
 0x269   : > { %v2335_v62 = vsel %vm2334_vm13, %v2333_v26, %v6090_v59  ;;  %v2554_v59 = vrot.slane %v6337_v41, 1  ;;  %v2553_v26 = vsel %vm2334_vm13, %v2552_v12, %v6216_v57  ;;  %v6443_v57 = vadd.f32 %v5979_v42, %v2280_v48 }
 0x26a   : > { %v6411_v7 = vsel %vm2337_vm5, %v2336_v35, %v2335_v62  ;;  %v2449_v35 = vrot.slane %v6330_v1, 7  ;;  %v2484_v62 = vsel %vm2334_vm13, %v6330_v1, %v6274_v5  ;;  %v2401_v5 = vrot.slane %v6343_v18, 6 }
 0x26b   : > { %v2555_v22 = vsel %vm2337_vm5, %v2554_v59, %v2553_v26  ;;  %v2384_v48 = vsel %vm2337_vm5, %v2383_v47, %v2382_v40  ;;  %v2539_v26 = vsel %vm2334_vm13, %v2538_v54, %v6245_v45  ;;  %v2368_v40 = vsel %vm2334_vm13, %v2367_v34, %v6259_v60 }
 0x26c   : > { %v2402_v47 = vsel %vm2334_vm13, %v2401_v5, %v6265_v0  ;;  %v2450_v4 = vsel %vm2334_vm13, %v2449_v35, %v6242_v39  ;;  %v2541_v60 = vsel %vm2337_vm5, %v2540_v55, %v2539_v26  ;;  %v2403_v39 = vrot.slane %v6353_v11, 5 }
 0x26d   : > { %v2452_v35 = vsel %vm2337_vm5, %v2451_v46, %v2450_v4  ;;  %v2435_v5 = vrot.slane %v6343_v18, 7 }
 0x26e   : > { %v2404_v55 = vsel %vm2337_vm5, %v2403_v39, %v2402_v47  ;;  %v2840_v39 = vrot.slane %v6443_v57, 2 }
 0x26f   : > { %v2436_v47 = vsel %vm2334_vm13, %v2435_v5, %v6269_v52 }
 0x286   : > { %v3096_v6 = vpop.f32.mrf.mxu1 }
 0x287   : > { %v6435_v3 = vadd.f32 %v3096_v6, %v5979_v42  ;;  %v2518_v6 = vrot.slane %v6330_v1, 1 }
 0x288   : > { %v2293_v12 = vpop.f32.mrf.mxu1 }
 0x289   : > { %v6449_v21 = vadd.f32 %v5979_v42, %v2293_v12  ;;  %v2557_v63 = vrot.slane %v6435_v3, 7  ;;  %v2387_v0 = vrot.slane %v6435_v3, 2  ;;  %v2421_v4 = vrot.slane %v6435_v3, 3 }
 0x28a   : > { %v3080_v44 = vpop.f32.mrf.mxu0 }
 0x28b   : > { %v6461_v24 = vadd.f32 %v3080_v44, %v5979_v42  ;;  %v2556_v59 = vsel %vm2340_vm2, %v6449_v21, %v2555_v22  ;;  %v2385_v12 = vrot.slane %v6449_v21, 3  ;;  %v2419_v22 = vrot.slane %v6449_v21, 4 }
 0x28c   : > { %v2229_v53 = vpop.f32.mrf.mxu0  ;;  %v2558_v49 = vsel %vm2343_vm11, %v2557_v63, %v2556_v59  ;;  %v6483_v63 = vadd.f32 %v5979_v42, %v2216_v61 }
 0x28d   : > { %v6476_v29 = vadd.f32 %v5979_v42, %v2229_v53  ;;  %2561 = vrot.lane.b32.xlu1 %v2558_v49, %s3881_s12  ;;  %v2543_v45 = vrot.slane %v6461_v24, 7  ;;  %v2386_v54 = vsel %vm2340_vm2, %v2385_v12, %v2384_v48  ;;  %v2370_v48 = vsel %vm2337_vm5, %v2369_v8, %v2368_v40 }
 0x28e   : > { %v2388_v61 = vsel %vm2343_vm11, %v2387_v0, %v2386_v54  ;;  %v2420_v26 = vsel %vm2340_vm2, %v2419_v22, %v2418_v17  ;;  %v2453_v12 = vrot.slane %v6449_v21, 5  ;;  %v2373_v53 = vrot.slane %v6461_v24, 2 }
 0x28f   : > { %v2542_v34 = vsel %vm2340_vm2, %v6476_v29, %v2541_v60  ;;  %v2371_v49 = vrot.slane %v6476_v29, 3  ;;  %v2405_v46 = vrot.slane %v6476_v29, 4  ;;  %v2437_v8 = vrot.slane %v6353_v11, 6 }
 0x290   : > { %v2544_v44 = vsel %vm2343_vm11, %v2543_v45, %v2542_v34  ;;  %v2486_v40 = vsel %vm2337_vm5, %v2485_v31, %v2484_v62  ;;  %v2519_v45 = vsel %vm2334_vm13, %v2518_v6, %v6280_v58  ;;  %v2504_v17 = vrot.slane %v6343_v18, 1 }
 0x291   : > { %2559 = vrot.lane.b32.xlu0 %v2544_v44, %s3881_s12  ;;  %2391 = vrot.lane.b32.xlu1 %v2388_v61, %s3876_s15  ;;  %v2372_v59 = vsel %vm2340_vm2, %v2371_v49, %v2370_v48  ;;  %v2586_v54 = vrot.slane %v6330_v1, 3  ;;  %v2422_v60 = vsel %vm2343_vm11, %v2421_v4, %v2420_v26  ;;  %v2572_v0 = vrot.slane %v6343_v18, 3  ;;  %s3888_s12 = smov 96  }
 0x292   : > { %v2374_v22 = vsel %vm2343_vm11, %v2373_v53, %v2372_v59  ;;  %v2406_v52 = vsel %vm2340_vm2, %v2405_v46, %v2404_v55  ;;  %v2454_v58 = vsel %vm2340_vm2, %v2453_v12, %v2452_v35  ;;  %v2439_v31 = vrot.slane %v6476_v29, 5  ;;  %v3097_v59 = vpop.f32.mrf.mxu1 }
 0x293   : > { %v2487_v1 = vrot.slane %v6449_v21, 6  ;;  %v2407_v62 = vrot.slane %v6461_v24, 3  ;;  %v2455_v6 = vrot.slane %v6435_v3, 4  ;;  %v2470_v34 = vsel %vm2334_vm13, %v6343_v18, %v6277_v51 }
 0x294   : > { %v2471_v49 = vrot.slane %v6353_v11, 7  ;;  %v2438_v5 = vsel %vm2337_vm5, %v2437_v8, %v2436_v47  ;;  %v2520_v44 = vsel %vm2337_vm5, %v6337_v41, %v2519_v45  ;;  %v2505_v35 = vsel %vm2334_vm13, %v2504_v17, %v6303_v15  ;;  %v3081_v17 = vpop.f32.mrf.mxu0 }
 0x295   : > { %2389 = vrot.lane.b32.xlu0 %v2374_v22, %s3876_s15  ;;  %2425 = vrot.lane.b32.xlu1 %v2422_v60, %s3877_s16  ;;  %v2587_v61 = vsel %vm2334_vm13, %v2586_v54, %v6306_v37  ;;  %v2408_v48 = vsel %vm2343_vm11, %v2407_v62, %v2406_v52  ;;  %v2456_v55 = vsel %vm2343_vm11, %v2455_v6, %v2454_v58  ;;  %v2473_v37 = vrot.slane %v6476_v29, 6 }
 0x296   : > { %v2573_v51 = vsel %vm2334_vm13, %v2572_v0, %v6311_v32  ;;  %v2841_v18 = vsel %vm2334_vm13, %v2840_v39, %v6314_v27  ;;  %v2440_v15 = vsel %vm2340_vm2, %v2439_v31, %v2438_v5  ;;  %v2488_v26 = vsel %vm2340_vm2, %v2487_v1, %v2486_v40  ;;  %v2296_v39 = vpop.f32.mrf.mxu1 }
 0x297   : > { %v2521_v46 = vrot.slane %v6449_v21, 7  ;;  %v2441_v12 = vrot.slane %v6461_v24, 4  ;;  %v2489_v32 = vrot.slane %v6435_v3, 5  ;;  %v2574_v53 = vrot.slane %v6353_v11, 2 }
 0x298   : > { %v2842_v27 = vrot.slane %v6426_v25, 1  ;;  %v2472_v4 = vsel %vm2337_vm5, %v2471_v49, %v2470_v34  ;;  %v2506_v8 = vsel %vm2337_vm5, %v6353_v11, %v2505_v35  ;;  %v7242_v47 = vrot.slane %v6337_v41, 2  ;;  %v2232_v35 = vpop.f32.mrf.mxu0 }
 0x299   : > { %2423 = vrot.lane.b32.xlu0 %v2408_v48, %s3877_s16  ;;  %2459 = vrot.lane.b32.xlu1 %v2456_v55, %s3878_s30  ;;  %v2826_v45 = vrot.slane %v6483_v63, 2  ;;  %v2442_v54 = vsel %vm2343_vm11, %v2441_v12, %v2440_v15  ;;  %v2490_v22 = vsel %vm2343_vm11, %v2489_v32, %v2488_v26  ;;  %v2575_v60 = vsel %vm2337_vm5, %v2574_v53, %v2573_v51  ;;  %s3884_s16 = smov 112  }
 0x29a   : > { %v2589_v40 = vsel %vm2337_vm5, %v7242_v47, %v2587_v61  ;;  %v2843_v0 = vsel %vm2337_vm5, %v2842_v27, %v2841_v18  ;;  %v2474_v41 = vsel %vm2340_vm2, %v2473_v37, %v2472_v4  ;;  %v2522_v11 = vsel %vm2340_vm2, %v2521_v46, %v2520_v44 }
 0x29b   : > { %v2507_v52 = vrot.slane %v6476_v29, 7  ;;  %v2590_v58 = vrot.slane %v6449_v21, 1  ;;  %v2475_v31 = vrot.slane %v6461_v24, 5  ;;  %v2523_v1 = vrot.slane %v6435_v3, 6 }
 0x29c   : > { %v2828_v62 = vrot.slane %v6455_v28, 1  ;;  %v2635_v6 = vrot.slane %v6443_v57, 4  ;;  %v6574_v34 = vadd.f32 %v3097_v59, %v5979_v42  ;;  %v2827_v49 = vsel %vm2334_vm13, %v2826_v45, %v6317_v33 }
 0x29d   : > { %2457 = vrot.lane.b32.xlu0 %v2442_v54, %s3878_s30  ;;  %2493 = vrot.lane.b32.xlu1 %v2490_v22, %s3879_s6  ;;  %v2637_v5 = vrot.slane %v6426_v25, 3  ;;  %v2621_v44 = vrot.slane %v6483_v63, 4  ;;  %v6581_v61 = vadd.f32 %v5979_v42, %v2296_v39  ;;  %v2476_v48 = vsel %vm2343_vm11, %v2475_v31, %v2474_v41  ;;  %s3885_s30 = smov 72  }
 0x29e   : > { %v2524_v55 = vsel %vm2343_vm11, %v2523_v1, %v2522_v11  ;;  %v2576_v51 = vrot.slane %v6476_v29, 1  ;;  %v2508_v33 = vsel %vm2340_vm2, %v2507_v52, %v2506_v8  ;;  %v2591_v18 = vsel %vm2340_vm2, %v2590_v58, %v2589_v40 }
 0x29f   : > { %v2623_v59 = vrot.slane %v6455_v28, 3  ;;  %v2669_v15 = vrot.slane %v6443_v57, 5  ;;  %v2509_v26 = vrot.slane %v6461_v24, 6  ;;  %v2829_v37 = vsel %vm2337_vm5, %v2828_v62, %v2827_v49 }
 0x2a0   : > { %v2636_v46 = vsel %vm2334_vm13, %v2635_v6, %v6321_v10  ;;  %v2671_v12 = vrot.slane %v6426_v25, 4  ;;  %v6598_v32 = vadd.f32 %v3081_v17, %v5979_v42  ;;  %v6601_v53 = vadd.f32 %v5979_v42, %v2232_v35 }
 0x2a1   : > { %2491 = vrot.lane.b32.xlu0 %v2476_v48, %s3879_s6  ;;  %2527 = vrot.lane.b32.xlu1 %v2524_v55, %s3880_s7  ;;  %v2845_v27 = vrot.slane %v6574_v34, 7  ;;  %v2655_v4 = vrot.slane %v6483_v63, 5  ;;  %v2510_v8 = vsel %vm2343_vm11, %v2509_v26, %v2508_v33  ;;  %v2592_v47 = vsel %vm2343_vm11, %v6435_v3, %v2591_v18  ;;  %s3886_s6 = smov 80  }
 0x2a2   : > { %v2577_v40 = vsel %vm2340_vm2, %v2576_v51, %v2575_v60  ;;  %v2844_v10 = vsel %vm2340_vm2, %v6581_v61, %v2843_v0  ;;  %v2638_v42 = vsel %vm2337_vm5, %v2637_v5, %v2636_v46  ;;  %v2639_v45 = vrot.slane %v6581_v61, 2 }
 0x2a3   : > { %v2622_v17 = vsel %vm2334_vm13, %v2621_v44, %v6324_v14  ;;  %v2355_v54 = vrot.slane %v6449_v21, 2  ;;  %v2670_v22 = vsel %vm2334_vm13, %v2669_v15, %v6346_v38  ;;  %v2703_v60 = vrot.slane %v6443_v57, 6 }
 0x2a4   : > { %v2357_v0 = vrot.slane %v6435_v3, 1  ;;  %v2339_v39 = vrot.slane %v6476_v29, 2  ;;  %v2578_v41 = vsel %vm2343_vm11, %v6461_v24, %v2577_v40  ;;  %v2846_v11 = vsel %vm2343_vm11, %v2845_v27, %v2844_v10 }
 0x2a5   : > { %2525 = vrot.lane.b32.xlu0 %v2510_v8, %s3880_s7  ;;  %2595 = vrot.lane.b32.xlu1 %v2592_v47, %s3882_s26  ;;  %v2356_v52 = vsel %vm2340_vm2, %v2355_v54, %v6392_v20  ;;  %v2342_v14 = vrot.slane %v6461_v24, 1  ;;  %v2830_v21 = vsel %vm2340_vm2, %v6601_v53, %v2829_v37  ;;  %v2831_v38 = vrot.slane %v6598_v32, 7  ;;  %s3887_s7 = smov 88  }
 0x2a6   : > { %v6633_v58 = vsel %vm2343_vm11, %v2357_v0, %v2356_v52  ;;  %v2341_v3 = vsel %vm2340_vm2, %v2339_v39, %v6411_v7  ;;  %v2640_v29 = vsel %vm2340_vm2, %v2639_v45, %v2638_v42  ;;  %v2625_v20 = vrot.slane %v6601_v53, 2 }
 0x2a7   : > { %v2673_v24 = vrot.slane %v6581_v61, 3  ;;  %v6642_v31 = vsel %vm2343_vm11, %v2342_v14, %v2341_v3  ;;  %v2641_v1 = vrot.slane %v6574_v34, 1  ;;  %v2624_v62 = vsel %vm2337_vm5, %v2623_v59, %v2622_v17 }
 0x2a8   : > { %v2657_v6 = vrot.slane %v6455_v28, 4  ;;  %v7243_v7 = vrot.slane %v6195_v13, 2  ;;  %v2672_v5 = vsel %vm2337_vm5, %v2671_v12, %v2670_v22  ;;  %v2656_v44 = vsel %vm2334_vm13, %v2655_v4, %v6356_v30 }
 0x2a9   : > { %2593 = vrot.lane.b32.xlu0 %v2578_v41, %s3882_s26  ;;  %2849 = vrot.lane.b32.xlu1 %v2846_v11, %s3884_s16  ;;  %v2705_v35 = vrot.slane %v6426_v25, 5  ;;  %v2689_v48 = vrot.slane %v6483_v63, 6  ;;  %v2832_v55 = vsel %vm2343_vm11, %v2831_v38, %v2830_v21  ;;  %v2642_v51 = vsel %vm2343_vm11, %v2641_v1, %v2640_v29  ;;  %s217_s26 = scalar_lea.vmem [#allocation2], %s3004_s25 }
 0x2aa   : > { %v6651_v49 = vsel %vm2331_vm10, %v7243_v7, %v6403_v50  ;;  %v2704_v33 = vsel %vm2334_vm13, %v2703_v60, %v6369_v23  ;;  %v2737_v18 = vrot.slane %v6443_v57, 7  ;;  %v2626_v50 = vsel %vm2340_vm2, %v2625_v20, %v2624_v62  ;;  %v7246_v7 = vld [vmem:[#allocation15_spill] sm:$0xff]  ;;  %s2938_s8 = sshll.u32 %s217_s26, 4  ;;  %s6813_s8 = int_to_ptr.vmem [resolvable:$true] %s2938_s8 }
 0x2ab   : > { %v2674_v30 = vsel %vm2340_vm2, %v2673_v24, %v2672_v5  ;;  %v2659_v59 = vrot.slane %v6601_v53, 3  ;;  %v2707_v15 = vrot.slane %v6581_v61, 4  ;;  %v2627_v26 = vrot.slane %v6598_v32, 1  ;;  %s3814_s22 = scalar_lea.vmem %s6813_s8, 256 }
 0x2ac   : > { %v2675_v37 = vrot.slane %v6574_v34, 2  ;;  %v7244_v23 = vrot.slane %v6226_v2, 3  ;;  %v2858_v12 = vrot.slane %v6223_v43, 4  ;;  %v2658_v27 = vsel %vm2337_vm5, %v2657_v6, %v2656_v44  ;;  %v7245_v6 = vld [vmem:[#allocation13_spill] sm:$0xff]  ;;  %p3815_p11 = scmp.ne.s32.totalorder %s6813_s8, %s3814_s22 }
 0x2ad   : > { %2847 = vrot.lane.b32.xlu0 %v2832_v55, %s3884_s16  ;;  %2645 = vrot.lane.b32.xlu1 %v2642_v51, %s3883_s10  ;;  %v2706_v4 = vsel %vm2337_vm5, %v2705_v35, %v2704_v33  ;;  %v2691_v8 = vrot.slane %v6455_v28, 5  ;;  %v2723_v47 = vrot.slane %v6483_v63, 7  ;;  %v2628_v40 = vsel %vm2343_vm11, %v2627_v26, %v2626_v50  ;;  %s6824_s16 = scalar_lea.sflag [#allocation3], %s215_s23 }
 0x2ae   : > { %v2789_v46 = vsel %vm2328_vm8, %v7244_v23, %v6179_v56  ;;  %v2676_v10 = vsel %vm2343_vm11, %v2675_v37, %v2674_v30  ;;  %v2690_v42 = vsel %vm2334_vm13, %v2689_v48, %v6377_v9  ;;  %v2738_v56 = vsel %vm2334_vm13, %v2737_v18, %v6385_v16  ;;  %v7248_v48 = vld [vmem:[#allocation9_spill] sm:$0xff]  ;;  %p3816_p12 = pnand %p3815_p11, %p3962_p5 }
 0x2af   : > { %v2660_v45 = vsel %vm2340_vm2, %v2659_v59, %v2658_v27  ;;  %v2708_v17 = vsel %vm2340_vm2, %v2707_v15, %v2706_v4  ;;  %v2693_v54 = vrot.slane %v6601_v53, 4  ;;  %v2741_v22 = vrot.slane %v6581_v61, 5 }
 0x2b0   : > { %v2661_v60 = vrot.slane %v6598_v32, 2  ;;  %v2709_v0 = vrot.slane %v6574_v34, 3  ;;  %v2739_v9 = vrot.slane %v6426_v25, 6  ;;  %v2725_v16 = vrot.slane %v6455_v28, 6  ;;  %p3817_p13 = pneg %p3816_p12 }
 0x2b1   : > { %2643 = vrot.lane.b32.xlu0 %v2628_v40, %s3883_s10  ;;  %2679 = vrot.lane.b32.xlu1 %v2676_v10, %s3885_s30  ;;  %v2692_v39 = vsel %vm2337_vm5, %v2691_v8, %v2690_v42  ;;  %v2724_v41 = vsel %vm2334_vm13, %v2723_v47, %v6389_v19  ;;  %v2772_v11 = vsel %vm2334_vm13, %v6443_v57, %v6396_v36  ;;  %v2773_v52 = vrot.slane %v6426_v25, 7 }
 0x2b2   : > { %v2662_v14 = vsel %vm2343_vm11, %v2661_v60, %v2660_v45  ;;  %v2710_v21 = vsel %vm2343_vm11, %v2709_v0, %v2708_v17  ;;  %v2740_v38 = vsel %vm2337_vm5, %v2739_v9, %v2738_v56  ;;  %v2806_v3 = vrot.slane %v6443_v57, 1 }
 0x2b3   : > { %v2694_v29 = vsel %vm2340_vm2, %v2693_v54, %v2692_v39  ;;  %v2742_v19 = vsel %vm2340_vm2, %v2741_v22, %v2740_v38  ;;  %v2727_v20 = vrot.slane %v6601_v53, 5  ;;  %v2775_v36 = vrot.slane %v6581_v61, 6 }
 0x2b4   : > { %v2695_v24 = vrot.slane %v6598_v32, 3  ;;  %v2743_v1 = vrot.slane %v6574_v34, 4  ;;  %v2726_v62 = vsel %vm2337_vm5, %v2725_v16, %v2724_v41  ;;  %v7247_v5 = vrot.slane %v7246_v7, 5 }
 0x2b5   : > { %2677 = vrot.lane.b32.xlu0 %v2662_v14, %s3885_s30  ;;  %2713 = vrot.lane.b32.xlu1 %v2710_v21, %s3886_s6  ;;  %v2774_v35 = vsel %vm2337_vm5, %v2773_v52, %v2772_v11  ;;  %v2758_v55 = vsel %vm2334_vm13, %v6483_v63, %v7248_v48  ;;  %v2759_v51 = vrot.slane %v6455_v28, 7  ;;  %v2792_v33 = vrot.slane %v6483_v63, 1  ;;  %s3891_s30 = smov [#allocation2]  }
 0x2b6   : > { %v2871_v44 = vsel %vm2328_vm8, %v7247_v5, %v7245_v6  ;;  %v2696_v18 = vsel %vm2343_vm11, %v2695_v24, %v2694_v29  ;;  %v2744_v50 = vsel %vm2343_vm11, %v2743_v1, %v2742_v19  ;;  %v2807_v30 = vsel %vm2334_vm13, %v2806_v3, %v6651_v49 }
 0x2b7   : > { %v2874_v59 = vrot.slane %v6443_v57, 3  ;;  %v2728_v15 = vsel %vm2340_vm2, %v2727_v20, %v2726_v62  ;;  %v2776_v26 = vsel %vm2340_vm2, %v2775_v36, %v2774_v35  ;;  %v2761_v37 = vrot.slane %v6601_v53, 6  ;;  %v7250_v57 = vld [vmem:[#allocation35_spill] sm:$0xff] }
 0x2b8   : > { %v2809_v23 = vrot.slane %v6581_v61, 7  ;;  %v2729_v27 = vrot.slane %v6598_v32, 4  ;;  %v2777_v4 = vrot.slane %v6574_v34, 5  ;;  %v7249_v8 = vrot.slane %v6223_v43, 2 }
 0x2b9   : > { %2711 = vrot.lane.b32.xlu0 %v2696_v18, %s3886_s6  ;;  %2747 = vrot.lane.b32.xlu1 %v2744_v50, %s3887_s7  ;;  %v7251_v47 = vrot.slane %v6226_v2, 5  ;;  %v2760_v10 = vsel %vm2337_vm5, %v2759_v51, %v2758_v55  ;;  %v7252_v56 = vrot.slane %v6195_v13, 4  ;;  %v2860_v17 = vrot.slane %v6483_v63, 3  ;;  %s3818_s6 = sshll.u32 %s3891_s30, 4  ;;  %s3819_s6 = int_to_ptr.vmem [resolvable:$false] %s3818_s6 }
 0x2ba   : > { %v2791_v49 = vsel %vm2331_vm10, %v7249_v8, %v2789_v46  ;;  %v2730_v54 = vsel %vm2343_vm11, %v2729_v27, %v2728_v15  ;;  %v2778_v22 = vsel %vm2343_vm11, %v2777_v4, %v2776_v26  ;;  %v2808_v46 = vsel %vm2337_vm5, %v6426_v25, %v2807_v30  ;;  %p3821_p0 = scmp.lt.s32.totalorder %s6813_s8, %s3819_s6 }
 0x2bb   : > { %v2857_v40 = vsel %vm2328_vm8, %v7251_v47, %v7250_v57  ;;  %v2793_v42 = vsel %vm2334_vm13, %v2792_v33, %v2791_v49  ;;  %v2873_v45 = vsel %vm2331_vm10, %v7252_v56, %v2871_v44  ;;  %v2762_v60 = vsel %vm2340_vm2, %v2761_v37, %v2760_v10 }
 0x2bc   : > { %v2875_v2 = vsel %vm2334_vm13, %v2874_v59, %v2873_v45  ;;  %v2810_v13 = vsel %vm2340_vm2, %v2809_v23, %v2808_v46  ;;  %v2795_v0 = vrot.slane %v6601_v53, 7  ;;  %v2878_v63 = vrot.slane %v6581_v61, 1 }
 0x2bd   : > { %2745 = vrot.lane.b32.xlu0 %v2730_v54, %s3887_s7  ;;  %2781 = vrot.lane.b32.xlu1 %v2778_v22, %s3888_s12  ;;  %v2763_v9 = vrot.slane %v6598_v32, 5  ;;  %v2811_v16 = vrot.slane %v6574_v34, 6  ;;  %v2876_v39 = vrot.slane %v6426_v25, 2  ;;  %v2859_v41 = vsel %vm2331_vm10, %v2858_v12, %v2857_v40  ;;  %s3820_s7 = scalar_lea.vmem %s3819_s6, 512 }
 0x2be   : > { %v2794_v14 = vsel %vm2337_vm5, %v6455_v28, %v2793_v42  ;;  %v2861_v43 = vsel %vm2334_vm13, %v2860_v17, %v2859_v41  ;;  %v2864_v12 = vrot.slane %v6601_v53, 1  ;;  %v2797_v38 = vrot.slane %v6598_v32, 6  ;;  %p3822_p1 = scmp.lt.s32.totalorder %s3820_s7, %s3814_s22 }
 0x2bf   : > { %v2764_v11 = vsel %vm2343_vm11, %v2763_v9, %v2762_v60  ;;  %v2812_v52 = vsel %vm2343_vm11, %v2811_v16, %v2810_v13  ;;  %v2877_v21 = vsel %vm2337_vm5, %v2876_v39, %v2875_v2  ;;  %v2796_v61 = vsel %vm2340_vm2, %v2795_v0, %v2794_v14 }
 0x2c0   : > { %v2879_v25 = vsel %vm2340_vm2, %v2878_v63, %v2877_v21  ;;  %v2862_v3 = vrot.slane %v6455_v28, 2  ;;  %v2798_v29 = vsel %vm2343_vm11, %v2797_v38, %v2796_v61  ;;  %p3823_p2 = por %p3822_p1, %p3821_p0 }
 0x2c1   : > { %2779 = vrot.lane.b32.xlu0 %v2764_v11, %s3888_s12  ;;  %2815 = vrot.lane.b32.xlu1 %v2812_v52, %s3889_s13  ;;  %v2880_v19 = vsel %vm2343_vm11, %v6574_v34, %v2879_v25 }
 0x2c2   : > { %v2863_v20 = vsel %vm2337_vm5, %v2862_v3, %v2861_v43  ;;  %p3824_p3 = pnand %p3823_p2, %p3817_p13 }
 0x2c3   : > { %v2865_v36 = vsel %vm2340_vm2, %v2864_v12, %v2863_v20 }
 0x2c4   : > { %v2866_v24 = vsel %vm2343_vm11, %v6598_v32, %v2865_v36 }
 0x2c5   : > { %2813 = vrot.lane.b32.xlu0 %v2798_v29, %s3889_s13  ;;  %2883 = vrot.lane.b32.xlu1 %v2880_v19, %s3890_s17 }
 0x2c9   : > { %2881 = vrot.lane.b32.xlu0 %v2866_v24, %s3890_s17 }
 0x2ff   : > { %v2562_v53 = vpop.permute.xlu1 %2561 }
 0x303   : > { %v2560_v1 = vpop.permute.xlu0 %2559  ;;  %v2392_v62 = vpop.permute.xlu1 %2391 }
 0x304   : > { %v2888_v15 = vsel %vm1771_vm7, %v6633_v58, %v2392_v62 }
 0x307   : > { %v2390_v28 = vpop.permute.xlu0 %2389  ;;  %v2426_v6 = vpop.permute.xlu1 %2425 }
 0x308   : > { %v2890_v26 = vsel %vm1804_vm14, %v2888_v15, %v2426_v6  ;;  %v2887_v8 = vsel %vm1771_vm7, %v6642_v31, %v2390_v28  ;;  %vm2908_vm7 = vcmask 719872  }
 0x30b   : > { %v2424_v7 = vpop.permute.xlu0 %2423  ;;  %v2460_v5 = vpop.permute.xlu1 %2459 }
 0x30c   : > { %v2892_v27 = vsel %vm1837_vm9, %v2890_v26, %v2460_v5  ;;  %v2889_v57 = vsel %vm1804_vm14, %v2887_v8, %v2424_v7  ;;  %vm2911_vm14 = vcmask 785408  }
 0x30f   : > { %v2458_v44 = vpop.permute.xlu0 %2457  ;;  %v2494_v34 = vpop.permute.xlu1 %2493 }
 0x310   : > { %v2894_v4 = vsel %vm1870_vm12, %v2892_v27, %v2494_v34  ;;  %v2891_v58 = vsel %vm1837_vm9, %v2889_v57, %v2458_v44  ;;  %vm2914_vm9 = vcmask 850944  }
 0x313   : > { %v2492_v35 = vpop.permute.xlu0 %2491  ;;  %v2528_v48 = vpop.permute.xlu1 %2527 }
 0x314   : > { %v2896_v49 = vsel %vm1903_vm4, %v2894_v4, %v2528_v48  ;;  %v2893_v10 = vsel %vm1870_vm12, %v2891_v58, %v2492_v35  ;;  %vm2917_vm12 = vcmask 916480  }
 0x315   : > { %v2898_v42 = vsel %vm1936_vm6, %v2896_v49, %v2562_v53 }
 0x317   : > { %v2526_v55 = vpop.permute.xlu0 %2525  ;;  %v2596_v51 = vpop.permute.xlu1 %2595 }
 0x318   : > { %v2895_v56 = vsel %vm1903_vm4, %v2893_v10, %v2526_v55  ;;  %v2900_v45 = vsel %vm1969_vm1, %v2898_v42, %v2596_v51  ;;  %vm2920_vm4 = vcmask 982016  }
 0x319   : > { %v2897_v46 = vsel %vm1936_vm6, %v2895_v56, %v2560_v1 }
 0x31b   : > { %v2594_v33 = vpop.permute.xlu0 %2593  ;;  %v2850_v18 = vpop.permute.xlu1 %2849 }
 0x31c   : > { %v2899_v60 = vsel %vm1969_vm1, %v2897_v46, %v2594_v33 }
 0x31f   : > { %v2848_v50 = vpop.permute.xlu0 %2847  ;;  %v2646_v30 = vpop.permute.xlu1 %2645 }
 0x320   : > { %v2902_v31 = vsel %vm2002_vm3, %v2900_v45, %v2646_v30 }
 0x323   : > { %v2644_v59 = vpop.permute.xlu0 %2643  ;;  %v2680_v32 = vpop.permute.xlu1 %2679 }
 0x324   : > { %v2904_v22 = vsel %vm2094_vm0, %v2902_v31, %v2680_v32  ;;  %v2901_v0 = vsel %vm2002_vm3, %v2899_v60, %v2644_v59 }
 0x327   : > { %v2678_v37 = vpop.permute.xlu0 %2677  ;;  %v2714_v23 = vpop.permute.xlu1 %2713 }
 0x328   : > { %v2907_v2 = vsel %vm2905_vm15, %v2904_v22, %v2714_v23  ;;  %v2903_v39 = vsel %vm2094_vm0, %v2901_v0, %v2678_v37 }
 0x32b   : > { %v2712_v47 = vpop.permute.xlu0 %2711  ;;  %v2748_v40 = vpop.permute.xlu1 %2747 }
 0x32c   : > { %v2910_v13 = vsel %vm2908_vm7, %v2907_v2, %v2748_v40  ;;  %v2906_v11 = vsel %vm2905_vm15, %v2903_v39, %v2712_v47 }
 0x32f   : > { %v2746_v17 = vpop.permute.xlu0 %2745  ;;  %v2782_v54 = vpop.permute.xlu1 %2781 }
 0x330   : > { %v2913_v63 = vsel %vm2911_vm14, %v2910_v13, %v2782_v54  ;;  %v2909_v52 = vsel %vm2908_vm7, %v2906_v11, %v2746_v17 }
 0x333   : > { %v2780_v9 = vpop.permute.xlu0 %2779  ;;  %v2816_v16 = vpop.permute.xlu1 %2815 }
 0x334   : > { %v2916_v41 = vsel %vm2914_vm9, %v2913_v63, %v2816_v16  ;;  %v2912_v14 = vsel %vm2911_vm14, %v2909_v52, %v2780_v9 }
 0x335   : > { %v2919_v25 = vsel %vm2917_vm12, %v2916_v41, %v2850_v18 }
 0x337   : > { %v2814_v21 = vpop.permute.xlu0 %2813  ;;  %v2884_v61 = vpop.permute.xlu1 %2883 }
 0x338   : > { %v2915_v43 = vsel %vm2914_vm9, %v2912_v14, %v2814_v21  ;;  %v2922_v12 = vsel %vm2920_vm4, %v2919_v25, %v2884_v61 }
 0x339   : > { %2924 = vst [vmem:[%s217_s26 + $0x8] sm:$0xff] %v2922_v12  ;;  %v2918_v3 = vsel %vm2917_vm12, %v2915_v43, %v2848_v50 }
 0x33b   : > { %v2882_v38 = vpop.permute.xlu0 %2881 }
 0x33c   : > { %v2921_v29 = vsel %vm2920_vm4, %v2918_v3, %v2882_v38 }
 0x33d   : > { %2923 = vst [vmem:[%s217_s26] sm:$0xff] %v2921_v29 }
 0x33e   : > { %3827 = shalt.err (!%p3824_p3)
}
 0x33f   : > { %s3828_s12 = scalar_lea.hbm %s6819_s11, 256  ;;  %s3832_s23 = scalar_lea.hbm %s6870_s5, 512 }
 0x340   : > { %p3829_p4 = scmp.ne.s32.totalorder %s6819_s11, %s3828_s12  ;;  %p3833_p9 = scmp.lt.s32.totalorder %s6819_s11, %s6870_s5 }
 0x341   : > { %p3834_p10 = scmp.lt.s32.totalorder %s3832_s23, %s3828_s12 }
 0x342   : > { %p3830_p7 = pnand %p3829_p4, %p3962_p5 }
 0x343   : > { %p3835_p11 = por %p3834_p10, %p3833_p9 }
 0x344   : > { %p3831_p8 = pneg %p3830_p7 }
 0x346   : > { %p3836_p12 = pnand %p3835_p11, %p3831_p8 }
 0x348   : > { %3839 = shalt.err (!%p3836_p12)
}
 0x349   : > { %s3892_s9 = smov 128   ;;  %s3893_s10 = smov 256  }
 0x34a   : > { %3111 = dma.vmem_to_hbm [thread:$0]  (%p3962_p5), %s6813_s8, 256, %s6819_s11, %s6824_s16, %s3892_s9, %s3893_s10, %s3876_s15  }
 0x34b PF: > { %p3117_p13 = scmp.ge.s32.totalorder %s3874_s21, 2  ;;  %s2953_s14 = sand.u32 1, %s3862_s18  }
 0x34c   : > { %s2954_s22 = scalar_lea.sflag [#allocation3], %s2953_s14 }
 0x34d   : > { %p3114_p0 = pnand %p3117_p13, %p3966_p6 }
 0x34f   : > { %p3115_p1 = pneg %p3114_p0 }
 0x351   : > { %3857 = dma.done.wait (%p3115_p1), %s2954_s22, 256  }
 0x352   : > { %3859 = vsyncadd (%p3115_p1), %s2954_s22, 4294967040  ;;  %p15_p2 = scmp.ge.s32.totalorder %s3949_s24, 4   ;;  %s7253_s18 = smov %s3866_s19 }
 0x353   : > { %s7254_s19 = smov %s3870_s20  ;;  %s7255_s20 = smov %s3960_s27 }
 0x354   : > { %s7256_s21 = smov %s3949_s24  ;;  %17 = sbr.rel (!%p15_p2) target bundleno = 3 (0x3), region = 75 }
 0x359   :  { %2959 = vsyncpa [#allocation3], 1 }
 0x35a   :  { %2961 = vsyncpa [#allocation3 + $0x1], 1 }

</bundles_post_ra>
